<compile_context>
chip_gen: v7x
topology: tpu7x:2x2x1
jax: 0.10.0
libtpu: 0.0.40
codegen_flags: <defaults>
</compile_context>

<pallas_src>
import functools

import jax
import jax.numpy as jnp
from jax.experimental import pallas as pl
from jax.experimental.pallas import tpu as pltpu


def _cross_attn_kernel(q_ref, k_ref, v_ref,
                       wqT_ref, wkT_ref, wvT_ref, wcT_ref,
                       bq_ref, bk_ref, bv_ref, bc_ref,
                       *out_and_scratch,
                       num_heads, mm_dtype, approx_recip, need_weights):
    """One grid step == one block of B_blk batch elements.

    Projections run as single (B_blk*L, E) @ (E, E) MXU matmuls against
    pre-transposed, pre-scaled, pre-cast weights; attention is computed per
    head with 3-D einsums batched over the batch dimension; per-head outputs
    are written into a (B_blk*L, E) VMEM scratch so the output projection is
    a single full-depth (B_blk*L, E) @ (E, O) matmul."""
    if need_weights:
        x_ref, w_ref, o_scratch = out_and_scratch
    else:
        (x_ref, o_scratch), w_ref = out_and_scratch, None

    B, L, E = q_ref.shape
    S = k_ref.shape[1]
    O = x_ref.shape[2]
    H = num_heads
    hd = E // H
    f32 = jnp.float32

    # Inputs/weights already arrive in mm_dtype (cast once in the wrapper).
    q2 = q_ref[...].reshape(B * L, E)
    k2 = k_ref[...].reshape(B * S, E)
    v2 = v_ref[...].reshape(B * S, E)

    # nn.Linear: y = x @ W.T + b.  The 1/sqrt(hd) query scale is already folded
    # into wqT / bq.  Bias/softmax math stays in f32.
    qp = jnp.dot(q2, wqT_ref[...], preferred_element_type=f32) + bq_ref[...]   # (B*L, E)
    kp = jnp.dot(k2, wkT_ref[...], preferred_element_type=f32) + bk_ref[...]   # (B*S, E)
    vp = jnp.dot(v2, wvT_ref[...], preferred_element_type=f32) + bv_ref[...]   # (B*S, E)

    w_acc = jnp.zeros((B, L, S), f32) if need_weights else None

    # Static unroll over heads; each iteration does batch-batched 3-D matmuls.
    for h in range(H):
        lo = h * hd
        qh = qp[:, lo:lo + hd].astype(mm_dtype).reshape(B, L, hd)
        kh = kp[:, lo:lo + hd].astype(mm_dtype).reshape(B, S, hd)
        vh = vp[:, lo:lo + hd].astype(mm_dtype).reshape(B, S, hd)

        s = jnp.einsum("bld,bsd->bls", qh, kh,
                       preferred_element_type=f32)                   # (B, L, S)
        s = s - jnp.max(s, axis=-1, keepdims=True)
        p = jnp.exp(s)
        p = p * pl.reciprocal(jnp.sum(p, axis=-1, keepdims=True),
                              approx=approx_recip)
        if need_weights:
            w_acc = w_acc + p

        o_h = jnp.einsum("bls,bsd->bld", p.astype(mm_dtype), vh,
                         preferred_element_type=f32)                  # (B, L, hd)
        # concat_h(o_h): write this head's slice into the VMEM scratch.
        o_scratch[:, lo:lo + hd] = o_h.reshape(B * L, hd).astype(mm_dtype)

    # Single full-contraction-depth output projection.
    x = jnp.dot(o_scratch[...], wcT_ref[...],
                preferred_element_type=f32) + bc_ref[...]             # (B*L, O)
    x_ref[...] = x.reshape(B, L, O).astype(x_ref.dtype)
    if need_weights:
        w_ref[...] = (w_acc * (1.0 / H)).astype(w_ref.dtype)


def _device_kind():
    try:
        return jax.devices()[0].device_kind.lower()
    except Exception:
        return ""


def cross_modal_attention(q, k, v, params, num_heads, *,
                          matmul_dtype=jnp.bfloat16,
                          need_weights=True,
                          weights_dtype=jnp.float32,
                          out_dtype=jnp.float32,
                          block_batch=None):
    """q: (L, N, E); k, v: (S, N, E).

    Returns (x: (L, N, O) out_dtype, attn_w: (N, L, S) weights_dtype or None).
    """
    L, N, E = q.shape
    S = k.shape[0]
    wq, bq = params["wq"], params["bq"]
    wk, bk = params["wk"], params["bk"]
    wv, bv = params["wv"], params["bv"]
    wc, bc = params["wc"], params["bc"]
    O = wc.shape[0]
    hd = E // num_heads
    scale = 1.0 / float(hd) ** 0.5
    mm = matmul_dtype
    kind = _device_kind()

    # Pre-transpose, pre-scale (query only) and pre-cast the grid-invariant
    # weights ONCE in the wrapper.  Biases stay f32 (added after f32 accum).
    wqT = (wq.T * scale).astype(mm)        # (E, E)
    wkT = wk.T.astype(mm)
    wvT = wv.T.astype(mm)
    wcT = wc.T.astype(mm)                  # (E, O)
    bq2 = (bq * scale).reshape(1, E).astype(jnp.float32)
    bk2 = bk.reshape(1, E).astype(jnp.float32)
    bv2 = bv.reshape(1, E).astype(jnp.float32)
    bc2 = bc.reshape(1, O).astype(jnp.float32)

    # Batch-first, cast once to the matmul dtype (halves DMA bytes for bf16).
    qb = jnp.transpose(q, (1, 0, 2)).astype(mm)    # (N, L, E)
    kb = jnp.transpose(k, (1, 0, 2)).astype(mm)    # (N, S, E)
    vb = jnp.transpose(v, (1, 0, 2)).astype(mm)

    # Batch elements per grid step:
    #   * target ~512 projection rows on v5e (4x 128x128 MXUs), ~256 otherwise
    #   * keep >= 2 grid blocks so both v7x TensorCores get work
    #   * prefer a divisor of N so we never jnp.pad the activations in HBM
    if block_batch is None:
        target_rows = 512 if "v5" in kind else 256
        target_b = max(1, min(N, target_rows // max(L, 1)))
        if N >= 2:
            target_b = max(1, min(target_b, -(-N // 2)))
        best_div = max(d for d in range(1, target_b + 1) if N % d == 0)
        block_batch = best_div if 2 * best_div >= target_b else target_b
    B_blk = block_batch
    n_blocks = -(-N // B_blk)
    N_pad = n_blocks * B_blk
    if N_pad != N:   # only hit when an explicit non-divisor block_batch is passed
        pad = ((0, N_pad - N), (0, 0), (0, 0))
        qb = jnp.pad(qb, pad)
        kb = jnp.pad(kb, pad)
        vb = jnp.pad(vb, pad)

    # exact reciprocal whenever weights are returned (rows must sum to 1)
    approx_recip = (mm == jnp.bfloat16) and not need_weights

    kernel = functools.partial(
        _cross_attn_kernel,
        num_heads=num_heads,
        mm_dtype=mm,
        approx_recip=approx_recip,
        need_weights=need_weights,
    )

    x_shape = jax.ShapeDtypeStruct((N_pad, L, O), out_dtype)
    x_spec = pl.BlockSpec((B_blk, L, O), lambda i: (i, 0, 0))
    if need_weights:
        out_shape = (x_shape, jax.ShapeDtypeStruct((N_pad, L, S), weights_dtype))
        out_specs = (x_spec, pl.BlockSpec((B_blk, L, S), lambda i: (i, 0, 0)))
    else:
        out_shape = x_shape
        out_specs = x_spec

    # VMEM budget derived from the actual per-step footprint, capped per
    # generation (v7x has only 64 MiB physical VMEM; v5e/v6e have 128 MiB).
    mm_b = jnp.dtype(mm).itemsize
    x_b = jnp.dtype(out_dtype).itemsize
    w_b = jnp.dtype(weights_dtype).itemsize if need_weights else 0
    blk_in = B_blk * (L + 2 * S) * E * mm_b
    blk_out = B_blk * L * (O * x_b + S * w_b)
    weights_bytes = (3 * E * E + E * O) * mm_b + (3 * E + O) * 4
    scratch_bytes = B_blk * L * E * mm_b
    interm = B_blk * (L + 2 * S) * E * 4 + 2 * B_blk * L * S * 4
    footprint = 2 * blk_in + 2 * blk_out + weights_bytes + scratch_bytes + interm
    vmem_cap = 48 * 1024 * 1024 if "v7" in kind else 96 * 1024 * 1024
    vmem_limit = int(min(max(2 * footprint, 32 * 1024 * 1024), vmem_cap))

    compiler_params = pltpu.CompilerParams(
        # Batch blocks are fully independent -> shard across both v7x TCs.
        dimension_semantics=("parallel",),
        vmem_limit_bytes=vmem_limit,
    )

    def build_call(single_buffer_weights):
        def const_spec(shape):
            if single_buffer_weights:
                return pl.BlockSpec(shape, lambda i: (0,) * len(shape),
                                    pipeline_mode=pl.Buffered(1))
            return pl.BlockSpec(shape, lambda i: (0,) * len(shape))

        in_specs = [
            pl.BlockSpec((B_blk, L, E), lambda i: (i, 0, 0)),   # q block
            pl.BlockSpec((B_blk, S, E), lambda i: (i, 0, 0)),   # k block
            pl.BlockSpec((B_blk, S, E), lambda i: (i, 0, 0)),   # v block
            const_spec((E, E)),                                 # Wq.T (pre-scaled)
            const_spec((E, E)),                                 # Wk.T
            const_spec((E, E)),                                 # Wv.T
            const_spec((E, O)),                                 # Wc.T
            const_spec((1, E)),                                 # bq (pre-scaled)
            const_spec((1, E)),                                 # bk
            const_spec((1, E)),                                 # bv
            const_spec((1, O)),                                 # bc
        ]
        return pl.pallas_call(
            kernel,
            out_shape=out_shape,
            grid=(n_blocks,),
            in_specs=in_specs,
            out_specs=out_specs,
            scratch_shapes=[pltpu.VMEM((B_blk * L, E), mm)],
            compiler_params=compiler_params,
        )

    args = (qb, kb, vb, wqT, wkT, wvT, wcT, bq2, bk2, bv2, bc2)
    attempts = (True, False) if hasattr(pl, "Buffered") else (False,)
    result, err = None, None
    for sbw in attempts:
        try:
            result = build_call(sbw)(*args)
            break
        except Exception as e:   # e.g. Buffered(1) unsupported on this JAX build
            err, result = e, None
    if result is None:
        raise err

    if need_weights:
        x_b_out, attn_w = result
        attn_w = attn_w[:N]
    else:
        x_b_out, attn_w = result, None

    x = jnp.transpose(x_b_out[:N], (1, 0, 2))    # back to (L, N, O)
    return x, attn_w


def _reference(q, k, v, params, num_heads):
    """Pure-JAX reference mirroring F.multi_head_attention_forward."""
    L, N, E = q.shape
    S = k.shape[0]
    hd = E // num_heads
    scale = 1.0 / float(hd) ** 0.5
    hi = jax.lax.Precision.HIGHEST
    qp = (jnp.einsum("lne,fe->lnf", q, params["wq"], precision=hi) + params["bq"]) * scale
    kp = jnp.einsum("sne,fe->snf", k, params["wk"], precision=hi) + params["bk"]
    vp = jnp.einsum("sne,fe->snf", v, params["wv"], precision=hi) + params["bv"]
    qh = qp.reshape(L, N, num_heads, hd)
    kh = kp.reshape(S, N, num_heads, hd)
    vh = vp.reshape(S, N, num_heads, hd)
    s = jnp.einsum("lnhd,snhd->nhls", qh, kh, precision=hi)
    p = jax.nn.softmax(s, axis=-1)
    o = jnp.einsum("nhls,snhd->lnhd", p, vh, precision=hi).reshape(L, N, E)
    x = jnp.einsum("lne,oe->lno", o, params["wc"], precision=hi) + params["bc"]
    return x, jnp.mean(p, axis=1)


if __name__ == "__main__":
    # small shapes consistent with the module's forward
    embed_dim, num_heads, output_dim = 32, 4, 32
    L, S, N = 8, 8, 4

    key = jax.random.PRNGKey(0)
    ks = jax.random.split(key, 11)
    params = {
        "wq": 0.02 * jax.random.normal(ks[0], (embed_dim, embed_dim), jnp.float32),
        "bq": 0.02 * jax.random.normal(ks[1], (embed_dim,), jnp.float32),
        "wk": 0.02 * jax.random.normal(ks[2], (embed_dim, embed_dim), jnp.float32),
        "bk": 0.02 * jax.random.normal(ks[3], (embed_dim,), jnp.float32),
        "wv": 0.02 * jax.random.normal(ks[4], (embed_dim, embed_dim), jnp.float32),
        "bv": 0.02 * jax.random.normal(ks[5], (embed_dim,), jnp.float32),
        "wc": 0.02 * jax.random.normal(ks[6], (output_dim, embed_dim), jnp.float32),
        "bc": 0.02 * jax.random.normal(ks[7], (output_dim,), jnp.float32),
    }
    q = jax.random.normal(ks[8], (L, N, embed_dim), jnp.float32)
    k = jax.random.normal(ks[9], (S, N, embed_dim), jnp.float32)
    v = jax.random.normal(ks[10], (S, N, embed_dim), jnp.float32)

    x_ref, w_ref = _reference(q, k, v, params, num_heads)

    # Precise path: f32 MXU operands, exact reciprocal, f32 outputs.
    x32, w32 = cross_modal_attention(q, k, v, params, num_heads,
                                     matmul_dtype=jnp.float32)
    jax.block_until_ready((x32, w32))
    assert x32.shape == (L, N, output_dim) and w32.shape == (N, L, S)
    assert jnp.allclose(x32, x_ref, atol=2e-3, rtol=2e-3)
    assert jnp.allclose(w32, w_ref, atol=2e-3, rtol=2e-3)

    # Fast path: bf16 MXU operands (f32 accumulation), bf16 attention weights.
    xbf, wbf = cross_modal_attention(q, k, v, params, num_heads,
                                     matmul_dtype=jnp.bfloat16,
                                     weights_dtype=jnp.bfloat16)
    jax.block_until_ready((xbf, wbf))
    assert jnp.allclose(xbf, x_ref, atol=3e-2, rtol=3e-2)
    assert jnp.allclose(wbf.astype(jnp.float32), w_ref, atol=3e-2, rtol=3e-2)

    # need_weights=False variant: skips the (N, L, S) writeback, approx recip.
    xnw, wnw = cross_modal_attention(q, k, v, params, num_heads,
                                     matmul_dtype=jnp.bfloat16,
                                     need_weights=False)
    jax.block_until_ready(xnw)
    assert wnw is None
    assert jnp.allclose(xnw, x_ref, atol=3e-2, rtol=3e-2)

    print("KERNEL_OK")
</pallas_src>

<mosaic_0001>
module attributes {stable_mosaic.version = 11 : i64} {
  func.func @_cross_attn_kernel(%arg0: i32, %arg1: memref<2x8x32xf32, #tpu.memory_space<vmem>>, %arg2: memref<2x8x32xf32, #tpu.memory_space<vmem>>, %arg3: memref<2x8x32xf32, #tpu.memory_space<vmem>>, %arg4: memref<32x32xf32, #tpu.memory_space<vmem>>, %arg5: memref<32x32xf32, #tpu.memory_space<vmem>>, %arg6: memref<32x32xf32, #tpu.memory_space<vmem>>, %arg7: memref<32x32xf32, #tpu.memory_space<vmem>>, %arg8: memref<1x32xf32, #tpu.memory_space<vmem>>, %arg9: memref<1x32xf32, #tpu.memory_space<vmem>>, %arg10: memref<1x32xf32, #tpu.memory_space<vmem>>, %arg11: memref<1x32xf32, #tpu.memory_space<vmem>>, %arg12: memref<2x8x32xf32, #tpu.memory_space<vmem>>, %arg13: memref<2x8x8xf32, #tpu.memory_space<vmem>>, %arg14: memref<16x32xf32, #tpu.memory_space<vmem>>) attributes {dimension_semantics = [#tpu.dimension_semantics<parallel>], iteration_bounds = array<i64: 2>, scalar_prefetch = 0 : i64, scratch_operands = 1 : i64, tpu.core_type = #tpu.core_type<tc>, window_params = [{transform_indices = @transform_0, window_bounds = array<i64: 2, 8, 32>}, {transform_indices = @transform_1, window_bounds = array<i64: 2, 8, 32>}, {transform_indices = @transform_2, window_bounds = array<i64: 2, 8, 32>}, {pipeline_mode = #tpu.pipeline_mode<synchronous>, transform_indices = @transform_3, window_bounds = array<i64: 32, 32>}, {pipeline_mode = #tpu.pipeline_mode<synchronous>, transform_indices = @transform_4, window_bounds = array<i64: 32, 32>}, {pipeline_mode = #tpu.pipeline_mode<synchronous>, transform_indices = @transform_5, window_bounds = array<i64: 32, 32>}, {pipeline_mode = #tpu.pipeline_mode<synchronous>, transform_indices = @transform_6, window_bounds = array<i64: 32, 32>}, {pipeline_mode = #tpu.pipeline_mode<synchronous>, transform_indices = @transform_7, window_bounds = array<i64: 1, 32>}, {pipeline_mode = #tpu.pipeline_mode<synchronous>, transform_indices = @transform_8, window_bounds = array<i64: 1, 32>}, {pipeline_mode = #tpu.pipeline_mode<synchronous>, transform_indices = @transform_9, window_bounds = array<i64: 1, 32>}, {pipeline_mode = #tpu.pipeline_mode<synchronous>, transform_indices = @transform_10, window_bounds = array<i64: 1, 32>}, {transform_indices = @transform_11, window_bounds = array<i64: 2, 8, 32>}, {transform_indices = @transform_12, window_bounds = array<i64: 2, 8, 8>}]} {
    %c0 = arith.constant 0 : index
    %c0_0 = arith.constant 0 : index
    %c0_1 = arith.constant 0 : index
    %0 = vector.load %arg1[%c0, %c0_0, %c0_1] : memref<2x8x32xf32, #tpu.memory_space<vmem>>, vector<2x8x32xf32>
    %1 = vector.shape_cast %0 : vector<2x8x32xf32> to vector<16x32xf32>
    %c0_2 = arith.constant 0 : index
    %c0_3 = arith.constant 0 : index
    %c0_4 = arith.constant 0 : index
    %2 = vector.load %arg2[%c0_2, %c0_3, %c0_4] : memref<2x8x32xf32, #tpu.memory_space<vmem>>, vector<2x8x32xf32>
    %3 = vector.shape_cast %2 : vector<2x8x32xf32> to vector<16x32xf32>
    %c0_5 = arith.constant 0 : index
    %c0_6 = arith.constant 0 : index
    %c0_7 = arith.constant 0 : index
    %4 = vector.load %arg3[%c0_5, %c0_6, %c0_7] : memref<2x8x32xf32, #tpu.memory_space<vmem>>, vector<2x8x32xf32>
    %5 = vector.shape_cast %4 : vector<2x8x32xf32> to vector<16x32xf32>
    %c0_8 = arith.constant 0 : index
    %c0_9 = arith.constant 0 : index
    %6 = vector.load %arg4[%c0_8, %c0_9] : memref<32x32xf32, #tpu.memory_space<vmem>>, vector<32x32xf32>
    %cst = arith.constant dense<0.000000e+00> : vector<16x32xf32>
    %7 = tpu.matmul %1, %6, %cst {dimension_numbers = #tpu.dot_dimension_numbers<[1], [0], [0], [1], [0, 0, 1, 1], [], []>} : vector<16x32xf32>, vector<32x32xf32>, vector<16x32xf32> -> vector<16x32xf32>
    %c0_10 = arith.constant 0 : index
    %c0_11 = arith.constant 0 : index
    %8 = vector.load %arg8[%c0_10, %c0_11] : memref<1x32xf32, #tpu.memory_space<vmem>>, vector<1x32xf32>
    %9 = vector.broadcast %8 : vector<1x32xf32> to vector<16x32xf32>
    %10 = arith.addf %7, %9 : vector<16x32xf32>
    %c0_12 = arith.constant 0 : index
    %c0_13 = arith.constant 0 : index
    %11 = vector.load %arg5[%c0_12, %c0_13] : memref<32x32xf32, #tpu.memory_space<vmem>>, vector<32x32xf32>
    %cst_14 = arith.constant dense<0.000000e+00> : vector<16x32xf32>
    %12 = tpu.matmul %3, %11, %cst_14 {dimension_numbers = #tpu.dot_dimension_numbers<[1], [0], [0], [1], [0, 0, 1, 1], [], []>} : vector<16x32xf32>, vector<32x32xf32>, vector<16x32xf32> -> vector<16x32xf32>
    %c0_15 = arith.constant 0 : index
    %c0_16 = arith.constant 0 : index
    %13 = vector.load %arg9[%c0_15, %c0_16] : memref<1x32xf32, #tpu.memory_space<vmem>>, vector<1x32xf32>
    %14 = vector.broadcast %13 : vector<1x32xf32> to vector<16x32xf32>
    %15 = arith.addf %12, %14 : vector<16x32xf32>
    %c0_17 = arith.constant 0 : index
    %c0_18 = arith.constant 0 : index
    %16 = vector.load %arg6[%c0_17, %c0_18] : memref<32x32xf32, #tpu.memory_space<vmem>>, vector<32x32xf32>
    %cst_19 = arith.constant dense<0.000000e+00> : vector<16x32xf32>
    %17 = tpu.matmul %5, %16, %cst_19 {dimension_numbers = #tpu.dot_dimension_numbers<[1], [0], [0], [1], [0, 0, 1, 1], [], []>} : vector<16x32xf32>, vector<32x32xf32>, vector<16x32xf32> -> vector<16x32xf32>
    %c0_20 = arith.constant 0 : index
    %c0_21 = arith.constant 0 : index
    %18 = vector.load %arg10[%c0_20, %c0_21] : memref<1x32xf32, #tpu.memory_space<vmem>>, vector<1x32xf32>
    %19 = vector.broadcast %18 : vector<1x32xf32> to vector<16x32xf32>
    %20 = arith.addf %17, %19 : vector<16x32xf32>
    %cst_22 = arith.constant 0.000000e+00 : f32
    %21 = vector.broadcast %cst_22 : f32 to vector<2x8x8xf32>
    %22 = vector.extract_strided_slice %10 {offsets = [0, 0], sizes = [16, 8], strides = [1, 1]} : vector<16x32xf32> to vector<16x8xf32>
    %23 = vector.shape_cast %22 : vector<16x8xf32> to vector<2x8x8xf32>
    %24 = vector.extract_strided_slice %15 {offsets = [0, 0], sizes = [16, 8], strides = [1, 1]} : vector<16x32xf32> to vector<16x8xf32>
    %25 = vector.shape_cast %24 : vector<16x8xf32> to vector<2x8x8xf32>
    %26 = vector.extract_strided_slice %20 {offsets = [0, 0], sizes = [16, 8], strides = [1, 1]} : vector<16x32xf32> to vector<16x8xf32>
    %27 = vector.shape_cast %26 : vector<16x8xf32> to vector<2x8x8xf32>
    "tpu.trace_start"() <{level = 10 : i32, message = "bld,bsd->bls"}> : () -> ()
    %cst_23 = arith.constant dense<0.000000e+00> : vector<2x8x8xf32>
    %28 = tpu.matmul %23, %25, %cst_23 {dimension_numbers = #tpu.dot_dimension_numbers<[2], [2], [1], [1], [0, 0, 0, 1, 1, 1], [0], [0]>} : vector<2x8x8xf32>, vector<2x8x8xf32>, vector<2x8x8xf32> -> vector<2x8x8xf32>
    "tpu.trace_stop"() : () -> ()
    %cst_24 = arith.constant dense<0xFF800000> : vector<2x8xf32>
    %29 = vector.multi_reduction <maximumf>, %28, %cst_24 [2] : vector<2x8x8xf32> to vector<2x8xf32>
    %30 = vector.shape_cast %29 : vector<2x8xf32> to vector<2x8x1xf32>
    %31 = vector.broadcast %30 : vector<2x8x1xf32> to vector<2x8x8xf32>
    %32 = arith.subf %28, %31 : vector<2x8x8xf32>
    %33 = math.exp %32 : vector<2x8x8xf32>
    %cst_25 = arith.constant dense<0.000000e+00> : vector<2x8xf32>
    %34 = vector.multi_reduction <add>, %33, %cst_25 [2] : vector<2x8x8xf32> to vector<2x8xf32>
    %35 = vector.shape_cast %34 : vector<2x8xf32> to vector<2x8x1xf32>
    %36 = tpu.reciprocal %35 : vector<2x8x1xf32> -> vector<2x8x1xf32>
    %37 = vector.broadcast %36 : vector<2x8x1xf32> to vector<2x8x8xf32>
    %38 = arith.mulf %33, %37 : vector<2x8x8xf32>
    %39 = arith.addf %21, %38 : vector<2x8x8xf32>
    "tpu.trace_start"() <{level = 10 : i32, message = "bls,bsd->bld"}> : () -> ()
    %cst_26 = arith.constant dense<0.000000e+00> : vector<2x8x8xf32>
    %40 = tpu.matmul %38, %27, %cst_26 {dimension_numbers = #tpu.dot_dimension_numbers<[2], [1], [1], [2], [0, 0, 0, 1, 1, 2], [0], [0]>} : vector<2x8x8xf32>, vector<2x8x8xf32>, vector<2x8x8xf32> -> vector<2x8x8xf32>
    "tpu.trace_stop"() : () -> ()
    %41 = vector.shape_cast %40 : vector<2x8x8xf32> to vector<16x8xf32>
    %c0_27 = arith.constant 0 : index
    %c0_28 = arith.constant 0 : index
    %42 = vector.load %arg14[%c0_27, %c0_28] : memref<16x32xf32, #tpu.memory_space<vmem>>, vector<16x8xf32>
    tpu.vector_store %arg14[%c0_27, %c0_28], %41 {strides = array<i32>} : memref<16x32xf32, #tpu.memory_space<vmem>>, vector<16x8xf32>,
    %43 = vector.extract_strided_slice %10 {offsets = [0, 8], sizes = [16, 8], strides = [1, 1]} : vector<16x32xf32> to vector<16x8xf32>
    %44 = vector.shape_cast %43 : vector<16x8xf32> to vector<2x8x8xf32>
    %45 = vector.extract_strided_slice %15 {offsets = [0, 8], sizes = [16, 8], strides = [1, 1]} : vector<16x32xf32> to vector<16x8xf32>
    %46 = vector.shape_cast %45 : vector<16x8xf32> to vector<2x8x8xf32>
    %47 = vector.extract_strided_slice %20 {offsets = [0, 8], sizes = [16, 8], strides = [1, 1]} : vector<16x32xf32> to vector<16x8xf32>
    %48 = vector.shape_cast %47 : vector<16x8xf32> to vector<2x8x8xf32>
    "tpu.trace_start"() <{level = 10 : i32, message = "bld,bsd->bls"}> : () -> ()
    %cst_29 = arith.constant dense<0.000000e+00> : vector<2x8x8xf32>
    %49 = tpu.matmul %44, %46, %cst_29 {dimension_numbers = #tpu.dot_dimension_numbers<[2], [2], [1], [1], [0, 0, 0, 1, 1, 1], [0], [0]>} : vector<2x8x8xf32>, vector<2x8x8xf32>, vector<2x8x8xf32> -> vector<2x8x8xf32>
    "tpu.trace_stop"() : () -> ()
    %cst_30 = arith.constant dense<0xFF800000> : vector<2x8xf32>
    %50 = vector.multi_reduction <maximumf>, %49, %cst_30 [2] : vector<2x8x8xf32> to vector<2x8xf32>
    %51 = vector.shape_cast %50 : vector<2x8xf32> to vector<2x8x1xf32>
    %52 = vector.broadcast %51 : vector<2x8x1xf32> to vector<2x8x8xf32>
    %53 = arith.subf %49, %52 : vector<2x8x8xf32>
    %54 = math.exp %53 : vector<2x8x8xf32>
    %cst_31 = arith.constant dense<0.000000e+00> : vector<2x8xf32>
    %55 = vector.multi_reduction <add>, %54, %cst_31 [2] : vector<2x8x8xf32> to vector<2x8xf32>
    %56 = vector.shape_cast %55 : vector<2x8xf32> to vector<2x8x1xf32>
    %57 = tpu.reciprocal %56 : vector<2x8x1xf32> -> vector<2x8x1xf32>
    %58 = vector.broadcast %57 : vector<2x8x1xf32> to vector<2x8x8xf32>
    %59 = arith.mulf %54, %58 : vector<2x8x8xf32>
    %60 = arith.addf %39, %59 : vector<2x8x8xf32>
    "tpu.trace_start"() <{level = 10 : i32, message = "bls,bsd->bld"}> : () -> ()
    %cst_32 = arith.constant dense<0.000000e+00> : vector<2x8x8xf32>
    %61 = tpu.matmul %59, %48, %cst_32 {dimension_numbers = #tpu.dot_dimension_numbers<[2], [1], [1], [2], [0, 0, 0, 1, 1, 2], [0], [0]>} : vector<2x8x8xf32>, vector<2x8x8xf32>, vector<2x8x8xf32> -> vector<2x8x8xf32>
    "tpu.trace_stop"() : () -> ()
    %62 = vector.shape_cast %61 : vector<2x8x8xf32> to vector<16x8xf32>
    %c0_33 = arith.constant 0 : index
    %c8 = arith.constant 8 : index
    %63 = vector.load %arg14[%c0_33, %c8] : memref<16x32xf32, #tpu.memory_space<vmem>>, vector<16x8xf32>
    tpu.vector_store %arg14[%c0_33, %c8], %62 {strides = array<i32>} : memref<16x32xf32, #tpu.memory_space<vmem>>, vector<16x8xf32>,
    %64 = vector.extract_strided_slice %10 {offsets = [0, 16], sizes = [16, 8], strides = [1, 1]} : vector<16x32xf32> to vector<16x8xf32>
    %65 = vector.shape_cast %64 : vector<16x8xf32> to vector<2x8x8xf32>
    %66 = vector.extract_strided_slice %15 {offsets = [0, 16], sizes = [16, 8], strides = [1, 1]} : vector<16x32xf32> to vector<16x8xf32>
    %67 = vector.shape_cast %66 : vector<16x8xf32> to vector<2x8x8xf32>
    %68 = vector.extract_strided_slice %20 {offsets = [0, 16], sizes = [16, 8], strides = [1, 1]} : vector<16x32xf32> to vector<16x8xf32>
    %69 = vector.shape_cast %68 : vector<16x8xf32> to vector<2x8x8xf32>
    "tpu.trace_start"() <{level = 10 : i32, message = "bld,bsd->bls"}> : () -> ()
    %cst_34 = arith.constant dense<0.000000e+00> : vector<2x8x8xf32>
    %70 = tpu.matmul %65, %67, %cst_34 {dimension_numbers = #tpu.dot_dimension_numbers<[2], [2], [1], [1], [0, 0, 0, 1, 1, 1], [0], [0]>} : vector<2x8x8xf32>, vector<2x8x8xf32>, vector<2x8x8xf32> -> vector<2x8x8xf32>
    "tpu.trace_stop"() : () -> ()
    %cst_35 = arith.constant dense<0xFF800000> : vector<2x8xf32>
    %71 = vector.multi_reduction <maximumf>, %70, %cst_35 [2] : vector<2x8x8xf32> to vector<2x8xf32>
    %72 = vector.shape_cast %71 : vector<2x8xf32> to vector<2x8x1xf32>
    %73 = vector.broadcast %72 : vector<2x8x1xf32> to vector<2x8x8xf32>
    %74 = arith.subf %70, %73 : vector<2x8x8xf32>
    %75 = math.exp %74 : vector<2x8x8xf32>
    %cst_36 = arith.constant dense<0.000000e+00> : vector<2x8xf32>
    %76 = vector.multi_reduction <add>, %75, %cst_36 [2] : vector<2x8x8xf32> to vector<2x8xf32>
    %77 = vector.shape_cast %76 : vector<2x8xf32> to vector<2x8x1xf32>
    %78 = tpu.reciprocal %77 : vector<2x8x1xf32> -> vector<2x8x1xf32>
    %79 = vector.broadcast %78 : vector<2x8x1xf32> to vector<2x8x8xf32>
    %80 = arith.mulf %75, %79 : vector<2x8x8xf32>
    %81 = arith.addf %60, %80 : vector<2x8x8xf32>
    "tpu.trace_start"() <{level = 10 : i32, message = "bls,bsd->bld"}> : () -> ()
    %cst_37 = arith.constant dense<0.000000e+00> : vector<2x8x8xf32>
    %82 = tpu.matmul %80, %69, %cst_37 {dimension_numbers = #tpu.dot_dimension_numbers<[2], [1], [1], [2], [0, 0, 0, 1, 1, 2], [0], [0]>} : vector<2x8x8xf32>, vector<2x8x8xf32>, vector<2x8x8xf32> -> vector<2x8x8xf32>
    "tpu.trace_stop"() : () -> ()
    %83 = vector.shape_cast %82 : vector<2x8x8xf32> to vector<16x8xf32>
    %c0_38 = arith.constant 0 : index
    %c16 = arith.constant 16 : index
    %84 = vector.load %arg14[%c0_38, %c16] : memref<16x32xf32, #tpu.memory_space<vmem>>, vector<16x8xf32>
    tpu.vector_store %arg14[%c0_38, %c16], %83 {strides = array<i32>} : memref<16x32xf32, #tpu.memory_space<vmem>>, vector<16x8xf32>,
    %85 = vector.extract_strided_slice %10 {offsets = [0, 24], sizes = [16, 8], strides = [1, 1]} : vector<16x32xf32> to vector<16x8xf32>
    %86 = vector.shape_cast %85 : vector<16x8xf32> to vector<2x8x8xf32>
    %87 = vector.extract_strided_slice %15 {offsets = [0, 24], sizes = [16, 8], strides = [1, 1]} : vector<16x32xf32> to vector<16x8xf32>
    %88 = vector.shape_cast %87 : vector<16x8xf32> to vector<2x8x8xf32>
    %89 = vector.extract_strided_slice %20 {offsets = [0, 24], sizes = [16, 8], strides = [1, 1]} : vector<16x32xf32> to vector<16x8xf32>
    %90 = vector.shape_cast %89 : vector<16x8xf32> to vector<2x8x8xf32>
    "tpu.trace_start"() <{level = 10 : i32, message = "bld,bsd->bls"}> : () -> ()
    %cst_39 = arith.constant dense<0.000000e+00> : vector<2x8x8xf32>
    %91 = tpu.matmul %86, %88, %cst_39 {dimension_numbers = #tpu.dot_dimension_numbers<[2], [2], [1], [1], [0, 0, 0, 1, 1, 1], [0], [0]>} : vector<2x8x8xf32>, vector<2x8x8xf32>, vector<2x8x8xf32> -> vector<2x8x8xf32>
    "tpu.trace_stop"() : () -> ()
    %cst_40 = arith.constant dense<0xFF800000> : vector<2x8xf32>
    %92 = vector.multi_reduction <maximumf>, %91, %cst_40 [2] : vector<2x8x8xf32> to vector<2x8xf32>
    %93 = vector.shape_cast %92 : vector<2x8xf32> to vector<2x8x1xf32>
    %94 = vector.broadcast %93 : vector<2x8x1xf32> to vector<2x8x8xf32>
    %95 = arith.subf %91, %94 : vector<2x8x8xf32>
    %96 = math.exp %95 : vector<2x8x8xf32>
    %cst_41 = arith.constant dense<0.000000e+00> : vector<2x8xf32>
    %97 = vector.multi_reduction <add>, %96, %cst_41 [2] : vector<2x8x8xf32> to vector<2x8xf32>
    %98 = vector.shape_cast %97 : vector<2x8xf32> to vector<2x8x1xf32>
    %99 = tpu.reciprocal %98 : vector<2x8x1xf32> -> vector<2x8x1xf32>
    %100 = vector.broadcast %99 : vector<2x8x1xf32> to vector<2x8x8xf32>
    %101 = arith.mulf %96, %100 : vector<2x8x8xf32>
    %102 = arith.addf %81, %101 : vector<2x8x8xf32>
    "tpu.trace_start"() <{level = 10 : i32, message = "bls,bsd->bld"}> : () -> ()
    %cst_42 = arith.constant dense<0.000000e+00> : vector<2x8x8xf32>
    %103 = tpu.matmul %101, %90, %cst_42 {dimension_numbers = #tpu.dot_dimension_numbers<[2], [1], [1], [2], [0, 0, 0, 1, 1, 2], [0], [0]>} : vector<2x8x8xf32>, vector<2x8x8xf32>, vector<2x8x8xf32> -> vector<2x8x8xf32>
    "tpu.trace_stop"() : () -> ()
    %104 = vector.shape_cast %103 : vector<2x8x8xf32> to vector<16x8xf32>
    %c0_43 = arith.constant 0 : index
    %c24 = arith.constant 24 : index
    %105 = vector.load %arg14[%c0_43, %c24] : memref<16x32xf32, #tpu.memory_space<vmem>>, vector<16x8xf32>
    tpu.vector_store %arg14[%c0_43, %c24], %104 {strides = array<i32>} : memref<16x32xf32, #tpu.memory_space<vmem>>, vector<16x8xf32>,
    %c0_44 = arith.constant 0 : index
    %c0_45 = arith.constant 0 : index
    %106 = vector.load %arg14[%c0_44, %c0_45] : memref<16x32xf32, #tpu.memory_space<vmem>>, vector<16x32xf32>
    %c0_46 = arith.constant 0 : index
    %c0_47 = arith.constant 0 : index
    %107 = vector.load %arg7[%c0_46, %c0_47] : memref<32x32xf32, #tpu.memory_space<vmem>>, vector<32x32xf32>
    %cst_48 = arith.constant dense<0.000000e+00> : vector<16x32xf32>
    %108 = tpu.matmul %106, %107, %cst_48 {dimension_numbers = #tpu.dot_dimension_numbers<[1], [0], [0], [1], [0, 0, 1, 1], [], []>} : vector<16x32xf32>, vector<32x32xf32>, vector<16x32xf32> -> vector<16x32xf32>
    %c0_49 = arith.constant 0 : index
    %c0_50 = arith.constant 0 : index
    %109 = vector.load %arg11[%c0_49, %c0_50] : memref<1x32xf32, #tpu.memory_space<vmem>>, vector<1x32xf32>
    %110 = vector.broadcast %109 : vector<1x32xf32> to vector<16x32xf32>
    %111 = arith.addf %108, %110 : vector<16x32xf32>
    %112 = vector.shape_cast %111 : vector<16x32xf32> to vector<2x8x32xf32>
    %c0_51 = arith.constant 0 : index
    %c0_52 = arith.constant 0 : index
    %c0_53 = arith.constant 0 : index
    %113 = vector.load %arg12[%c0_51, %c0_52, %c0_53] : memref<2x8x32xf32, #tpu.memory_space<vmem>>, vector<2x8x32xf32>
    tpu.vector_store %arg12[%c0_51, %c0_52, %c0_53], %112 {strides = array<i32>} : memref<2x8x32xf32, #tpu.memory_space<vmem>>, vector<2x8x32xf32>,
    %cst_54 = arith.constant 2.500000e-01 : f32
    %114 = vector.broadcast %cst_54 : f32 to vector<2x8x8xf32>
    %115 = arith.mulf %102, %114 : vector<2x8x8xf32>
    %c0_55 = arith.constant 0 : index
    %c0_56 = arith.constant 0 : index
    %c0_57 = arith.constant 0 : index
    %116 = vector.load %arg13[%c0_55, %c0_56, %c0_57] : memref<2x8x8xf32, #tpu.memory_space<vmem>>, vector<2x8x8xf32>
    tpu.vector_store %arg13[%c0_55, %c0_56, %c0_57], %115 {strides = array<i32>} : memref<2x8x8xf32, #tpu.memory_space<vmem>>, vector<2x8x8xf32>,
    return
  }
  func.func @transform_0(%arg0: i32) -> (i32, i32, i32) {
    %c0_i32 = arith.constant 0 : i32
    %c0_i32_0 = arith.constant 0 : i32
    %c0_i32_1 = arith.constant 0 : i32
    return %arg0, %c0_i32, %c0_i32_0 : i32, i32, i32
  }
  func.func @transform_1(%arg0: i32) -> (i32, i32, i32) {
    %c0_i32 = arith.constant 0 : i32
    %c0_i32_0 = arith.constant 0 : i32
    %c0_i32_1 = arith.constant 0 : i32
    return %arg0, %c0_i32, %c0_i32_0 : i32, i32, i32
  }
  func.func @transform_2(%arg0: i32) -> (i32, i32, i32) {
    %c0_i32 = arith.constant 0 : i32
    %c0_i32_0 = arith.constant 0 : i32
    %c0_i32_1 = arith.constant 0 : i32
    return %arg0, %c0_i32, %c0_i32_0 : i32, i32, i32
  }
  func.func @transform_3(%arg0: i32) -> (i32, i32) {
    %c0_i32 = arith.constant 0 : i32
    %c0_i32_0 = arith.constant 0 : i32
    %c0_i32_1 = arith.constant 0 : i32
    return %c0_i32, %c0_i32_0 : i32, i32
  }
  func.func @transform_4(%arg0: i32) -> (i32, i32) {
    %c0_i32 = arith.constant 0 : i32
    %c0_i32_0 = arith.constant 0 : i32
    %c0_i32_1 = arith.constant 0 : i32
    return %c0_i32, %c0_i32_0 : i32, i32
  }
  func.func @transform_5(%arg0: i32) -> (i32, i32) {
    %c0_i32 = arith.constant 0 : i32
    %c0_i32_0 = arith.constant 0 : i32
    %c0_i32_1 = arith.constant 0 : i32
    return %c0_i32, %c0_i32_0 : i32, i32
  }
  func.func @transform_6(%arg0: i32) -> (i32, i32) {
    %c0_i32 = arith.constant 0 : i32
    %c0_i32_0 = arith.constant 0 : i32
    %c0_i32_1 = arith.constant 0 : i32
    return %c0_i32, %c0_i32_0 : i32, i32
  }
  func.func @transform_7(%arg0: i32) -> (i32, i32) {
    %c0_i32 = arith.constant 0 : i32
    %c0_i32_0 = arith.constant 0 : i32
    %c0_i32_1 = arith.constant 0 : i32
    return %c0_i32, %c0_i32_0 : i32, i32
  }
  func.func @transform_8(%arg0: i32) -> (i32, i32) {
    %c0_i32 = arith.constant 0 : i32
    %c0_i32_0 = arith.constant 0 : i32
    %c0_i32_1 = arith.constant 0 : i32
    return %c0_i32, %c0_i32_0 : i32, i32
  }
  func.func @transform_9(%arg0: i32) -> (i32, i32) {
    %c0_i32 = arith.constant 0 : i32
    %c0_i32_0 = arith.constant 0 : i32
    %c0_i32_1 = arith.constant 0 : i32
    return %c0_i32, %c0_i32_0 : i32, i32
  }
  func.func @transform_10(%arg0: i32) -> (i32, i32) {
    %c0_i32 = arith.constant 0 : i32
    %c0_i32_0 = arith.constant 0 : i32
    %c0_i32_1 = arith.constant 0 : i32
    return %c0_i32, %c0_i32_0 : i32, i32
  }
  func.func @transform_11(%arg0: i32) -> (i32, i32, i32) {
    %c0_i32 = arith.constant 0 : i32
    %c0_i32_0 = arith.constant 0 : i32
    %c0_i32_1 = arith.constant 0 : i32
    return %arg0, %c0_i32, %c0_i32_0 : i32, i32, i32
  }
  func.func @transform_12(%arg0: i32) -> (i32, i32, i32) {
    %c0_i32 = arith.constant 0 : i32
    %c0_i32_0 = arith.constant 0 : i32
    %c0_i32_1 = arith.constant 0 : i32
    return %arg0, %c0_i32, %c0_i32_0 : i32, i32, i32
  }
}

module attributes {stable_mosaic.version = 11 : i64} {
  func.func @_cross_attn_kernel(%arg0: i32, %arg1: memref<2x8x32xf32, #tpu.memory_space<vmem>>, %arg2: memref<2x8x32xf32, #tpu.memory_space<vmem>>, %arg3: memref<2x8x32xf32, #tpu.memory_space<vmem>>, %arg4: memref<32x32xf32, #tpu.memory_space<vmem>>, %arg5: memref<32x32xf32, #tpu.memory_space<vmem>>, %arg6: memref<32x32xf32, #tpu.memory_space<vmem>>, %arg7: memref<32x32xf32, #tpu.memory_space<vmem>>, %arg8: memref<1x32xf32, #tpu.memory_space<vmem>>, %arg9: memref<1x32xf32, #tpu.memory_space<vmem>>, %arg10: memref<1x32xf32, #tpu.memory_space<vmem>>, %arg11: memref<1x32xf32, #tpu.memory_space<vmem>>, %arg12: memref<2x8x32xf32, #tpu.memory_space<vmem>>, %arg13: memref<2x8x8xf32, #tpu.memory_space<vmem>>, %arg14: memref<16x32xf32, #tpu.memory_space<vmem>>) attributes {dimension_semantics = [#tpu.dimension_semantics<parallel>], iteration_bounds = array<i64: 2>, scalar_prefetch = 0 : i64, scratch_operands = 1 : i64, tpu.core_type = #tpu.core_type<tc>, window_params = [{transform_indices = @transform_0, window_bounds = array<i64: 2, 8, 32>}, {transform_indices = @transform_1, window_bounds = array<i64: 2, 8, 32>}, {transform_indices = @transform_2, window_bounds = array<i64: 2, 8, 32>}, {pipeline_mode = #tpu.pipeline_mode<synchronous>, transform_indices = @transform_3, window_bounds = array<i64: 32, 32>}, {pipeline_mode = #tpu.pipeline_mode<synchronous>, transform_indices = @transform_4, window_bounds = array<i64: 32, 32>}, {pipeline_mode = #tpu.pipeline_mode<synchronous>, transform_indices = @transform_5, window_bounds = array<i64: 32, 32>}, {pipeline_mode = #tpu.pipeline_mode<synchronous>, transform_indices = @transform_6, window_bounds = array<i64: 32, 32>}, {pipeline_mode = #tpu.pipeline_mode<synchronous>, transform_indices = @transform_7, window_bounds = array<i64: 1, 32>}, {pipeline_mode = #tpu.pipeline_mode<synchronous>, transform_indices = @transform_8, window_bounds = array<i64: 1, 32>}, {pipeline_mode = #tpu.pipeline_mode<synchronous>, transform_indices = @transform_9, window_bounds = array<i64: 1, 32>}, {pipeline_mode = #tpu.pipeline_mode<synchronous>, transform_indices = @transform_10, window_bounds = array<i64: 1, 32>}, {transform_indices = @transform_11, window_bounds = array<i64: 2, 8, 32>}, {transform_indices = @transform_12, window_bounds = array<i64: 2, 8, 8>}]} {
    %c0 = arith.constant 0 : index
    %c0_0 = arith.constant 0 : index
    %c0_1 = arith.constant 0 : index
    %0 = vector.load %arg1[%c0, %c0_0, %c0_1] : memref<2x8x32xf32, #tpu.memory_space<vmem>>, vector<2x8x32xf32>
    %1 = vector.shape_cast %0 : vector<2x8x32xf32> to vector<16x32xf32>
    %c0_2 = arith.constant 0 : index
    %c0_3 = arith.constant 0 : index
    %c0_4 = arith.constant 0 : index
    %2 = vector.load %arg2[%c0_2, %c0_3, %c0_4] : memref<2x8x32xf32, #tpu.memory_space<vmem>>, vector<2x8x32xf32>
    %3 = vector.shape_cast %2 : vector<2x8x32xf32> to vector<16x32xf32>
    %c0_5 = arith.constant 0 : index
    %c0_6 = arith.constant 0 : index
    %c0_7 = arith.constant 0 : index
    %4 = vector.load %arg3[%c0_5, %c0_6, %c0_7] : memref<2x8x32xf32, #tpu.memory_space<vmem>>, vector<2x8x32xf32>
    %5 = vector.shape_cast %4 : vector<2x8x32xf32> to vector<16x32xf32>
    %c0_8 = arith.constant 0 : index
    %c0_9 = arith.constant 0 : index
    %6 = vector.load %arg4[%c0_8, %c0_9] : memref<32x32xf32, #tpu.memory_space<vmem>>, vector<32x32xf32>
    %cst = arith.constant dense<0.000000e+00> : vector<16x32xf32>
    %7 = tpu.matmul %1, %6, %cst {dimension_numbers = #tpu.dot_dimension_numbers<[1], [0], [0], [1], [0, 0, 1, 1], [], []>} : vector<16x32xf32>, vector<32x32xf32>, vector<16x32xf32> -> vector<16x32xf32>
    %c0_10 = arith.constant 0 : index
    %c0_11 = arith.constant 0 : index
    %8 = vector.load %arg8[%c0_10, %c0_11] : memref<1x32xf32, #tpu.memory_space<vmem>>, vector<1x32xf32>
    %9 = vector.broadcast %8 : vector<1x32xf32> to vector<16x32xf32>
    %10 = arith.addf %7, %9 : vector<16x32xf32>
    %c0_12 = arith.constant 0 : index
    %c0_13 = arith.constant 0 : index
    %11 = vector.load %arg5[%c0_12, %c0_13] : memref<32x32xf32, #tpu.memory_space<vmem>>, vector<32x32xf32>
    %cst_14 = arith.constant dense<0.000000e+00> : vector<16x32xf32>
    %12 = tpu.matmul %3, %11, %cst_14 {dimension_numbers = #tpu.dot_dimension_numbers<[1], [0], [0], [1], [0, 0, 1, 1], [], []>} : vector<16x32xf32>, vector<32x32xf32>, vector<16x32xf32> -> vector<16x32xf32>
    %c0_15 = arith.constant 0 : index
    %c0_16 = arith.constant 0 : index
    %13 = vector.load %arg9[%c0_15, %c0_16] : memref<1x32xf32, #tpu.memory_space<vmem>>, vector<1x32xf32>
    %14 = vector.broadcast %13 : vector<1x32xf32> to vector<16x32xf32>
    %15 = arith.addf %12, %14 : vector<16x32xf32>
    %c0_17 = arith.constant 0 : index
    %c0_18 = arith.constant 0 : index
    %16 = vector.load %arg6[%c0_17, %c0_18] : memref<32x32xf32, #tpu.memory_space<vmem>>, vector<32x32xf32>
    %cst_19 = arith.constant dense<0.000000e+00> : vector<16x32xf32>
    %17 = tpu.matmul %5, %16, %cst_19 {dimension_numbers = #tpu.dot_dimension_numbers<[1], [0], [0], [1], [0, 0, 1, 1], [], []>} : vector<16x32xf32>, vector<32x32xf32>, vector<16x32xf32> -> vector<16x32xf32>
    %c0_20 = arith.constant 0 : index
    %c0_21 = arith.constant 0 : index
    %18 = vector.load %arg10[%c0_20, %c0_21] : memref<1x32xf32, #tpu.memory_space<vmem>>, vector<1x32xf32>
    %19 = vector.broadcast %18 : vector<1x32xf32> to vector<16x32xf32>
    %20 = arith.addf %17, %19 : vector<16x32xf32>
    %cst_22 = arith.constant 0.000000e+00 : f32
    %21 = vector.broadcast %cst_22 : f32 to vector<2x8x8xf32>
    %22 = vector.extract_strided_slice %10 {offsets = [0, 0], sizes = [16, 8], strides = [1, 1]} : vector<16x32xf32> to vector<16x8xf32>
    %23 = vector.shape_cast %22 : vector<16x8xf32> to vector<2x8x8xf32>
    %24 = vector.extract_strided_slice %15 {offsets = [0, 0], sizes = [16, 8], strides = [1, 1]} : vector<16x32xf32> to vector<16x8xf32>
    %25 = vector.shape_cast %24 : vector<16x8xf32> to vector<2x8x8xf32>
    %26 = vector.extract_strided_slice %20 {offsets = [0, 0], sizes = [16, 8], strides = [1, 1]} : vector<16x32xf32> to vector<16x8xf32>
    %27 = vector.shape_cast %26 : vector<16x8xf32> to vector<2x8x8xf32>
    "tpu.trace_start"() <{level = 10 : i32, message = "bld,bsd->bls"}> : () -> ()
    %cst_23 = arith.constant dense<0.000000e+00> : vector<2x8x8xf32>
    %28 = tpu.matmul %23, %25, %cst_23 {dimension_numbers = #tpu.dot_dimension_numbers<[2], [2], [1], [1], [0, 0, 0, 1, 1, 1], [0], [0]>} : vector<2x8x8xf32>, vector<2x8x8xf32>, vector<2x8x8xf32> -> vector<2x8x8xf32>
    "tpu.trace_stop"() : () -> ()
    %cst_24 = arith.constant dense<0xFF800000> : vector<2x8xf32>
    %29 = vector.multi_reduction <maximumf>, %28, %cst_24 [2] : vector<2x8x8xf32> to vector<2x8xf32>
    %30 = vector.shape_cast %29 : vector<2x8xf32> to vector<2x8x1xf32>
    %31 = vector.broadcast %30 : vector<2x8x1xf32> to vector<2x8x8xf32>
    %32 = arith.subf %28, %31 : vector<2x8x8xf32>
    %33 = math.exp %32 : vector<2x8x8xf32>
    %cst_25 = arith.constant dense<0.000000e+00> : vector<2x8xf32>
    %34 = vector.multi_reduction <add>, %33, %cst_25 [2] : vector<2x8x8xf32> to vector<2x8xf32>
    %35 = vector.shape_cast %34 : vector<2x8xf32> to vector<2x8x1xf32>
    %36 = tpu.reciprocal %35 : vector<2x8x1xf32> -> vector<2x8x1xf32>
    %37 = vector.broadcast %36 : vector<2x8x1xf32> to vector<2x8x8xf32>
    %38 = arith.mulf %33, %37 : vector<2x8x8xf32>
    %39 = arith.addf %21, %38 : vector<2x8x8xf32>
    "tpu.trace_start"() <{level = 10 : i32, message = "bls,bsd->bld"}> : () -> ()
    %cst_26 = arith.constant dense<0.000000e+00> : vector<2x8x8xf32>
    %40 = tpu.matmul %38, %27, %cst_26 {dimension_numbers = #tpu.dot_dimension_numbers<[2], [1], [1], [2], [0, 0, 0, 1, 1, 2], [0], [0]>} : vector<2x8x8xf32>, vector<2x8x8xf32>, vector<2x8x8xf32> -> vector<2x8x8xf32>
    "tpu.trace_stop"() : () -> ()
    %41 = vector.shape_cast %40 : vector<2x8x8xf32> to vector<16x8xf32>
    %c0_27 = arith.constant 0 : index
    %c0_28 = arith.constant 0 : index
    %42 = vector.load %arg14[%c0_27, %c0_28] : memref<16x32xf32, #tpu.memory_space<vmem>>, vector<16x8xf32>
    tpu.vector_store %arg14[%c0_27, %c0_28], %41 {strides = array<i32>} : memref<16x32xf32, #tpu.memory_space<vmem>>, vector<16x8xf32>,
    %43 = vector.extract_strided_slice %10 {offsets = [0, 8], sizes = [16, 8], strides = [1, 1]} : vector<16x32xf32> to vector<16x8xf32>
    %44 = vector.shape_cast %43 : vector<16x8xf32> to vector<2x8x8xf32>
    %45 = vector.extract_strided_slice %15 {offsets = [0, 8], sizes = [16, 8], strides = [1, 1]} : vector<16x32xf32> to vector<16x8xf32>
    %46 = vector.shape_cast %45 : vector<16x8xf32> to vector<2x8x8xf32>
    %47 = vector.extract_strided_slice %20 {offsets = [0, 8], sizes = [16, 8], strides = [1, 1]} : vector<16x32xf32> to vector<16x8xf32>
    %48 = vector.shape_cast %47 : vector<16x8xf32> to vector<2x8x8xf32>
    "tpu.trace_start"() <{level = 10 : i32, message = "bld,bsd->bls"}> : () -> ()
    %cst_29 = arith.constant dense<0.000000e+00> : vector<2x8x8xf32>
    %49 = tpu.matmul %44, %46, %cst_29 {dimension_numbers = #tpu.dot_dimension_numbers<[2], [2], [1], [1], [0, 0, 0, 1, 1, 1], [0], [0]>} : vector<2x8x8xf32>, vector<2x8x8xf32>, vector<2x8x8xf32> -> vector<2x8x8xf32>
    "tpu.trace_stop"() : () -> ()
    %cst_30 = arith.constant dense<0xFF800000> : vector<2x8xf32>
    %50 = vector.multi_reduction <maximumf>, %49, %cst_30 [2] : vector<2x8x8xf32> to vector<2x8xf32>
    %51 = vector.shape_cast %50 : vector<2x8xf32> to vector<2x8x1xf32>
    %52 = vector.broadcast %51 : vector<2x8x1xf32> to vector<2x8x8xf32>
    %53 = arith.subf %49, %52 : vector<2x8x8xf32>
    %54 = math.exp %53 : vector<2x8x8xf32>
    %cst_31 = arith.constant dense<0.000000e+00> : vector<2x8xf32>
    %55 = vector.multi_reduction <add>, %54, %cst_31 [2] : vector<2x8x8xf32> to vector<2x8xf32>
    %56 = vector.shape_cast %55 : vector<2x8xf32> to vector<2x8x1xf32>
    %57 = tpu.reciprocal %56 : vector<2x8x1xf32> -> vector<2x8x1xf32>
    %58 = vector.broadcast %57 : vector<2x8x1xf32> to vector<2x8x8xf32>
    %59 = arith.mulf %54, %58 : vector<2x8x8xf32>
    %60 = arith.addf %39, %59 : vector<2x8x8xf32>
    "tpu.trace_start"() <{level = 10 : i32, message = "bls,bsd->bld"}> : () -> ()
    %cst_32 = arith.constant dense<0.000000e+00> : vector<2x8x8xf32>
    %61 = tpu.matmul %59, %48, %cst_32 {dimension_numbers = #tpu.dot_dimension_numbers<[2], [1], [1], [2], [0, 0, 0, 1, 1, 2], [0], [0]>} : vector<2x8x8xf32>, vector<2x8x8xf32>, vector<2x8x8xf32> -> vector<2x8x8xf32>
    "tpu.trace_stop"() : () -> ()
    %62 = vector.shape_cast %61 : vector<2x8x8xf32> to vector<16x8xf32>
    %c0_33 = arith.constant 0 : index
    %c8 = arith.constant 8 : index
    %63 = vector.load %arg14[%c0_33, %c8] : memref<16x32xf32, #tpu.memory_space<vmem>>, vector<16x8xf32>
    tpu.vector_store %arg14[%c0_33, %c8], %62 {strides = array<i32>} : memref<16x32xf32, #tpu.memory_space<vmem>>, vector<16x8xf32>,
    %64 = vector.extract_strided_slice %10 {offsets = [0, 16], sizes = [16, 8], strides = [1, 1]} : vector<16x32xf32> to vector<16x8xf32>
    %65 = vector.shape_cast %64 : vector<16x8xf32> to vector<2x8x8xf32>
    %66 = vector.extract_strided_slice %15 {offsets = [0, 16], sizes = [16, 8], strides = [1, 1]} : vector<16x32xf32> to vector<16x8xf32>
    %67 = vector.shape_cast %66 : vector<16x8xf32> to vector<2x8x8xf32>
    %68 = vector.extract_strided_slice %20 {offsets = [0, 16], sizes = [16, 8], strides = [1, 1]} : vector<16x32xf32> to vector<16x8xf32>
    %69 = vector.shape_cast %68 : vector<16x8xf32> to vector<2x8x8xf32>
    "tpu.trace_start"() <{level = 10 : i32, message = "bld,bsd->bls"}> : () -> ()
    %cst_34 = arith.constant dense<0.000000e+00> : vector<2x8x8xf32>
    %70 = tpu.matmul %65, %67, %cst_34 {dimension_numbers = #tpu.dot_dimension_numbers<[2], [2], [1], [1], [0, 0, 0, 1, 1, 1], [0], [0]>} : vector<2x8x8xf32>, vector<2x8x8xf32>, vector<2x8x8xf32> -> vector<2x8x8xf32>
    "tpu.trace_stop"() : () -> ()
    %cst_35 = arith.constant dense<0xFF800000> : vector<2x8xf32>
    %71 = vector.multi_reduction <maximumf>, %70, %cst_35 [2] : vector<2x8x8xf32> to vector<2x8xf32>
    %72 = vector.shape_cast %71 : vector<2x8xf32> to vector<2x8x1xf32>
    %73 = vector.broadcast %72 : vector<2x8x1xf32> to vector<2x8x8xf32>
    %74 = arith.subf %70, %73 : vector<2x8x8xf32>
    %75 = math.exp %74 : vector<2x8x8xf32>
    %cst_36 = arith.constant dense<0.000000e+00> : vector<2x8xf32>
    %76 = vector.multi_reduction <add>, %75, %cst_36 [2] : vector<2x8x8xf32> to vector<2x8xf32>
    %77 = vector.shape_cast %76 : vector<2x8xf32> to vector<2x8x1xf32>
    %78 = tpu.reciprocal %77 : vector<2x8x1xf32> -> vector<2x8x1xf32>
    %79 = vector.broadcast %78 : vector<2x8x1xf32> to vector<2x8x8xf32>
    %80 = arith.mulf %75, %79 : vector<2x8x8xf32>
    %81 = arith.addf %60, %80 : vector<2x8x8xf32>
    "tpu.trace_start"() <{level = 10 : i32, message = "bls,bsd->bld"}> : () -> ()
    %cst_37 = arith.constant dense<0.000000e+00> : vector<2x8x8xf32>
    %82 = tpu.matmul %80, %69, %cst_37 {dimension_numbers = #tpu.dot_dimension_numbers<[2], [1], [1], [2], [0, 0, 0, 1, 1, 2], [0], [0]>} : vector<2x8x8xf32>, vector<2x8x8xf32>, vector<2x8x8xf32> -> vector<2x8x8xf32>
    "tpu.trace_stop"() : () -> ()
    %83 = vector.shape_cast %82 : vector<2x8x8xf32> to vector<16x8xf32>
    %c0_38 = arith.constant 0 : index
    %c16 = arith.constant 16 : index
    %84 = vector.load %arg14[%c0_38, %c16] : memref<16x32xf32, #tpu.memory_space<vmem>>, vector<16x8xf32>
    tpu.vector_store %arg14[%c0_38, %c16], %83 {strides = array<i32>} : memref<16x32xf32, #tpu.memory_space<vmem>>, vector<16x8xf32>,
    %85 = vector.extract_strided_slice %10 {offsets = [0, 24], sizes = [16, 8], strides = [1, 1]} : vector<16x32xf32> to vector<16x8xf32>
    %86 = vector.shape_cast %85 : vector<16x8xf32> to vector<2x8x8xf32>
    %87 = vector.extract_strided_slice %15 {offsets = [0, 24], sizes = [16, 8], strides = [1, 1]} : vector<16x32xf32> to vector<16x8xf32>
    %88 = vector.shape_cast %87 : vector<16x8xf32> to vector<2x8x8xf32>
    %89 = vector.extract_strided_slice %20 {offsets = [0, 24], sizes = [16, 8], strides = [1, 1]} : vector<16x32xf32> to vector<16x8xf32>
    %90 = vector.shape_cast %89 : vector<16x8xf32> to vector<2x8x8xf32>
    "tpu.trace_start"() <{level = 10 : i32, message = "bld,bsd->bls"}> : () -> ()
    %cst_39 = arith.constant dense<0.000000e+00> : vector<2x8x8xf32>
    %91 = tpu.matmul %86, %88, %cst_39 {dimension_numbers = #tpu.dot_dimension_numbers<[2], [2], [1], [1], [0, 0, 0, 1, 1, 1], [0], [0]>} : vector<2x8x8xf32>, vector<2x8x8xf32>, vector<2x8x8xf32> -> vector<2x8x8xf32>
    "tpu.trace_stop"() : () -> ()
    %cst_40 = arith.constant dense<0xFF800000> : vector<2x8xf32>
    %92 = vector.multi_reduction <maximumf>, %91, %cst_40 [2] : vector<2x8x8xf32> to vector<2x8xf32>
    %93 = vector.shape_cast %92 : vector<2x8xf32> to vector<2x8x1xf32>
    %94 = vector.broadcast %93 : vector<2x8x1xf32> to vector<2x8x8xf32>
    %95 = arith.subf %91, %94 : vector<2x8x8xf32>
    %96 = math.exp %95 : vector<2x8x8xf32>
    %cst_41 = arith.constant dense<0.000000e+00> : vector<2x8xf32>
    %97 = vector.multi_reduction <add>, %96, %cst_41 [2] : vector<2x8x8xf32> to vector<2x8xf32>
    %98 = vector.shape_cast %97 : vector<2x8xf32> to vector<2x8x1xf32>
    %99 = tpu.reciprocal %98 : vector<2x8x1xf32> -> vector<2x8x1xf32>
    %100 = vector.broadcast %99 : vector<2x8x1xf32> to vector<2x8x8xf32>
    %101 = arith.mulf %96, %100 : vector<2x8x8xf32>
    %102 = arith.addf %81, %101 : vector<2x8x8xf32>
    "tpu.trace_start"() <{level = 10 : i32, message = "bls,bsd->bld"}> : () -> ()
    %cst_42 = arith.constant dense<0.000000e+00> : vector<2x8x8xf32>
    %103 = tpu.matmul %101, %90, %cst_42 {dimension_numbers = #tpu.dot_dimension_numbers<[2], [1], [1], [2], [0, 0, 0, 1, 1, 2], [0], [0]>} : vector<2x8x8xf32>, vector<2x8x8xf32>, vector<2x8x8xf32> -> vector<2x8x8xf32>
    "tpu.trace_stop"() : () -> ()
    %104 = vector.shape_cast %103 : vector<2x8x8xf32> to vector<16x8xf32>
    %c0_43 = arith.constant 0 : index
    %c24 = arith.constant 24 : index
    %105 = vector.load %arg14[%c0_43, %c24] : memref<16x32xf32, #tpu.memory_space<vmem>>, vector<16x8xf32>
    tpu.vector_store %arg14[%c0_43, %c24], %104 {strides = array<i32>} : memref<16x32xf32, #tpu.memory_space<vmem>>, vector<16x8xf32>,
    %c0_44 = arith.constant 0 : index
    %c0_45 = arith.constant 0 : index
    %106 = vector.load %arg14[%c0_44, %c0_45] : memref<16x32xf32, #tpu.memory_space<vmem>>, vector<16x32xf32>
    %c0_46 = arith.constant 0 : index
    %c0_47 = arith.constant 0 : index
    %107 = vector.load %arg7[%c0_46, %c0_47] : memref<32x32xf32, #tpu.memory_space<vmem>>, vector<32x32xf32>
    %cst_48 = arith.constant dense<0.000000e+00> : vector<16x32xf32>
    %108 = tpu.matmul %106, %107, %cst_48 {dimension_numbers = #tpu.dot_dimension_numbers<[1], [0], [0], [1], [0, 0, 1, 1], [], []>} : vector<16x32xf32>, vector<32x32xf32>, vector<16x32xf32> -> vector<16x32xf32>
    %c0_49 = arith.constant 0 : index
    %c0_50 = arith.constant 0 : index
    %109 = vector.load %arg11[%c0_49, %c0_50] : memref<1x32xf32, #tpu.memory_space<vmem>>, vector<1x32xf32>
    %110 = vector.broadcast %109 : vector<1x32xf32> to vector<16x32xf32>
    %111 = arith.addf %108, %110 : vector<16x32xf32>
    %112 = vector.shape_cast %111 : vector<16x32xf32> to vector<2x8x32xf32>
    %c0_51 = arith.constant 0 : index
    %c0_52 = arith.constant 0 : index
    %c0_53 = arith.constant 0 : index
    %113 = vector.load %arg12[%c0_51, %c0_52, %c0_53] : memref<2x8x32xf32, #tpu.memory_space<vmem>>, vector<2x8x32xf32>
    tpu.vector_store %arg12[%c0_51, %c0_52, %c0_53], %112 {strides = array<i32>} : memref<2x8x32xf32, #tpu.memory_space<vmem>>, vector<2x8x32xf32>,
    %cst_54 = arith.constant 2.500000e-01 : f32
    %114 = vector.broadcast %cst_54 : f32 to vector<2x8x8xf32>
    %115 = arith.mulf %102, %114 : vector<2x8x8xf32>
    %c0_55 = arith.constant 0 : index
    %c0_56 = arith.constant 0 : index
    %c0_57 = arith.constant 0 : index
    %116 = vector.load %arg13[%c0_55, %c0_56, %c0_57] : memref<2x8x8xf32, #tpu.memory_space<vmem>>, vector<2x8x8xf32>
    tpu.vector_store %arg13[%c0_55, %c0_56, %c0_57], %115 {strides = array<i32>} : memref<2x8x8xf32, #tpu.memory_space<vmem>>, vector<2x8x8xf32>,
    return
  }
  func.func @transform_0(%arg0: i32) -> (i32, i32, i32) {
    %c0_i32 = arith.constant 0 : i32
    %c0_i32_0 = arith.constant 0 : i32
    %c0_i32_1 = arith.constant 0 : i32
    return %arg0, %c0_i32, %c0_i32_0 : i32, i32, i32
  }
  func.func @transform_1(%arg0: i32) -> (i32, i32, i32) {
    %c0_i32 = arith.constant 0 : i32
    %c0_i32_0 = arith.constant 0 : i32
    %c0_i32_1 = arith.constant 0 : i32
    return %arg0, %c0_i32, %c0_i32_0 : i32, i32, i32
  }
  func.func @transform_2(%arg0: i32) -> (i32, i32, i32) {
    %c0_i32 = arith.constant 0 : i32
    %c0_i32_0 = arith.constant 0 : i32
    %c0_i32_1 = arith.constant 0 : i32
    return %arg0, %c0_i32, %c0_i32_0 : i32, i32, i32
  }
  func.func @transform_3(%arg0: i32) -> (i32, i32) {
    %c0_i32 = arith.constant 0 : i32
    %c0_i32_0 = arith.constant 0 : i32
    %c0_i32_1 = arith.constant 0 : i32
    return %c0_i32, %c0_i32_0 : i32, i32
  }
  func.func @transform_4(%arg0: i32) -> (i32, i32) {
    %c0_i32 = arith.constant 0 : i32
    %c0_i32_0 = arith.constant 0 : i32
    %c0_i32_1 = arith.constant 0 : i32
    return %c0_i32, %c0_i32_0 : i32, i32
  }
  func.func @transform_5(%arg0: i32) -> (i32, i32) {
    %c0_i32 = arith.constant 0 : i32
    %c0_i32_0 = arith.constant 0 : i32
    %c0_i32_1 = arith.constant 0 : i32
    return %c0_i32, %c0_i32_0 : i32, i32
  }
  func.func @transform_6(%arg0: i32) -> (i32, i32) {
    %c0_i32 = arith.constant 0 : i32
    %c0_i32_0 = arith.constant 0 : i32
    %c0_i32_1 = arith.constant 0 : i32
    return %c0_i32, %c0_i32_0 : i32, i32
  }
  func.func @transform_7(%arg0: i32) -> (i32, i32) {
    %c0_i32 = arith.constant 0 : i32
    %c0_i32_0 = arith.constant 0 : i32
    %c0_i32_1 = arith.constant 0 : i32
    return %c0_i32, %c0_i32_0 : i32, i32
  }
  func.func @transform_8(%arg0: i32) -> (i32, i32) {
    %c0_i32 = arith.constant 0 : i32
    %c0_i32_0 = arith.constant 0 : i32
    %c0_i32_1 = arith.constant 0 : i32
    return %c0_i32, %c0_i32_0 : i32, i32
  }
  func.func @transform_9(%arg0: i32) -> (i32, i32) {
    %c0_i32 = arith.constant 0 : i32
    %c0_i32_0 = arith.constant 0 : i32
    %c0_i32_1 = arith.constant 0 : i32
    return %c0_i32, %c0_i32_0 : i32, i32
  }
  func.func @transform_10(%arg0: i32) -> (i32, i32) {
    %c0_i32 = arith.constant 0 : i32
    %c0_i32_0 = arith.constant 0 : i32
    %c0_i32_1 = arith.constant 0 : i32
    return %c0_i32, %c0_i32_0 : i32, i32
  }
  func.func @transform_11(%arg0: i32) -> (i32, i32, i32) {
    %c0_i32 = arith.constant 0 : i32
    %c0_i32_0 = arith.constant 0 : i32
    %c0_i32_1 = arith.constant 0 : i32
    return %arg0, %c0_i32, %c0_i32_0 : i32, i32, i32
  }
  func.func @transform_12(%arg0: i32) -> (i32, i32, i32) {
    %c0_i32 = arith.constant 0 : i32
    %c0_i32_0 = arith.constant 0 : i32
    %c0_i32_1 = arith.constant 0 : i32
    return %arg0, %c0_i32, %c0_i32_0 : i32, i32, i32
  }
}

</mosaic_0001>

<bundles_post_ra>
// kernel: tpu_custom_call.1
= control target key start
LH: loop header
LB: loop body
LE: loop exit
PB: predicated region body
PF: predicated region fallthrough
CT: control target
= control target key end

     0   :  { %s4019_s0 = inlined_call_operand.hbm [shape: f32[4,8,32], index: 0, kind: input, shape index: {}]   ;;  %s4020_s1 = inlined_call_operand.hbm [shape: f32[4,8,32], index: 1, kind: input, shape index: {}]   ;;  %s4021_s2 = inlined_call_operand.hbm [shape: f32[4,8,32], index: 2, kind: input, shape index: {}]   ;;  %s4022_s3 = inlined_call_operand.hbm [shape: f32[32,32], index: 3, kind: input, shape index: {}]   ;;  %s4023_s4 = inlined_call_operand.hbm [shape: f32[32,32], index: 4, kind: input, shape index: {}]   ;;  %s4024_s5 = inlined_call_operand.hbm [shape: f32[32,32], index: 5, kind: input, shape index: {}]   ;;  %s4025_s6 = inlined_call_operand.hbm [shape: f32[32,32], index: 6, kind: input, shape index: {}]   ;;  %s4026_s7 = inlined_call_operand.vmem [shape: f32[1,32], index: 7, kind: input, shape index: {}]   ;;  %s4027_s8 = inlined_call_operand.vmem [shape: f32[1,32], index: 8, kind: input, shape index: {}]   ;;  %s4028_s9 = inlined_call_operand.vmem [shape: f32[1,32], index: 9, kind: input, shape index: {}]   ;;  %s4029_s10 = inlined_call_operand.vmem [shape: f32[1,32], index: 10, kind: input, shape index: {}]   ;;  %s4030_s11 = inlined_call_operand.hbm [shape: f32[4,8,32], index: 11, kind: output, shape index: {0}]   ;;  %s4031_s12 = inlined_call_operand.hbm [shape: f32[4,8,8], index: 12, kind: output, shape index: {1}]  }
   0x1   :  { %4058 = sst [smem:[#allocation30_spill]] %s4020_s1 }
   0x2   :  { %4059 = sst [smem:[#allocation31_spill]] %s4022_s3 }
   0x3   :  { %4060 = sst [smem:[#allocation32_spill]] %s4024_s5 }
   0x4   :  { %4061 = sst [smem:[#allocation33_spill]] %s4026_s7 }
   0x5   :  { %4062 = sst [smem:[#allocation34_spill]] %s4028_s9 }
   0x6   :  { %4063 = sst [smem:[#allocation35_spill]] %s4029_s10 }
   0x7   :  { %4064 = sst [smem:[#allocation36_spill]] %s4030_s11 }
   0x8   :  { %4065 = sst [smem:[#allocation37_spill]] %s4031_s12 }
   0x9   :  { %18 = vsyncpa [#allocation4], 0 }
   0xa   :  { %20 = vsyncpa [#allocation4 + $0x1], 0 }
   0xb   :  { %21 = vsyncpa [#allocation7], 0 }
   0xc   :  { %23 = vsyncpa [#allocation7 + $0x1], 0 }
   0xd   :  { %24 = vsyncpa [#allocation10], 0 }
   0xe   :  { %25 = vsyncpa [#allocation13], 0 }
   0xf   :  { %26 = vsyncpa [#allocation5], 0 }
  0x10   :  { %28 = vsyncpa [#allocation5 + $0x1], 0 }
  0x11   :  { %29 = vsyncpa [#allocation17], 0 }
  0x12   :  { %31 = vsyncpa [#allocation17 + $0x1], 0  ;;  %s3374_s21 = smov 0   ;;  %s3376_s22 = smov 0  }
  0x13   :  { %s3378_s23 = smov 0   ;;  %s3380_s24 = smov 0  }
  0x14 LB: > { %4066 = sst [smem:[#allocation24_spill]] %s3275_s21  ;;  %s3395_s25 = sadd.s32 4294967295, %s3287_s24   ;;  %s3287_s24 = sphi %s3380_s24, %s4109_s24   ;;  %s3283_s23 = sphi %s3378_s23, %s4113_s23   ;;  %s3279_s22 = sphi %s3376_s22, %s4112_s22   ;;  %s3275_s21 = sphi %s3374_s21, %s4111_s21  }
  0x15   : > { %4067 = sst [smem:[#allocation25_spill]] %s3287_s24  ;;  %s2543_s26 = sadd.s32 4294967294, %s3287_s24  }
  0x16   : > { %p57_p0 = scmp.ne.s32.totalorder %s3279_s22, %s3275_s21  ;;  %p4033_p1 = scmp.eq.s32.totalorder %s3395_s25, 0 }
  0x17   : > { %p307_p3 = scmp.eq.s32.totalorder %s2543_s26, 1  ;;  %p2544_p5 = scmp.ge.s32.totalorder %s3287_s24, 1 }
  0x18   : > { %p3404_p4 = por %p4033_p1, %p57_p0  ;;  %p340_p7 = scmp.lt.s32.totalorder %s3287_s24, 3 }
  0x19   : > { %p3409_p6 = por %p307_p3, %p57_p0  ;;  %s3289_s30 = smov [#allocation9]  }
  0x1a   : > { %s4068_s27 = scalar_select %p3404_p4, 1, 0 }
  0x1b   : > { %s4069_s28 = scalar_select %p3409_p6, 1, 0 }
  0x1c   : > { %p3414_p8 = pnand %p2544_p5, %p340_p7  ;;  %s352_s13 = sshll.u32 %s3289_s30, 4  ;;  %s3418_s13 = int_to_ptr.vmem [resolvable:$true] %s352_s13 }
  0x1d   : > { %4070 = sst [smem:[#allocation26_spill]] %s4069_s28  ;;  %s3290_s15 = smov [#allocation12]  }
  0x1e   : > { %s4071_s29 = scalar_select %p3414_p8, 1, 0 }
  0x1f   : > { %p2856_p9 = pneg %p3414_p8  ;;  %s378_s16 = sshll.u32 %s3290_s15, 4  ;;  %s3429_s16 = int_to_ptr.vmem [resolvable:$true] %s378_s16 }
  0x20   : > { %s4073_s3 = sld [smem:[#allocation31_spill]] }
  0x21   : > { %p3425_p11 = pnand %p2856_p9, %p4033_p1 }
  0x23   : > { %s4072_s14 = scalar_select %p3425_p11, 1, 0 }
  0x24   : > { %p3439_p13 = pneg %p3425_p11 }
  0x26   : > { %s2975_s19 = scalar_lea.hbm %s4073_s3, 512 }
  0x27   : > { %p2976_p12 = scmp.ne.s32.totalorder %s4073_s3, %s2975_s19  ;;  %p2982_p5 = scmp.lt.u32.totalorder %s2975_s19, %s4073_s3 }
  0x28   : > { %s4074_s30 = scalar_select %p3439_p13, 1, 0 }
  0x29   : > { %p2978_p0 = pnand %p3439_p13, %p2976_p12 }
  0x2b   : > { %p2979_p3 = pneg %p2978_p0 }
  0x2d   : > { %p2984_p7 = pnand %p2982_p5, %p2979_p3 }
  0x2f   : > { %2987 = shalt.err (!%p2984_p7)
}
  0x30   : > { %s2988_s17 = scalar_lea.vmem %s3418_s13, 512  ;;  %p2996_p2 = scmp.lt.s32.totalorder %s3418_s13, %s3418_s13 }
  0x31   : > { %p2989_p9 = scmp.ne.s32.totalorder %s3418_s13, %s2988_s17  ;;  %p2997_p6 = scmp.lt.s32.totalorder %s2988_s17, %s2988_s17 }
  0x33   : > { %p2991_p10 = pnand %p2989_p9, %p3439_p13  ;;  %p2998_p12 = por %p2997_p6, %p2996_p2 }
  0x35   : > { %p2992_p1 = pneg %p2991_p10 }
  0x37   : > { %p2999_p0 = pnand %p2998_p12, %p2992_p1 }
  0x39   : > { %3002 = shalt.err (!%p2999_p0)
}
  0x3a   : > { %s4038_s18 = smov 128   ;;  %s4040_s28 = smov 8  }
  0x3b   : > { %2859 = dma.hbm_to_vmem [thread:$0]  (!%p3425_p11), %s4073_s3, 512, %s3418_s13, [#allocation10], %s4038_s18, %s4038_s18, %s4040_s28  }
  0x3c   : > { %s4075_s5 = sld [smem:[#allocation32_spill]] }
  0x42   : > { %s3003_s17 = scalar_lea.hbm %s4075_s5, 512 }
  0x43   : > { %p3004_p1 = scmp.ne.s32.totalorder %s4075_s5, %s3003_s17  ;;  %p3010_p10 = scmp.lt.u32.totalorder %s3003_s17, %s4075_s5 }
  0x45   : > { %p3006_p2 = pnand %p3004_p1, %p3439_p13 }
  0x47   : > { %p3007_p6 = pneg %p3006_p2 }
  0x49   : > { %p3012_p3 = pnand %p3010_p10, %p3007_p6 }
  0x4b   : > { %3015 = shalt.err (!%p3012_p3)
}
  0x4c   : > { %s3016_s13 = scalar_lea.vmem %s3429_s16, 512  ;;  %p3024_p12 = scmp.lt.s32.totalorder %s3429_s16, %s3429_s16 }
  0x4d   : > { %p3017_p5 = scmp.ne.s32.totalorder %s3429_s16, %s3016_s13  ;;  %p3025_p0 = scmp.lt.s32.totalorder %s3016_s13, %s3016_s13 }
  0x4f   : > { %p3019_p7 = pnand %p3017_p5, %p3439_p13  ;;  %p3026_p1 = por %p3025_p0, %p3024_p12 }
  0x51   : > { %p3020_p9 = pneg %p3019_p7 }
  0x53   : > { %p3027_p2 = pnand %p3026_p1, %p3020_p9 }
  0x55   : > { %3030 = shalt.err (!%p3027_p2)
}
  0x56   : > { %2865 = dma.hbm_to_vmem [thread:$0]  (!%p3425_p11), %s4075_s5, 512, %s3429_s16, [#allocation13], %s4038_s18, %s4038_s18, %s4040_s28  }
  0x57   : > { %s3490_s12 = sadd.s32 1, %s3287_s24   ;;  %s44_s21 = sadd.s32 1, %s3283_s23 }
  0x58   : > { %4076 = sst [smem:[#allocation27_spill]] %s3490_s12  ;;  %s41_s19 = ssub.s32 %s3287_s24, %s3490_s12 }
  0x59   : > { %p51_p6 = scmp.ne.s32.totalorder %s3283_s23, %s3279_s22  ;;  %p42_p10 = scmp.eq.s32.totalorder %s41_s19, 0 }
  0x5a   : > { %p52_p3 = scmp.eq.s32.totalorder %s3287_s24, 0  ;;  %p4077_p5 = scmp.eq.s32.totalorder %s3395_s25, 1 }
  0x5b   : > { %p2890_p9 = scmp.lt.s32.totalorder %s3287_s24, 2  ;;  %s4037_s15 = sand.u32 1, %s3283_s23  }
  0x5c   : > { %p3500_p7 = por %p4077_p5, %p51_p6  ;;  %p53_p12 = por %p52_p3, %p51_p6 }
  0x5d   : > { %s3506_s26 = scalar_select %p42_p10, %s3283_s23, %s44_s21  }
  0x5e   : > { %s4078_s20 = scalar_select %p3500_p7, 1, 0 }
  0x5f   : > { %4080 = sst [smem:[#allocation29_spill]] %s3506_s26  ;;  %s3511_s16 = sshll.u32 %s4037_s15, 4 }
  0x60   : > { %4079 = sst [smem:[#allocation28_spill]] %s4078_s20  ;;  %s3514_s17 = sshll.u32 %s3287_s24, 8 }
  0x61   : > { %p3516_p0 = pnand %p2890_p9, %p53_p12  ;;  %s438_s10 = sand.u32 1, %s3287_s24  }
  0x62   : > { %s4082_s1 = sld [smem:[#allocation30_spill]]  ;;  %s442_s15 = scalar_lea.vmem [#allocation6], %s3511_s16 }
  0x63   : > { %s4081_s13 = scalar_select %p3516_p0, 1, 0 }
  0x64   : > { %s449_s18 = sshll.u32 %s442_s15, 4  ;;  %s3293_s28 = smov [#allocation11]   ;;  %s3528_s18 = int_to_ptr.vmem [resolvable:$true] %s449_s18 }
  0x65   : > { %s3530_s3 = sshll.u32 %s3293_s28, 4  ;;  %s3532_s5 = scalar_lea.sflag [#allocation7], %s438_s10  ;;  %s366_s3 = int_to_ptr.vmem [resolvable:$true] %s3530_s3 }
  0x66   : > { %p3538_p2 = pneg %p3516_p0 }
  0x68   : > { %s3525_s21 = scalar_lea.hbm %s4082_s1, %s3514_s17  ;;  %s3036_s12 = scalar_lea.hbm %s4082_s1, 512 }
  0x69   : > { %s3031_s26 = scalar_lea.hbm %s3525_s21, 256  ;;  %p3037_p3 = scmp.lt.u32.totalorder %s3525_s21, %s4082_s1 }
  0x6a   : > { %p3032_p1 = scmp.ne.s32.totalorder %s3525_s21, %s3031_s26  ;;  %p3038_p5 = scmp.lt.u32.totalorder %s3036_s12, %s3031_s26 }
  0x6b   : > { %s4083_s11 = scalar_select %p3538_p2, 1, 0 }
  0x6c   : > { %p3034_p6 = pnand %p3538_p2, %p3032_p1  ;;  %p3039_p9 = por %p3038_p5, %p3037_p3 }
  0x6d   : > { %p3040_p12 = scmp.lt.u32.totalorder %s3031_s26, %s3525_s21 }
  0x6e   : > { %p3035_p10 = pneg %p3034_p6 }
  0x6f   : > { %p3041_p7 = por %p3040_p12, %p3039_p9 }
  0x71   : > { %p3042_p4 = pnand %p3041_p7, %p3035_p10 }
  0x73   : > { %3045 = shalt.err (!%p3042_p4)
}
  0x74   : > { %s3046_s10 = scalar_lea.vmem %s3528_s18, 256  ;;  %s3294_s19 = smov [#allocation6]  }
  0x75   : > { %p3047_p1 = scmp.ne.s32.totalorder %s3528_s18, %s3046_s10  ;;  %s3051_s15 = sshll.u32 %s3294_s19, 4  ;;  %s3052_s15 = int_to_ptr.vmem [resolvable:$false] %s3051_s15 }
  0x76   : > { %s3053_s24 = scalar_lea.vmem %s3052_s15, 512  ;;  %p3054_p11 = scmp.lt.s32.totalorder %s3528_s18, %s3052_s15 }
  0x77   : > { %p3049_p6 = pnand %p3047_p1, %p3538_p2  ;;  %p3055_p13 = scmp.lt.s32.totalorder %s3053_s24, %s3046_s10 }
  0x79   : > { %p3050_p8 = pneg %p3049_p6  ;;  %p3056_p3 = por %p3055_p13, %p3054_p11 }
  0x7b   : > { %p3057_p5 = pnand %p3056_p3, %p3050_p8 }
  0x7d   : > { %3060 = shalt.err (!%p3057_p5)
}
  0x7e   : > { %s4084_s12 = smov 8   ;;  %s4085_s26 = smov 128  }
  0x7f   : > { %2875 = dma.hbm_to_vmem [thread:$0]  (!%p3516_p0), %s3525_s21, 256, %s3528_s18, %s3532_s5, %s4085_s26, %s4085_s26, %s4084_s12  }
  0x80   : > { %s3061_s15 = scalar_lea.hbm %s4023_s4, 512  ;;  %p4086_p8 = scmp.ne.s32.totalorder %s4074_s30, 0 }
  0x81   : > { %p3062_p4 = scmp.ne.s32.totalorder %s4023_s4, %s3061_s15  ;;  %p3068_p7 = scmp.lt.u32.totalorder %s3061_s15, %s4023_s4 }
  0x83   : > { %p3064_p11 = pnand %p3062_p4, %p4086_p8 }
  0x85   : > { %p3065_p13 = pneg %p3064_p11 }
  0x87   : > { %p3070_p10 = pnand %p3068_p7, %p3065_p13 }
  0x89   : > { %3073 = shalt.err (!%p3070_p10)
}
  0x8a   : > { %s3074_s9 = scalar_lea.vmem %s366_s3, 512  ;;  %p3082_p6 = scmp.lt.s32.totalorder %s366_s3, %s366_s3 }
  0x8b   : > { %p3075_p9 = scmp.ne.s32.totalorder %s366_s3, %s3074_s9  ;;  %p3083_p3 = scmp.lt.s32.totalorder %s3074_s9, %s3074_s9 }
  0x8d   : > { %p3077_p12 = pnand %p3075_p9, %p4086_p8  ;;  %p3084_p5 = por %p3083_p3, %p3082_p6 }
  0x8f   : > { %p3078_p1 = pneg %p3077_p12 }
  0x91   : > { %p3085_p0 = pnand %p3084_p5, %p3078_p1 }
  0x93   : > { %3088 = shalt.err (!%p3085_p0)
}
  0x94   : > { %p4087_p4 = scmp.ne.s32.totalorder %s4072_s14, 0  ;;  %s3295_s20 = smov [#allocation14]  }
  0x95   : > { %s391_s21 = sshll.u32 %s3295_s20, 4  ;;  %s3089_s9 = scalar_lea.hbm %s4025_s6, 512  ;;  %s392_s21 = int_to_ptr.vmem [resolvable:$true] %s391_s21 }
  0x96   : > { %2862 = dma.hbm_to_vmem [thread:$0]  (!%p4087_p4), %s4023_s4, 512, %s366_s3, [#allocation10], %s4085_s26, %s4085_s26, %s4084_s12  }
  0x97   : > { %p3090_p0 = scmp.ne.s32.totalorder %s4025_s6, %s3089_s9  ;;  %p3096_p7 = scmp.lt.u32.totalorder %s3089_s9, %s4025_s6 }
  0x99   : > { %p3092_p11 = pnand %p3090_p0, %p4086_p8 }
  0x9b   : > { %p3093_p13 = pneg %p3092_p11 }
  0x9d   : > { %p3098_p10 = pnand %p3096_p7, %p3093_p13 }
  0x9f   : > { %3101 = shalt.err (!%p3098_p10)
}
  0xa0   : > { %s3102_s3 = scalar_lea.vmem %s392_s21, 512  ;;  %p3110_p6 = scmp.lt.s32.totalorder %s392_s21, %s392_s21 }
  0xa1   : > { %p3103_p9 = scmp.ne.s32.totalorder %s392_s21, %s3102_s3  ;;  %p3111_p3 = scmp.lt.s32.totalorder %s3102_s3, %s3102_s3 }
  0xa3   : > { %p3105_p12 = pnand %p3103_p9, %p4086_p8  ;;  %p3112_p5 = por %p3111_p3, %p3110_p6 }
  0xa5   : > { %p3106_p1 = pneg %p3105_p12 }
  0xa7   : > { %p3113_p2 = pnand %p3112_p5, %p3106_p1 }
  0xa9   : > { %3116 = shalt.err (!%p3113_p2)
}
  0xaa   : > { %2868 = dma.hbm_to_vmem [thread:$0]  (!%p4087_p4), %s4025_s6, 512, %s392_s21, [#allocation13], %s4085_s26, %s4085_s26, %s4084_s12  }
  0xab   : > { %s3612_s20 = scalar_lea.hbm %s4019_s0, %s3514_s17  ;;  %s421_s14 = scalar_lea.vmem [#allocation3], %s3511_s16 }
  0xac   : > { %s428_s28 = sshll.u32 %s421_s14, 4  ;;  %s4088_s19 = sand.u32 1, %s3283_s23   ;;  %s3615_s28 = int_to_ptr.vmem [resolvable:$true] %s428_s28 }
  0xad   : > { %s3619_s9 = scalar_lea.sflag [#allocation4], %s4088_s19  ;;  %s3117_s15 = scalar_lea.hbm %s3612_s20, 256 }
  0xae   : > { %p3118_p2 = scmp.ne.s32.totalorder %s3612_s20, %s3117_s15  ;;  %p4089_p8 = scmp.ne.s32.totalorder %s4083_s11, 0 }
  0xaf   : > { %s3122_s24 = scalar_lea.hbm %s4019_s0, 512  ;;  %p3123_p11 = scmp.lt.u32.totalorder %s3612_s20, %s4019_s0 }
  0xb0   : > { %p3120_p4 = pnand %p3118_p2, %p4089_p8  ;;  %p3124_p13 = scmp.lt.u32.totalorder %s3122_s24, %s3117_s15 }
  0xb1   : > { %p3126_p10 = scmp.lt.u32.totalorder %s3117_s15, %s3612_s20 }
  0xb2   : > { %p3121_p0 = pneg %p3120_p4  ;;  %p3125_p7 = por %p3124_p13, %p3123_p11 }
  0xb4   : > { %p3127_p9 = por %p3126_p10, %p3125_p7 }
  0xb6   : > { %p3128_p12 = pnand %p3127_p9, %p3121_p0 }
  0xb8   : > { %3131 = shalt.err (!%p3128_p12)
}
  0xb9   : > { %s3132_s1 = scalar_lea.vmem %s3615_s28, 256  ;;  %s3296_s30 = smov [#allocation3]  }
  0xba   : > { %p3133_p1 = scmp.ne.s32.totalorder %s3615_s28, %s3132_s1  ;;  %s3137_s18 = sshll.u32 %s3296_s30, 4  ;;  %s3138_s18 = int_to_ptr.vmem [resolvable:$false] %s3137_s18 }
  0xbb   : > { %s3139_s14 = scalar_lea.vmem %s3138_s18, 512  ;;  %p3140_p5 = scmp.lt.s32.totalorder %s3615_s28, %s3138_s18 }
  0xbc   : > { %p3135_p6 = pnand %p3133_p1, %p4089_p8  ;;  %p3141_p2 = scmp.lt.s32.totalorder %s3139_s14, %s3132_s1 }
  0xbe   : > { %p3136_p3 = pneg %p3135_p6  ;;  %p3142_p4 = por %p3141_p2, %p3140_p5 }
  0xc0   : > { %p3143_p11 = pnand %p3142_p4, %p3136_p3 }
  0xc2   : > { %3146 = shalt.err (!%p3143_p11)
}
  0xc3   : > { %p4090_p0 = scmp.ne.s32.totalorder %s4081_s13, 0  ;;  %s3650_s21 = scalar_lea.hbm %s4021_s2, %s3514_s17 }
  0xc4   : > { %s463_s10 = scalar_lea.vmem [#allocation8], %s3511_s16  ;;  %s3147_s3 = scalar_lea.hbm %s3650_s21, 256 }
  0xc5   : > { %2872 = dma.hbm_to_vmem [thread:$0]  (!%p4090_p0), %s3612_s20, 256, %s3615_s28, %s3619_s9, %s4085_s26, %s4085_s26, %s4084_s12  }
  0xc6   : > { %s470_s24 = sshll.u32 %s463_s10, 4  ;;  %p3148_p13 = scmp.ne.s32.totalorder %s3650_s21, %s3147_s3  ;;  %s3653_s24 = int_to_ptr.vmem [resolvable:$true] %s470_s24 }
  0xc7   : > { %s3152_s28 = scalar_lea.hbm %s4021_s2, 512  ;;  %p3153_p9 = scmp.lt.u32.totalorder %s3650_s21, %s4021_s2 }
  0xc8   : > { %p3150_p7 = pnand %p3148_p13, %p4089_p8  ;;  %p3154_p12 = scmp.lt.u32.totalorder %s3152_s28, %s3147_s3 }
  0xc9   : > { %p3156_p6 = scmp.lt.u32.totalorder %s3147_s3, %s3650_s21 }
  0xca   : > { %p3151_p10 = pneg %p3150_p7  ;;  %p3155_p1 = por %p3154_p12, %p3153_p9 }
  0xcc   : > { %p3157_p3 = por %p3156_p6, %p3155_p1 }
  0xce   : > { %p3158_p5 = pnand %p3157_p3, %p3151_p10 }
  0xd0   : > { %3161 = shalt.err (!%p3158_p5)
}
  0xd1   : > { %s3162_s16 = scalar_lea.vmem %s3653_s24, 256  ;;  %s3297_s1 = smov [#allocation8]  }
  0xd2   : > { %p3163_p2 = scmp.ne.s32.totalorder %s3653_s24, %s3162_s16  ;;  %s3167_s30 = sshll.u32 %s3297_s1, 4  ;;  %s3168_s30 = int_to_ptr.vmem [resolvable:$false] %s3167_s30 }
  0xd3   : > { %s3169_s18 = scalar_lea.vmem %s3168_s30, 512  ;;  %p3170_p13 = scmp.lt.s32.totalorder %s3653_s24, %s3168_s30 }
  0xd4   : > { %p3165_p4 = pnand %p3163_p2, %p4089_p8  ;;  %p3171_p7 = scmp.lt.s32.totalorder %s3169_s18, %s3162_s16 }
  0xd6   : > { %p3166_p11 = pneg %p3165_p4  ;;  %p3172_p9 = por %p3171_p7, %p3170_p13 }
  0xd8   : > { %p3173_p12 = pnand %p3172_p9, %p3166_p11 }
  0xda   : > { %3176 = shalt.err (!%p3173_p12)
}
  0xdb   : > { %2878 = dma.hbm_to_vmem [thread:$0]  (!%p4090_p0), %s3650_s21, 256, %s3653_s24, %s3532_s5, %s4085_s26, %s4085_s26, %s4084_s12  }
  0xdc   : > { %p4091_p8 = scmp.ne.s32.totalorder %s4071_s29, 0 }
  0xdd   : > { %s3683_s11 = sand.u32 (!%p4091_p8), 1, %s3279_s22   ;;  %p4092_p10 = scmp.ne.s32.totalorder (!%p4091_p8), %s4068_s27, 0 }
  0xde   : > { %482 = sbr.rel (%p4091_p8) target bundleno = 3195 (0xc7b), region = 64  ;;  %s3686_s14 = sshll.u32 (!%p4091_p8), %s3683_s11, 4 }
  0xdf   : > { %s485_s13 = scalar_lea.sflag (!%p4091_p8), [#allocation4], %s3683_s11  ;;  %s488_s19 = scalar_lea.vmem (!%p4091_p8), [#allocation3], %s3686_s14 }
  0xe5   : > { %3250 = dma.done.wait (%p4092_p10), %s485_s13, 256  }
  0xe6   : > { %3252 = vsyncadd (%p4092_p10), %s485_s13, 4294967040  ;;  %s493_s5 = sand.u32 1, %s3395_s25   ;;  %s497_s12 = scalar_lea.vmem [#allocation6], %s3686_s14 }
  0xe7   : > { %s494_s29 = scalar_lea.sflag [#allocation7], %s493_s5 }
  0xe8   : > { %3254 = dma.done.wait (%p4092_p10), %s494_s29, 512  }
  0xe9   : > { %3256 = vsyncadd (%p4092_p10), %s494_s29, 4294966784  ;;  %s506_s26 = scalar_lea.vmem [#allocation8], %s3686_s14  ;;  %p4093_p0 = scmp.eq.s32.totalorder %s3395_s25, 0 }
  0xeb   : > { %3258 = dma.done.wait (%p4093_p0), [#allocation10], 1024   ;;  %p4094_p1 = pmov %p4093_p0 }
  0xec   : > { %p4095_p6 = pmov %p4093_p0 }
  0xed   : > { %3260 = vsyncadd (%p4094_p1), [#allocation10], 4294966272 }
  0xee   : > { %3262 = dma.done.wait (%p4095_p6), [#allocation13], 1024   ;;  %p4096_p3 = pmov %p4093_p0 }
  0xef   : > { %v682_v0 = vld [vmem:[#allocation11] sm:$0xff]  ;;  %v683_v1 = vld [vmem:[#allocation11 + $0x8] sm:$0xff]  ;;  %vm600_vm0 = vcmask 261120   ;;  %v684_v5 = vld [vmem:[#allocation11 + $0x10] sm:$0xff]  ;;  %v3298_v16 = vmov 0.0   ;;  %vm3299_vm1 = vmmov 0  }
  0xf0   : > { %3264 = vsyncadd (%p4096_p3), [#allocation13], 4294966272  ;;  %v589_v2 = vld [vmem:[#allocation9] sm:$0xff]  ;;  %v2806_v3 = vpack.c.bf16 %v683_v1, %v682_v0  ;;  %v590_v4 = vld [vmem:[#allocation9 + $0x8] sm:$0xff]  ;;  %s4097_s24 = sld [smem:[#allocation33_spill]]  ;;  %vm866_vm2 = vcmask 64512  }
  0xf1   : > { %v685_v6 = vld [vmem:[#allocation11 + $0x18] sm:$0xff]  ;;  %v2798_v7 = vpack.c.bf16 %v590_v4, %v589_v2  ;;  %v591_v9 = vld [vmem:[#allocation9 + $0x10] sm:$0xff]  ;;  %s3300_s3 = smov 120   ;;  %v774_v27 = vld [vmem:[#allocation12] sm:$0xff]  ;;  %s4098_s28 = sld [smem:[#allocation34_spill]]  ;;  %vm1533_vm3 = vcmask 130112  }
  0xf2   : > { %v2810_v8 = vpack.c.bf16 %v685_v6, %v684_v5  ;;  %v592_v10 = vld [vmem:[#allocation9 + $0x18] sm:$0xff]  ;;  %v585_v11 = vld [vmem:[%s497_s12] sm:$0xff]  ;;  %2807 = vmatprep.subr.bf16.mxu1 %v2806_v3  ;;  %v775_v28 = vld [vmem:[#allocation12 + $0x8] sm:$0xff]  ;;  %s3301_s9 = smov 112   ;;  %s3302_s17 = smov 104   ;;  %vm1876_vm4 = vcmask 195712  }
  0xf3   : > { %v2802_v12 = vpack.c.bf16 %v592_v10, %v591_v9  ;;  %2693 = vmatprep.mubr.msk.f32.mxu1 %vm600_vm0, %v585_v11  ;;  %v583_v13 = vld [vmem:[%s488_s19] sm:$0xff]  ;;  %2809 = vmatpush3.bf16.msra.mxu1 %v2806_v3  ;;  %v586_v14 = vld [vmem:[%s497_s12 + $0x8] sm:$0xff]  ;;  %v2814_v30 = vpack.c.bf16 %v775_v28, %v774_v27  ;;  %s3303_s16 = smov 8   ;;  %s3304_s1 = smov 16   ;;  %vm2219_vm5 = vcmask 261312  }
  0xf4   : > { %2799 = vmatprep.subr.bf16.mxu0 %v2798_v7  ;;  %2811 = vmatprep.subr.bf16.mxu1 %v2810_v8  ;;  %v584_v15 = vld [vmem:[%s488_s19 + $0x8] sm:$0xff]  ;;  %v2572_v17 = vld [vmem:[%s4027_s8] ss:$0 sm:$0xff]  ;;  %s3909_s30 = scalar_lea.vmem [#allocation16], %s3686_s14  ;;  %s3305_s18 = smov 24  }
  0xf5   : > { %2801 = vmatpush3.bf16.msra.mxu0 %v2798_v7  ;;  %2682 = vmatprep.mubr.msk.f32.mxu0 %vm600_vm0, %v583_v13  ;;  %v776_v29 = vld [vmem:[#allocation12 + $0x10] sm:$0xff]  ;;  %v777_v31 = vld [vmem:[#allocation12 + $0x18] sm:$0xff]  ;;  %s4099_s13 = sld [smem:[#allocation28_spill]]  ;;  %s2616_s19 = sshll.u32 %s3395_s25, 8 }
  0xf6   : > { %2803 = vmatprep.subr.bf16.mxu0 %v2802_v12  ;;  %v2569_v19 = vld [vmem:[%s4097_s24] ss:$0 sm:$0xff]  ;;  %v2818_v33 = vpack.c.bf16 %v777_v31, %v776_v29  ;;  %v588_v34 = vld [vmem:[%s506_s26 + $0x8] sm:$0xff]  ;;  %s4100_s12 = sld [smem:[#allocation37_spill]]  ;;  %s2357_s27 = sshll.u32 %s3909_s30, 4  ;;  %s3930_s27 = int_to_ptr.vmem [resolvable:$true] %s2357_s27 }
  0xf7   : > { %2813 = vmatpush3.bf16.msra.mxu1 %v2810_v8  ;;  %v587_v32 = vld [vmem:[%s506_s26] sm:$0xff]  ;;  %s2328_s15 = scalar_lea.sflag [#allocation17], %s3683_s11  ;;  %s3177_s21 = scalar_lea.vmem %s3930_s27, 256 }
  0xf8   : > { %2707 = vmatprep.subr.mxu1 %v3298_v16  ;;  %v2575_v55 = vld [vmem:[%s4098_s28] ss:$0 sm:$0xff]  ;;  %p3178_p5 = scmp.ne.s32.totalorder %s3930_s27, %s3177_s21  ;;  %s3306_s10 = smov [#allocation16]  }
  0xf9   : > { %2805 = vmatpush3.bf16.msra.mxu0 %v2802_v12  ;;  %s3181_s24 = sshll.u32 %s3306_s10, 4  ;;  %s3182_s24 = int_to_ptr.vmem [resolvable:$false] %s3181_s24 }
  0xfa   : > { %2694 = vmatmul.mubr.msk.f32.vlgmr.msra.gmra.mrb[0].mxu1 %vm600_vm0, %v586_v14  ;;  %2815 = vmatprep.subr.bf16.mxu0 %v2814_v30  ;;  %p3184_p13 = scmp.lt.s32.totalorder %s3930_s27, %s3182_s24 }
  0xfb   : > { %2709 = vmatprep.mubr.msk.f32.mxu1 %vm3299_vm1, %v3298_v16  ;;  %p4101_p2 = scmp.ne.s32.totalorder %s4099_s13, 0 }
  0xfc   : > { %2683 = vmatmul.mubr.msk.f32.vlgmr.msra.gmra.mrb[0].mxu0 %vm600_vm0, %v584_v15  ;;  %s3927_s26 = scalar_lea.hbm %s4100_s12, %s2616_s19 }
  0xfd   : > { %2704 = vmatprep.mubr.msk.f32.mxu0 %vm600_vm0, %v587_v32  ;;  %2817 = vmatpush3.bf16.msra.mxu0 %v2814_v30  ;;  %p3179_p4 = pnand %p3178_p5, %p4101_p2 }
  0xfe   : > { %2819 = vmatprep.subr.bf16.mxu0 %v2818_v33 }
  0xff   : > { %p3180_p11 = pneg %p3179_p4 }
 0x101   : > { %2821 = vmatpush3.bf16.msra.mxu0 %v2818_v33 }
 0x102   : > { %2727 = vmatprep.subr.mxu0 %v3298_v16 }
 0x104   : > { %2705 = vmatmul.mubr.msk.f32.vlgmr.msra.gmra.mrb[2].mxu0 %vm600_vm0, %v588_v34 }
 0x105   : > { %2729 = vmatprep.mubr.msk.f32.mxu0 %vm3299_vm1, %v3298_v16 }
 0x1cd   : > { %v2695_v18 = vpop.f32.mrb[0].mxu1 }
 0x1ce   : > { %v3730_v20 = vadd.f32 %v2695_v18, %v2572_v17  ;;  %v765_v21 = vpop.f32.mrb[1].mxu1 }
 0x1cf   : > { %v2684_v22 = vpop.f32.mrb[0].mxu0  ;;  %v3732_v23 = vadd.f32 %v2572_v17, %v765_v21 }
 0x1d0   : > { %v673_v24 = vpop.f32.mrb[1].mxu0  ;;  %1271 = vrot.lane.b32.xlu1 %v3730_v20, %s3300_s3  ;;  %v3749_v26 = vadd.f32 %v2684_v22, %v2569_v19 }
 0x1d1   : > { %v3736_v25 = vadd.f32 %v2569_v19, %v673_v24  ;;  %2708 = vmatpush3.xpose.msk.msra.mxu1 %vm866_vm2, %v3732_v23 }
 0x1d2   : > { %2712 = vmatprep.subr.mxu1 %v3298_v16 }
 0x1d4   : > { %1191 = vrot.lane.b32.xlu1 %v3736_v25, %s3300_s3  ;;  %2710 = vmatmul.mubr.msk.f32.vlgmr.msra.gmra.mrb[2].mxu1 %vm866_vm2, %v3736_v25 }
 0x1d5   : > { %2713 = vmatpush3.xpose.msk.msra.mxu1 %vm866_vm2, %v3730_v20  ;;  %2714 = vmatprep.mubr.msk.f32.mxu1 %vm3299_vm1, %v3298_v16 }
 0x1d6   : > { %2717 = vmatprep.subr.mxu1 %v3298_v16 }
 0x1d7   : > { %v2706_v54 = vpop.f32.mrb[2].mxu0 }
 0x1d8   : > { %2715 = vmatmul.mubr.msk.f32.vlgmr.msra.gmra.mrb[4].mxu1 %vm866_vm2, %v3749_v26  ;;  %v857_v56 = vpop.f32.mrb[3].mxu0  ;;  %v3781_v57 = vadd.f32 %v2706_v54, %v2575_v55 }
 0x1d9   : > { %2719 = vmatprep.mubr.msk.f32.mxu1 %vm3299_vm1, %v3298_v16  ;;  %v3783_v58 = vadd.f32 %v2575_v55, %v857_v56 }
 0x1db   : > { %2718 = vmatpush3.msra.mxu1 %v3783_v58 }
 0x1dc   : > { %2722 = vmatprep.subr.mxu1 %v3298_v16 }
 0x242   : > { %v1272_v45 = vpop.permute.xlu1 %1271 }
 0x246   : > { %v1192_v49 = vpop.permute.xlu1 %1191 }
 0x2a7   : > { %v939_v35 = vpop.f32.mrb[2].mxu1 }
 0x2a8   : > { %v2711_v36 = vpop.f32.mrb[3].mxu1  ;;  %v1019_v37 = vsel %vm866_vm2, %v939_v35, -inf }
 0x2a9   : > { %1020 = vmax.xlane.f32.xlu0 %v1019_v37 }
 0x2ab   : > { %v1015_v38 = vpop.f32.mrb[4].mxu1 }
 0x2ac   : > { %v2716_v39 = vpop.f32.mrb[5].mxu1  ;;  %v1022_v40 = vsel %vm866_vm2, %v1015_v38, -inf }
 0x2ad   : > { %1023 = vmax.xlane.f32.xlu0 %v1022_v40 }
 0x2c3   : > { %1193 = vrot.lane.b32.xlu0 %v3732_v23, %s3300_s3 }
 0x336   : > { %v1021_v41 = vpop.xlane.xlu0 %1020 }
 0x337   : > { %v1025_v42 = vsub.f32 %v939_v35, %v1021_v41 }
 0x339   : > { %v1027_v43 = vmul.f32 1.442695, %v1025_v42 }
 0x33a   : > { %v1024_v44 = vpop.xlane.xlu0 %1023 }
 0x33b   : > { %2943 = vpow2.f32 %v1027_v43  ;;  %v1026_v46 = vsub.f32 %v1015_v38, %v1024_v44 }
 0x33d   : > { %v1029_v47 = vmul.f32 1.442695, %v1026_v46 }
 0x33e   : > { %v1194_v48 = vpop.permute.xlu0 %1193 }
 0x33f   : > { %2945 = vpow2.f32 %v1029_v47  ;;  %2728 = vmatpush3.xpose.msk.msra.mxu0 %vm866_vm2, %v1194_v48 }
 0x340   : > { %2737 = vmatprep.subr.mxu0 %v3298_v16 }
 0x342   : > { %2730 = vmatmul.mubr.msk.f32.vlgmr.msra.gmra.mrb[4].mxu0 %vm866_vm2, %v1192_v49 }
 0x343   : > { %2739 = vmatprep.mubr.msk.f32.mxu0 %vm3299_vm1, %v3298_v16 }
 0x345   : > { %v2944_v50 = vpop.eup %2943 }
 0x346   : > { %v1031_v51 = vsel %vm866_vm2, %v2944_v50, 0.0 }
 0x347   : > { %1032 = vadd.xlane.f32.xlu1 %v1031_v51 }
 0x349   : > { %v2946_v52 = vpop.eup %2945 }
 0x34a   : > { %v1034_v53 = vsel %vm866_vm2, %v2946_v52, 0.0 }
 0x34b   : > { %1035 = vadd.xlane.f32.xlu1 %v1034_v53 }
 0x35c   : > { %1269 = vrot.lane.b32.xlu1 %v3749_v26, %s3300_s3 }
 0x3d4   : > { %v1033_v59 = vpop.xlane.xlu1 %1032 }
 0x3d5   : > { %2947 = vrcp.f32 %v1033_v59 }
 0x3d8   : > { %v1036_v60 = vpop.xlane.xlu1 %1035 }
 0x3d9   : > { %2949 = vrcp.f32 %v1036_v60 }
 0x3dc   : > { %v1270_v1 = vpop.permute.xlu1 %1269 }
 0x3df   : > { %v2948_v61 = vpop.eup %2947 }
 0x3e0   : > { %v3787_v62 = vmul.f32 %v2948_v61, %v2944_v50 }
 0x3e2   : > { %2720 = vmatmul.mubr.msk.f32.vlgmr.msra.gmra.mrb[6].mxu1 %vm866_vm2, %v3787_v62 }
 0x3e3   : > { %v2950_v63 = vpop.eup %2949  ;;  %2723 = vmatpush3.msra.mxu1 %v3781_v57  ;;  %2724 = vmatprep.mubr.msk.f32.mxu1 %vm3299_vm1, %v3298_v16 }
 0x3e4   : > { %v3794_v0 = vmul.f32 %v2950_v63, %v2946_v52  ;;  %2732 = vmatprep.subr.mxu1 %v3298_v16 }
 0x3e6   : > { %2725 = vmatmul.mubr.msk.f32.vlgmr.msra.gmra.mrb[8].mxu1 %vm866_vm2, %v3794_v0 }
 0x3e7   : > { %2734 = vmatprep.mubr.msk.f32.mxu1 %vm3299_vm1, %v3298_v16 }
 0x3ea   : > { %2733 = vmatpush3.xpose.msk.msra.mxu1 %vm866_vm2, %v1272_v45 }
 0x3eb   : > { %2742 = vmatprep.subr.mxu1 %v3298_v16 }
 0x3ed   : > { %2735 = vmatmul.mubr.msk.f32.vlgmr.msra.gmra.mrb[10].mxu1 %vm866_vm2, %v1270_v1 }
 0x3ee   : > { %2744 = vmatprep.mubr.msk.f32.mxu1 %vm3299_vm1, %v3298_v16 }
 0x415   : > { %v1265_v2 = vpop.f32.mrb[4].mxu0 }
 0x416   : > { %v2731_v3 = vpop.f32.mrb[5].mxu0  ;;  %v1347_v4 = vsel %vm866_vm2, %v1265_v2, -inf }
 0x417   : > { %1348 = vmax.xlane.f32.xlu0 %v1347_v4 }
 0x4a4   : > { %v1349_v5 = vpop.xlane.xlu0 %1348 }
 0x4a5   : > { %v1353_v6 = vsub.f32 %v1265_v2, %v1349_v5 }
 0x4a7   : > { %v1355_v7 = vmul.f32 1.442695, %v1353_v6 }
 0x4a9   : > { %2951 = vpow2.f32 %v1355_v7 }
 0x4b3   : > { %v2952_v8 = vpop.eup %2951 }
 0x4b4   : > { %v1359_v9 = vsel %vm866_vm2, %v2952_v8, 0.0 }
 0x4b5   : > { %1360 = vadd.xlane.f32.xlu0 %v1359_v9  ;;  %v1112_v10 = vpop.f32.mrb[6].mxu1 }
 0x4b6   : > { %1189 = vst.msk [vmem:[#allocation2] sm:$0xff] %vm866_vm2, %v1112_v10  ;;  %v2721_v11 = vpop.f32.mrb[7].mxu1 }
 0x4b9   : > { %v1185_v12 = vpop.f32.mrb[8].mxu1 }
 0x4ba   : > { %1190 = vst.msk [vmem:[#allocation2 + $0x8] sm:$0xff] %vm866_vm2, %v1185_v12  ;;  %v2726_v13 = vpop.f32.mrb[9].mxu1 }
 0x4c0   : > { %v1343_v14 = vpop.f32.mrb[10].mxu1 }
 0x4c1   : > { %v2736_v15 = vpop.f32.mrb[11].mxu1  ;;  %v1350_v17 = vsel %vm866_vm2, %v1343_v14, -inf }
 0x4c2   : > { %1351 = vmax.xlane.f32.xlu1 %v1350_v17 }
 0x4cb   : > { %1372 = vrot.lane.b32.xlu0 %v3783_v58, %s3300_s3 }
 0x4d3   : > { %1449 = vrot.lane.b32.xlu1 %v3781_v57, %s3300_s3  ;;  %s3183_s3 = scalar_lea.vmem %s3182_s24, 512 }
 0x4d4   : > { %p3185_p7 = scmp.lt.s32.totalorder %s3183_s3, %s3177_s21 }
 0x4d6   : > { %p3186_p9 = por %p3185_p7, %p3184_p13 }
 0x4d7   : > { %1538 = vrot.lane.b32.xlu1 %v3732_v23, %s3301_s9 }
 0x4d8   : > { %p3187_p12 = pnand %p3186_p9, %p3180_p11 }
 0x4db   : > { %1616 = vrot.lane.b32.xlu1 %v3730_v20, %s3301_s9 }
 0x4df   : > { %1614 = vrot.lane.b32.xlu1 %v3749_v26, %s3301_s9 }
 0x542   : > { %v1361_v18 = vpop.xlane.xlu0 %1360 }
 0x543   : > { %2953 = vrcp.f32 %v1361_v18 }
 0x546   : > { %v1373_v19 = vpop.permute.xlu0 %1372 }
 0x547   : > { %2738 = vmatpush3.msra.mxu0 %v1373_v19 }
 0x548   : > { %2747 = vmatprep.subr.mxu0 %v3298_v16 }
 0x54d   : > { %v2954_v21 = vpop.eup %2953 }
 0x54e   : > { %v3822_v22 = vmul.f32 %v2954_v21, %v2952_v8 }
 0x54f   : > { %v1352_v24 = vpop.xlane.xlu1 %1351 }
 0x550   : > { %v1354_v27 = vsub.f32 %v1343_v14, %v1352_v24  ;;  %2740 = vmatmul.mubr.msk.f32.vlgmr.msra.gmra.mrb[6].mxu0 %vm866_vm2, %v3822_v22  ;;  %v1369_v63 = vadd.f32 %v3822_v22, %v3787_v62 }
 0x551   : > { %2749 = vmatprep.mubr.msk.f32.mxu0 %vm3299_vm1, %v3298_v16 }
 0x552   : > { %v1357_v28 = vmul.f32 1.442695, %v1354_v27 }
 0x553   : > { %v1450_v29 = vpop.permute.xlu1 %1449 }
 0x554   : > { %2955 = vpow2.f32 %v1357_v28  ;;  %2743 = vmatpush3.msra.mxu1 %v1450_v29 }
 0x555   : > { %2752 = vmatprep.subr.mxu1 %v3298_v16 }
 0x557   : > { %v1539_v30 = vpop.permute.xlu1 %1538 }
 0x558   : > { %2748 = vmatpush3.xpose.msk.msra.mxu0 %vm866_vm2, %v1539_v30 }
 0x559   : > { %2757 = vmatprep.subr.mxu0 %v3298_v16 }
 0x55b   : > { %v1617_v36 = vpop.permute.xlu1 %1616 }
 0x55e   : > { %v2956_v31 = vpop.eup %2955 }
 0x55f   : > { %v1362_v32 = vsel %vm866_vm2, %v2956_v31, 0.0  ;;  %v1615_v38 = vpop.permute.xlu1 %1614 }
 0x560   : > { %1363 = vadd.xlane.f32.xlu0 %v1362_v32 }
 0x576   : > { %1536 = vrot.lane.b32.xlu0 %v3736_v25, %s3301_s9 }
 0x5ed   : > { %v1364_v33 = vpop.xlane.xlu0 %1363 }
 0x5ee   : > { %2957 = vrcp.f32 %v1364_v33 }
 0x5f1   : > { %v1537_v34 = vpop.permute.xlu0 %1536 }
 0x5f2   : > { %2750 = vmatmul.mubr.msk.f32.vlgmr.msra.gmra.mrb[8].mxu0 %vm866_vm2, %v1537_v34 }
 0x5f3   : > { %2759 = vmatprep.mubr.msk.f32.mxu0 %vm3299_vm1, %v3298_v16 }
 0x5f8   : > { %v2958_v35 = vpop.eup %2957 }
 0x5f9   : > { %v3837_v37 = vmul.f32 %v2958_v35, %v2956_v31 }
 0x5fb   : > { %2745 = vmatmul.mubr.msk.f32.vlgmr.msra.gmra.mrb[12].mxu1 %vm866_vm2, %v3837_v37  ;;  %v1370_v6 = vadd.f32 %v3837_v37, %v3794_v0 }
 0x5fc   : > { %2753 = vmatpush3.xpose.msk.msra.mxu1 %vm866_vm2, %v1617_v36  ;;  %2754 = vmatprep.mubr.msk.f32.mxu1 %vm3299_vm1, %v3298_v16 }
 0x5fd   : > { %2762 = vmatprep.subr.mxu1 %v3298_v16 }
 0x5ff   : > { %2755 = vmatmul.mubr.msk.f32.vlgmr.msra.gmra.mrb[14].mxu1 %vm866_vm2, %v1615_v38 }
 0x600   : > { %2764 = vmatprep.mubr.msk.f32.mxu1 %vm3299_vm1, %v3298_v16 }
 0x623   : > { %v3848_v39 = vpop.f32.mrb[6].mxu0 }
 0x624   : > { %v2741_v40 = vpop.f32.mrb[7].mxu0 }
 0x6c5   : > { %v1610_v41 = vpop.f32.mrb[8].mxu0 }
 0x6c6   : > { %v2751_v42 = vpop.f32.mrb[9].mxu0  ;;  %v1692_v43 = vsel %vm866_vm2, %v1610_v41, -inf }
 0x6c7   : > { %1693 = vmax.xlane.f32.xlu0 %v1692_v43 }
 0x6ce   : > { %v3851_v44 = vpop.f32.mrb[12].mxu1 }
 0x6cf   : > { %v2746_v45 = vpop.f32.mrb[13].mxu1 }
 0x6d2   : > { %v1688_v46 = vpop.f32.mrb[14].mxu1 }
 0x6d3   : > { %v2756_v47 = vpop.f32.mrb[15].mxu1  ;;  %v1695_v48 = vsel %vm866_vm2, %v1688_v46, -inf }
 0x6d4   : > { %1696 = vmax.xlane.f32.xlu1 %v1695_v48  ;;  %v2224_v47 = vld [vmem:[#allocation14] sm:$0xff]  ;;  %v2225_v48 = vld [vmem:[#allocation14 + $0x8] sm:$0xff] }
 0x6e5   : > { %1792 = vrot.lane.b32.xlu1 %v3781_v57, %s3301_s9 }
 0x6e9   : > { %1881 = vrot.lane.b32.xlu1 %v3732_v23, %s3302_s17 }
 0x6ed   : > { %1959 = vrot.lane.b32.xlu1 %v3730_v20, %s3302_s17 }
 0x6f1   : > { %1957 = vrot.lane.b32.xlu1 %v3749_v26, %s3302_s17 }
 0x754   : > { %v1694_v49 = vpop.xlane.xlu0 %1693 }
 0x755   : > { %v1698_v50 = vsub.f32 %v1610_v41, %v1694_v49  ;;  %v2822_v49 = vpack.c.bf16 %v2225_v48, %v2224_v47 }
 0x757   : > { %v1700_v51 = vmul.f32 1.442695, %v1698_v50  ;;  %v2226_v50 = vld [vmem:[#allocation14 + $0x10] sm:$0xff] }
 0x759   : > { %2959 = vpow2.f32 %v1700_v51  ;;  %v2227_v51 = vld [vmem:[#allocation14 + $0x18] sm:$0xff] }
 0x761   : > { %v1697_v52 = vpop.xlane.xlu1 %1696 }
 0x762   : > { %v1699_v20 = vsub.f32 %v1688_v46, %v1697_v52  ;;  %v2826_v52 = vpack.c.bf16 %v2227_v51, %v2226_v50 }
 0x763   : > { %v2960_v53 = vpop.eup %2959 }
 0x764   : > { %v1704_v54 = vsel %vm866_vm2, %v2960_v53, 0.0  ;;  %v1702_v23 = vmul.f32 1.442695, %v1699_v20 }
 0x765   : > { %1705 = vadd.xlane.f32.xlu0 %v1704_v54  ;;  %v1793_v55 = vpop.permute.xlu1 %1792 }
 0x766   : > { %2763 = vmatpush3.msra.mxu1 %v1793_v55  ;;  %2961 = vpow2.f32 %v1702_v23 }
 0x767   : > { %2772 = vmatprep.subr.mxu1 %v3298_v16 }
 0x769   : > { %v1882_v2 = vpop.permute.xlu1 %1881 }
 0x76d   : > { %v1960_v5 = vpop.permute.xlu1 %1959 }
 0x770   : > { %v2962_v26 = vpop.eup %2961 }
 0x771   : > { %v1707_v56 = vsel %vm866_vm2, %v2962_v26, 0.0  ;;  %v1958_v9 = vpop.permute.xlu1 %1957 }
 0x77b   : > { %1716 = vrot.lane.b32.xlu0 %v3783_v58, %s3301_s9 }
 0x79a   : > { %1708 = vadd.xlane.f32.xlu0 %v1707_v56 }
 0x7b0   : > { %1879 = vrot.lane.b32.xlu0 %v3736_v25, %s3302_s17 }
 0x7f2   : > { %v1706_v59 = vpop.xlane.xlu0 %1705 }
 0x7f3   : > { %2963 = vrcp.f32 %v1706_v59 }
 0x7f6   : > { %v1717_v60 = vpop.permute.xlu0 %1716 }
 0x7f7   : > { %2758 = vmatpush3.msra.mxu0 %v1717_v60 }
 0x7f8   : > { %2767 = vmatprep.subr.mxu0 %v3298_v16 }
 0x7fd   : > { %v2964_v61 = vpop.eup %2963 }
 0x7fe   : > { %v1712_v1 = vmul.f32 %v2964_v61, %v2960_v53 }
 0x800   : > { %v3872_v3 = vadd.f32 %v1712_v1, %v1369_v63  ;;  %2760 = vmatmul.mubr.msk.f32.vlgmr.msra.gmra.mrb[10].mxu0 %vm866_vm2, %v1712_v1 }
 0x801   : > { %2768 = vmatpush3.xpose.msk.msra.mxu0 %vm866_vm2, %v1882_v2  ;;  %2769 = vmatprep.mubr.msk.f32.mxu0 %vm3299_vm1, %v3298_v16 }
 0x802   : > { %2777 = vmatprep.subr.mxu0 %v3298_v16 }
 0x827   : > { %v1709_v25 = vpop.xlane.xlu0 %1708 }
 0x828   : > { %2965 = vrcp.f32 %v1709_v25 }
 0x82b   : > { %v1880_v4 = vpop.permute.xlu0 %1879 }
 0x82c   : > { %2770 = vmatmul.mubr.msk.f32.vlgmr.msra.gmra.mrb[12].mxu0 %vm866_vm2, %v1880_v4 }
 0x82d   : > { %2779 = vmatprep.mubr.msk.f32.mxu0 %vm3299_vm1, %v3298_v16 }
 0x832   : > { %v2966_v62 = vpop.eup %2965 }
 0x833   : > { %v1713_v7 = vmul.f32 %v2966_v62, %v2962_v26 }
 0x835   : > { %v3884_v8 = vadd.f32 %v1713_v7, %v1370_v6  ;;  %2765 = vmatmul.mubr.msk.f32.vlgmr.msra.gmra.mrb[16].mxu1 %vm866_vm2, %v1713_v7 }
 0x836   : > { %2773 = vmatpush3.xpose.msk.msra.mxu1 %vm866_vm2, %v1960_v5  ;;  %2774 = vmatprep.mubr.msk.f32.mxu1 %vm3299_vm1, %v3298_v16 }
 0x837   : > { %2782 = vmatprep.subr.mxu1 %v3298_v16 }
 0x839   : > { %2775 = vmatmul.mubr.msk.f32.vlgmr.msra.gmra.mrb[18].mxu1 %vm866_vm2, %v1958_v9 }
 0x83a   : > { %2784 = vmatprep.mubr.msk.f32.mxu1 %vm3299_vm1, %v3298_v16 }
 0x8d3   : > { %v1788_v10 = vpop.f32.mrb[10].mxu0 }
 0x8d4   : > { %v2761_v0 = vpop.f32.mrb[11].mxu0 }
 0x8ff   : > { %v1953_v11 = vpop.f32.mrb[12].mxu0 }
 0x900   : > { %v2771_v12 = vpop.f32.mrb[13].mxu0  ;;  %v2035_v13 = vsel %vm866_vm2, %v1953_v11, -inf }
 0x901   : > { %2036 = vmax.xlane.f32.xlu0 %v2035_v13 }
 0x908   : > { %v1864_v14 = vpop.f32.mrb[16].mxu1 }
 0x909   : > { %v2766_v15 = vpop.f32.mrb[17].mxu1 }
 0x90c   : > { %v2031_v17 = vpop.f32.mrb[18].mxu1 }
 0x90d   : > { %v2776_v18 = vpop.f32.mrb[19].mxu1  ;;  %v2038_v19 = vsel %vm866_vm2, %v2031_v17, -inf }
 0x90e   : > { %2039 = vmax.xlane.f32.xlu1 %v2038_v19 }
 0x91f   : > { %2135 = vrot.lane.b32.xlu1 %v3781_v57, %s3302_s17 }
 0x923   : > { %1527 = vrot.lane.b32.xlu1 %v3848_v39, %s3303_s16 }
 0x927   : > { %1529 = vrot.lane.b32.xlu1 %v3851_v44, %s3303_s16 }
 0x92b   : > { %1872 = vrot.lane.b32.xlu1 %v1864_v14, %s3304_s1 }
 0x98e   : > { %v2037_v16 = vpop.xlane.xlu0 %2036 }
 0x98f   : > { %v2041_v21 = vsub.f32 %v1953_v11, %v2037_v16 }
 0x991   : > { %v2043_v22 = vmul.f32 1.442695, %v2041_v21 }
 0x993   : > { %2967 = vpow2.f32 %v2043_v22 }
 0x99b   : > { %v2040_v24 = vpop.xlane.xlu1 %2039 }
 0x99c   : > { %v2042_v27 = vsub.f32 %v2031_v17, %v2040_v24 }
 0x99d   : > { %v2968_v28 = vpop.eup %2967 }
 0x99e   : > { %v2045_v29 = vmul.f32 1.442695, %v2042_v27  ;;  %v2047_v30 = vsel %vm866_vm2, %v2968_v28, 0.0 }
 0x99f   : > { %2048 = vadd.xlane.f32.xlu0 %v2047_v30  ;;  %v2136_v57 = vpop.permute.xlu1 %2135 }
 0x9a0   : > { %2969 = vpow2.f32 %v2045_v29  ;;  %2783 = vmatpush3.msra.mxu1 %v2136_v57 }
 0x9a3   : > { %v1528_v31 = vpop.permute.xlu1 %1527 }
 0x9a4   : > { %1534 = vst.msk [vmem:[#allocation2] sm:$0xff] %vm1533_vm3, %v1528_v31 }
 0x9a7   : > { %v1530_v32 = vpop.permute.xlu1 %1529 }
 0x9a8   : > { %1535 = vst.msk [vmem:[#allocation2 + $0x8] sm:$0xff] %vm1533_vm3, %v1530_v32 }
 0x9aa   : > { %v2970_v33 = vpop.eup %2969 }
 0x9ab   : > { %v1873_v34 = vpop.permute.xlu1 %1872  ;;  %v2050_v35 = vsel %vm866_vm2, %v2970_v33, 0.0 }
 0x9ac   : > { %1878 = vst.msk [vmem:[#allocation2 + $0x8] sm:$0xff] %vm1876_vm4, %v1873_v34  ;;  %2051 = vadd.xlane.f32.xlu0 %v2050_v35 }
 0x9c2   : > { %2059 = vrot.lane.b32.xlu0 %v3783_v58, %s3302_s17 }
 0x9c6   : > { %1870 = vrot.lane.b32.xlu0 %v1788_v10, %s3304_s1 }
 0xa2c   : > { %v2049_v36 = vpop.xlane.xlu0 %2048 }
 0xa2d   : > { %2971 = vrcp.f32 %v2049_v36 }
 0xa37   : > { %v2972_v37 = vpop.eup %2971 }
 0xa38   : > { %v2055_v38 = vmul.f32 %v2972_v37, %v2968_v28 }
 0xa39   : > { %v2052_v39 = vpop.xlane.xlu0 %2051 }
 0xa3a   : > { %v2057_v40 = vadd.f32 %v2055_v38, %v3872_v3  ;;  %2973 = vrcp.f32 %v2052_v39 }
 0xa3c   : > { %v2318_v41 = vmul.f32 0.25, %v2057_v40 }
 0xa3d   : > { %v2060_v42 = vpop.permute.xlu0 %2059 }
 0xa3e   : > { %2778 = vmatpush3.msra.mxu0 %v2060_v42  ;;  %2320 = vst.msk [vmem:[%s3909_s30] sm:$0xff] %vm866_vm2, %v2318_v41 }
 0xa3f   : > { %2780 = vmatmul.mubr.msk.f32.vlgmr.msra.gmra.mrb[14].mxu0 %vm866_vm2, %v2055_v38  ;;  %2823 = vmatprep.subr.bf16.mxu0 %v2822_v49 }
 0xa40   : > { %2825 = vmatpush3.bf16.msra.mxu0 %v2822_v49 }
 0xa41   : > { %v1871_v58 = vpop.permute.xlu0 %1870  ;;  %2827 = vmatprep.subr.bf16.mxu0 %v2826_v52 }
 0xa42   : > { %1877 = vst.msk [vmem:[#allocation2] sm:$0xff] %vm1876_vm4, %v1871_v58 }
 0xa44   : > { %v2974_v43 = vpop.eup %2973  ;;  %2829 = vmatpush3.bf16.msra.mxu0 %v2826_v52 }
 0xa45   : > { %v2056_v44 = vmul.f32 %v2974_v43, %v2970_v33 }
 0xa47   : > { %v2058_v45 = vadd.f32 %v2056_v44, %v3884_v8  ;;  %2785 = vmatmul.mubr.msk.f32.vlgmr.msra.gmra.mrb[20].mxu1 %vm866_vm2, %v2056_v44 }
 0xa49   : > { %v2319_v46 = vmul.f32 0.25, %v2058_v45 }
 0xa4b   : > { %2321 = vst.msk [vmem:[%s3909_s30 + $0x8] sm:$0xff] %vm866_vm2, %v2319_v46 }
 0xb12   : > { %v2131_v53 = vpop.f32.mrb[14].mxu0 }
 0xb13   : > { %2213 = vrot.lane.b32.xlu0 %v2131_v53, %s3305_s18  ;;  %v2781_v54 = vpop.f32.mrb[15].mxu0 }
 0xb1a   : > { %v2207_v55 = vpop.f32.mrb[20].mxu1 }
 0xb1b   : > { %2215 = vrot.lane.b32.xlu1 %v2207_v55, %s3305_s18  ;;  %v2786_v20 = vpop.f32.mrb[21].mxu1 }
 0xb85   : > { %v2214_v23 = vpop.permute.xlu0 %2213 }
 0xb86   : > { %2220 = vst.msk [vmem:[#allocation2] sm:$0xff] %vm2219_vm5, %v2214_v23 }
 0xb8d   : > { %v2216_v26 = vpop.permute.xlu1 %2215  ;;  %v2222_v56 = vld [vmem:[#allocation2] sm:$0xff] }
 0xb8e   : > { %2221 = vst.msk [vmem:[#allocation2 + $0x8] sm:$0xff] %vm2219_vm5, %v2216_v26  ;;  %2795 = vmatprep.mubr.msk.f32.mxu0 %vm600_vm0, %v2222_v56 }
 0xb95   : > { %v2223_v59 = vld [vmem:[#allocation2 + $0x8] sm:$0xff] }
 0xb96   : > { %2796 = vmatmul.mubr.msk.f32.vlgmr.msra.gmra.mrb[16].mxu0 %vm600_vm0, %v2223_v59 }
 0xb97   : > { %3190 = shalt.err (!%p3187_p12)
}
 0xb98   : > { %s3191_s7 = scalar_lea.hbm %s3927_s26, 256  ;;  %s3195_s9 = scalar_lea.hbm %s4100_s12, 512 }
 0xb99   : > { %p3192_p8 = scmp.ne.s32.totalorder %s3927_s26, %s3191_s7  ;;  %p3196_p1 = scmp.lt.u32.totalorder %s3927_s26, %s4100_s12 }
 0xb9a   : > { %p3197_p6 = scmp.lt.u32.totalorder %s3195_s9, %s3191_s7  ;;  %p3199_p5 = scmp.lt.u32.totalorder %s3191_s7, %s3927_s26 }
 0xb9b   : > { %p3193_p10 = pnand %p3192_p8, %p4101_p2 }
 0xb9c   : > { %p3198_p3 = por %p3197_p6, %p3196_p1 }
 0xb9d   : > { %p3194_p0 = pneg %p3193_p10 }
 0xb9e   : > { %p3200_p4 = por %p3199_p5, %p3198_p3 }
 0xba0   : > { %p3201_p11 = pnand %p3200_p4, %p3194_p0 }
 0xba2   : > { %3204 = shalt.err (!%p3201_p11)
}
 0xba3   : > { %s3307_s30 = smov 128   ;;  %s4102_s29 = sld [smem:[#allocation35_spill]] }
 0xba4   : > { %2853 = dma.vmem_to_hbm [thread:$0]  (%p4101_p2), %s3930_s27, 256, %s3927_s26, %s2328_s15, %s3307_s30, %s3307_s30, %s3303_s16  }
 0xba5   : > { %s570_s21 = scalar_lea.vmem [#allocation15], %s3686_s14  ;;  %s4103_s7 = sld [smem:[#allocation36_spill]] }
 0xba6   : > { %s2341_s10 = sshll.u32 %s570_s21, 4  ;;  %s2323_s14 = scalar_lea.sflag [#allocation5], %s3683_s11  ;;  %s3963_s10 = int_to_ptr.vmem [resolvable:$true] %s2341_s10 }
 0xba7   : > { %s3205_s27 = scalar_lea.vmem %s3963_s10, 256  ;;  %s3308_s15 = smov [#allocation15]  }
 0xba8   : > { %p3206_p13 = scmp.ne.s32.totalorder %s3963_s10, %s3205_s27  ;;  %s3209_s20 = sshll.u32 %s3308_s15, 4  ;;  %s3210_s20 = int_to_ptr.vmem [resolvable:$false] %s3209_s20 }
 0xba9   : > { %v2602_v60 = vld [vmem:[%s4102_s29] ss:$0 sm:$0xff]  ;;  %s3211_s28 = scalar_lea.vmem %s3210_s20, 512  ;;  %p3212_p12 = scmp.lt.s32.totalorder %s3963_s10, %s3210_s20 }
 0xbaa   : > { %p3207_p7 = pnand %p3206_p13, %p4101_p2  ;;  %p3213_p8 = scmp.lt.s32.totalorder %s3211_s28, %s3205_s27 }
 0xbab   : > { %s3970_s26 = scalar_lea.hbm %s4103_s7, %s2616_s19 }
 0xbac   : > { %p3208_p9 = pneg %p3207_p7  ;;  %p3214_p10 = por %p3213_p8, %p3212_p12 }
 0xbae   : > { %p3215_p0 = pnand %p3214_p10, %p3208_p9 }
 0xc69   : > { %v2797_v61 = vpop.f32.mrb[16].mxu0 }
 0xc6a   : > { %v2313_v63 = vadd.f32 %v2797_v61, %v2602_v60  ;;  %v2307_v1 = vpop.f32.mrb[17].mxu0 }
 0xc6b   : > { %v2308_v2 = vadd.f32 %v2602_v60, %v2307_v1 }
 0xc6c   : > { %2317 = vst.msk [vmem:[%s570_s21 + $0x8] sm:$0xff] %vm600_vm0, %v2313_v63 }
 0xc6d   : > { %2316 = vst.msk [vmem:[%s570_s21] sm:$0xff] %vm600_vm0, %v2308_v2 }
 0xc6e   : > { %3218 = shalt.err (!%p3215_p0)
}
 0xc6f   : > { %s3219_s25 = scalar_lea.hbm %s3970_s26, 256  ;;  %s3223_s17 = scalar_lea.hbm %s4103_s7, 512 }
 0xc70   : > { %p3220_p1 = scmp.ne.s32.totalorder %s3970_s26, %s3219_s25  ;;  %p3224_p5 = scmp.lt.u32.totalorder %s3970_s26, %s4103_s7 }
 0xc71   : > { %p3225_p4 = scmp.lt.u32.totalorder %s3223_s17, %s3219_s25  ;;  %p3227_p13 = scmp.lt.u32.totalorder %s3219_s25, %s3970_s26 }
 0xc72   : > { %p3221_p6 = pnand %p3220_p1, %p4101_p2 }
 0xc73   : > { %p3226_p11 = por %p3225_p4, %p3224_p5 }
 0xc74   : > { %p3222_p3 = pneg %p3221_p6 }
 0xc75   : > { %p3228_p7 = por %p3227_p13, %p3226_p11 }
 0xc77   : > { %p3229_p9 = pnand %p3228_p7, %p3222_p3 }
 0xc79   : > { %3232 = shalt.err (!%p3229_p9)
}
 0xc7a   : > { %2852 = dma.vmem_to_hbm [thread:$0]  (%p4101_p2), %s3963_s10, 256, %s3970_s26, %s2323_s14, %s3307_s30, %s3307_s30, %s3303_s16  }
 0xc7b PF: > { %s4104_s5 = sld [smem:[#allocation24_spill]]  ;;  %s4105_s29 = sld [smem:[#allocation26_spill]] }
 0xc7c   : > { %s4106_s21 = sld [smem:[#allocation25_spill]] }
 0xc81   : > { %s2372_s24 = sand.u32 1, %s4104_s5   ;;  %p4107_p12 = scmp.ne.s32.totalorder %s4105_s29, 0 }
 0xc82   : > { %p4108_p8 = scmp.ge.s32.totalorder %s4106_s21, 2  ;;  %s2373_s3 = scalar_lea.sflag [#allocation5], %s2372_s24 }
 0xc84   : > { %p2880_p10 = pnand %p4108_p8, %p4107_p12 }
 0xc86   : > { %3266 = dma.done.wait (!%p2880_p10), %s2373_s3, 256  }
 0xc87   : > { %3268 = vsyncadd (!%p2880_p10), %s2373_s3, 4294967040  ;;  %s2382_s13 = scalar_lea.sflag [#allocation17], %s2372_s24 }
 0xc88   : > { %3270 = dma.done.wait (!%p2880_p10), %s2382_s13, 256  }
 0xc89   : > { %3272 = vsyncadd (!%p2880_p10), %s2382_s13, 4294967040  ;;  %s4109_s24 = sld [smem:[#allocation27_spill]]  ;;  %s4110_s11 = sld [smem:[#allocation29_spill]] }
 0xc8a   : > { %s4111_s21 = smov %s3279_s22  ;;  %s4112_s22 = smov %s3283_s23 }
 0xc8f   : > { %p34_p2 = scmp.ge.s32.totalorder %s4109_s24, 4   ;;  %s4113_s23 = smov %s4110_s11 }
 0xc91   :  { %36 = sbr.rel (!%p34_p2) target bundleno = 20 (0x14), region = 166 }
 0xc98   :  { %2387 = vsyncpa [#allocation4], 1 }
 0xc99   :  { %2389 = vsyncpa [#allocation4 + $0x1], 1 }
 0xc9a   :  { %2390 = vsyncpa [#allocation7], 1 }
 0xc9b   :  { %2392 = vsyncpa [#allocation7 + $0x1], 1 }
 0xc9c   :  { %2393 = vsyncpa [#allocation10], 1 }
 0xc9d   :  { %2394 = vsyncpa [#allocation13], 1 }
 0xc9e   :  { %2395 = vsyncpa [#allocation5], 1 }
 0xc9f   :  { %2397 = vsyncpa [#allocation5 + $0x1], 1 }
 0xca0   :  { %2398 = vsyncpa [#allocation17], 1 }
 0xca1   :  { %2400 = vsyncpa [#allocation17 + $0x1], 1 }

// kernel: tpu_custom_call.1
= control target key start
LH: loop header
LB: loop body
LE: loop exit
PB: predicated region body
PF: predicated region fallthrough
CT: control target
= control target key end

     0   :  { %s4019_s0 = inlined_call_operand.hbm [shape: f32[4,8,32], index: 0, kind: input, shape index: {}]   ;;  %s4020_s1 = inlined_call_operand.hbm [shape: f32[4,8,32], index: 1, kind: input, shape index: {}]   ;;  %s4021_s2 = inlined_call_operand.hbm [shape: f32[4,8,32], index: 2, kind: input, shape index: {}]   ;;  %s4022_s3 = inlined_call_operand.hbm [shape: f32[32,32], index: 3, kind: input, shape index: {}]   ;;  %s4023_s4 = inlined_call_operand.hbm [shape: f32[32,32], index: 4, kind: input, shape index: {}]   ;;  %s4024_s5 = inlined_call_operand.hbm [shape: f32[32,32], index: 5, kind: input, shape index: {}]   ;;  %s4025_s6 = inlined_call_operand.hbm [shape: f32[32,32], index: 6, kind: input, shape index: {}]   ;;  %s4026_s7 = inlined_call_operand.vmem [shape: f32[1,32], index: 7, kind: input, shape index: {}]   ;;  %s4027_s8 = inlined_call_operand.vmem [shape: f32[1,32], index: 8, kind: input, shape index: {}]   ;;  %s4028_s9 = inlined_call_operand.vmem [shape: f32[1,32], index: 9, kind: input, shape index: {}]   ;;  %s4029_s10 = inlined_call_operand.vmem [shape: f32[1,32], index: 10, kind: input, shape index: {}]   ;;  %s4030_s11 = inlined_call_operand.hbm [shape: f32[4,8,32], index: 11, kind: output, shape index: {0}]   ;;  %s4031_s12 = inlined_call_operand.hbm [shape: f32[4,8,8], index: 12, kind: output, shape index: {1}]  }
   0x1   :  { %4058 = sst [smem:[#allocation30_spill]] %s4020_s1 }
   0x2   :  { %4059 = sst [smem:[#allocation31_spill]] %s4022_s3 }
   0x3   :  { %4060 = sst [smem:[#allocation32_spill]] %s4024_s5 }
   0x4   :  { %4061 = sst [smem:[#allocation33_spill]] %s4026_s7 }
   0x5   :  { %4062 = sst [smem:[#allocation34_spill]] %s4028_s9 }
   0x6   :  { %4063 = sst [smem:[#allocation35_spill]] %s4029_s10 }
   0x7   :  { %4064 = sst [smem:[#allocation36_spill]] %s4030_s11 }
   0x8   :  { %4065 = sst [smem:[#allocation37_spill]] %s4031_s12 }
   0x9   :  { %18 = vsyncpa [#allocation4], 0 }
   0xa   :  { %20 = vsyncpa [#allocation4 + $0x1], 0 }
   0xb   :  { %21 = vsyncpa [#allocation7], 0 }
   0xc   :  { %23 = vsyncpa [#allocation7 + $0x1], 0 }
   0xd   :  { %24 = vsyncpa [#allocation10], 0 }
   0xe   :  { %25 = vsyncpa [#allocation13], 0 }
   0xf   :  { %26 = vsyncpa [#allocation5], 0 }
  0x10   :  { %28 = vsyncpa [#allocation5 + $0x1], 0 }
  0x11   :  { %29 = vsyncpa [#allocation17], 0 }
  0x12   :  { %31 = vsyncpa [#allocation17 + $0x1], 0  ;;  %s3374_s21 = smov 0   ;;  %s3376_s22 = smov 0  }
  0x13   :  { %s3378_s23 = smov 0   ;;  %s3380_s24 = smov 0  }
  0x14 LB: > { %4066 = sst [smem:[#allocation24_spill]] %s3275_s21  ;;  %s3395_s25 = sadd.s32 4294967295, %s3287_s24   ;;  %s3287_s24 = sphi %s3380_s24, %s4109_s24   ;;  %s3283_s23 = sphi %s3378_s23, %s4113_s23   ;;  %s3279_s22 = sphi %s3376_s22, %s4112_s22   ;;  %s3275_s21 = sphi %s3374_s21, %s4111_s21  }
  0x15   : > { %4067 = sst [smem:[#allocation25_spill]] %s3287_s24  ;;  %s2543_s26 = sadd.s32 4294967294, %s3287_s24  }
  0x16   : > { %p57_p0 = scmp.ne.s32.totalorder %s3279_s22, %s3275_s21  ;;  %p4033_p1 = scmp.eq.s32.totalorder %s3395_s25, 0 }
  0x17   : > { %p307_p3 = scmp.eq.s32.totalorder %s2543_s26, 1  ;;  %p2544_p5 = scmp.ge.s32.totalorder %s3287_s24, 1 }
  0x18   : > { %p3404_p4 = por %p4033_p1, %p57_p0  ;;  %p340_p7 = scmp.lt.s32.totalorder %s3287_s24, 3 }
  0x19   : > { %p3409_p6 = por %p307_p3, %p57_p0  ;;  %s3289_s30 = smov [#allocation9]  }
  0x1a   : > { %s4068_s27 = scalar_select %p3404_p4, 1, 0 }
  0x1b   : > { %s4069_s28 = scalar_select %p3409_p6, 1, 0 }
  0x1c   : > { %p3414_p8 = pnand %p2544_p5, %p340_p7  ;;  %s352_s13 = sshll.u32 %s3289_s30, 4  ;;  %s3418_s13 = int_to_ptr.vmem [resolvable:$true] %s352_s13 }
  0x1d   : > { %4070 = sst [smem:[#allocation26_spill]] %s4069_s28  ;;  %s3290_s15 = smov [#allocation12]  }
  0x1e   : > { %s4071_s29 = scalar_select %p3414_p8, 1, 0 }
  0x1f   : > { %p2856_p9 = pneg %p3414_p8  ;;  %s378_s16 = sshll.u32 %s3290_s15, 4  ;;  %s3429_s16 = int_to_ptr.vmem [resolvable:$true] %s378_s16 }
  0x20   : > { %s4073_s3 = sld [smem:[#allocation31_spill]] }
  0x21   : > { %p3425_p11 = pnand %p2856_p9, %p4033_p1 }
  0x23   : > { %s4072_s14 = scalar_select %p3425_p11, 1, 0 }
  0x24   : > { %p3439_p13 = pneg %p3425_p11 }
  0x26   : > { %s2975_s19 = scalar_lea.hbm %s4073_s3, 512 }
  0x27   : > { %p2976_p12 = scmp.ne.s32.totalorder %s4073_s3, %s2975_s19  ;;  %p2982_p5 = scmp.lt.u32.totalorder %s2975_s19, %s4073_s3 }
  0x28   : > { %s4074_s30 = scalar_select %p3439_p13, 1, 0 }
  0x29   : > { %p2978_p0 = pnand %p3439_p13, %p2976_p12 }
  0x2b   : > { %p2979_p3 = pneg %p2978_p0 }
  0x2d   : > { %p2984_p7 = pnand %p2982_p5, %p2979_p3 }
  0x2f   : > { %2987 = shalt.err (!%p2984_p7)
}
  0x30   : > { %s2988_s17 = scalar_lea.vmem %s3418_s13, 512  ;;  %p2996_p2 = scmp.lt.s32.totalorder %s3418_s13, %s3418_s13 }
  0x31   : > { %p2989_p9 = scmp.ne.s32.totalorder %s3418_s13, %s2988_s17  ;;  %p2997_p6 = scmp.lt.s32.totalorder %s2988_s17, %s2988_s17 }
  0x33   : > { %p2991_p10 = pnand %p2989_p9, %p3439_p13  ;;  %p2998_p12 = por %p2997_p6, %p2996_p2 }
  0x35   : > { %p2992_p1 = pneg %p2991_p10 }
  0x37   : > { %p2999_p0 = pnand %p2998_p12, %p2992_p1 }
  0x39   : > { %3002 = shalt.err (!%p2999_p0)
}
  0x3a   : > { %s4038_s18 = smov 128   ;;  %s4040_s28 = smov 8  }
  0x3b   : > { %2859 = dma.hbm_to_vmem [thread:$0]  (!%p3425_p11), %s4073_s3, 512, %s3418_s13, [#allocation10], %s4038_s18, %s4038_s18, %s4040_s28  }
  0x3c   : > { %s4075_s5 = sld [smem:[#allocation32_spill]] }
  0x42   : > { %s3003_s17 = scalar_lea.hbm %s4075_s5, 512 }
  0x43   : > { %p3004_p1 = scmp.ne.s32.totalorder %s4075_s5, %s3003_s17  ;;  %p3010_p10 = scmp.lt.u32.totalorder %s3003_s17, %s4075_s5 }
  0x45   : > { %p3006_p2 = pnand %p3004_p1, %p3439_p13 }
  0x47   : > { %p3007_p6 = pneg %p3006_p2 }
  0x49   : > { %p3012_p3 = pnand %p3010_p10, %p3007_p6 }
  0x4b   : > { %3015 = shalt.err (!%p3012_p3)
}
  0x4c   : > { %s3016_s13 = scalar_lea.vmem %s3429_s16, 512  ;;  %p3024_p12 = scmp.lt.s32.totalorder %s3429_s16, %s3429_s16 }
  0x4d   : > { %p3017_p5 = scmp.ne.s32.totalorder %s3429_s16, %s3016_s13  ;;  %p3025_p0 = scmp.lt.s32.totalorder %s3016_s13, %s3016_s13 }
  0x4f   : > { %p3019_p7 = pnand %p3017_p5, %p3439_p13  ;;  %p3026_p1 = por %p3025_p0, %p3024_p12 }
  0x51   : > { %p3020_p9 = pneg %p3019_p7 }
  0x53   : > { %p3027_p2 = pnand %p3026_p1, %p3020_p9 }
  0x55   : > { %3030 = shalt.err (!%p3027_p2)
}
  0x56   : > { %2865 = dma.hbm_to_vmem [thread:$0]  (!%p3425_p11), %s4075_s5, 512, %s3429_s16, [#allocation13], %s4038_s18, %s4038_s18, %s4040_s28  }
  0x57   : > { %s3490_s12 = sadd.s32 1, %s3287_s24   ;;  %s44_s21 = sadd.s32 1, %s3283_s23 }
  0x58   : > { %4076 = sst [smem:[#allocation27_spill]] %s3490_s12  ;;  %s41_s19 = ssub.s32 %s3287_s24, %s3490_s12 }
  0x59   : > { %p51_p6 = scmp.ne.s32.totalorder %s3283_s23, %s3279_s22  ;;  %p42_p10 = scmp.eq.s32.totalorder %s41_s19, 0 }
  0x5a   : > { %p52_p3 = scmp.eq.s32.totalorder %s3287_s24, 0  ;;  %p4077_p5 = scmp.eq.s32.totalorder %s3395_s25, 1 }
  0x5b   : > { %p2890_p9 = scmp.lt.s32.totalorder %s3287_s24, 2  ;;  %s4037_s15 = sand.u32 1, %s3283_s23  }
  0x5c   : > { %p3500_p7 = por %p4077_p5, %p51_p6  ;;  %p53_p12 = por %p52_p3, %p51_p6 }
  0x5d   : > { %s3506_s26 = scalar_select %p42_p10, %s3283_s23, %s44_s21  }
  0x5e   : > { %s4078_s20 = scalar_select %p3500_p7, 1, 0 }
  0x5f   : > { %4080 = sst [smem:[#allocation29_spill]] %s3506_s26  ;;  %s3511_s16 = sshll.u32 %s4037_s15, 4 }
  0x60   : > { %4079 = sst [smem:[#allocation28_spill]] %s4078_s20  ;;  %s3514_s17 = sshll.u32 %s3287_s24, 8 }
  0x61   : > { %p3516_p0 = pnand %p2890_p9, %p53_p12  ;;  %s438_s10 = sand.u32 1, %s3287_s24  }
  0x62   : > { %s4082_s1 = sld [smem:[#allocation30_spill]]  ;;  %s442_s15 = scalar_lea.vmem [#allocation6], %s3511_s16 }
  0x63   : > { %s4081_s13 = scalar_select %p3516_p0, 1, 0 }
  0x64   : > { %s449_s18 = sshll.u32 %s442_s15, 4  ;;  %s3293_s28 = smov [#allocation11]   ;;  %s3528_s18 = int_to_ptr.vmem [resolvable:$true] %s449_s18 }
  0x65   : > { %s3530_s3 = sshll.u32 %s3293_s28, 4  ;;  %s3532_s5 = scalar_lea.sflag [#allocation7], %s438_s10  ;;  %s366_s3 = int_to_ptr.vmem [resolvable:$true] %s3530_s3 }
  0x66   : > { %p3538_p2 = pneg %p3516_p0 }
  0x68   : > { %s3525_s21 = scalar_lea.hbm %s4082_s1, %s3514_s17  ;;  %s3036_s12 = scalar_lea.hbm %s4082_s1, 512 }
  0x69   : > { %s3031_s26 = scalar_lea.hbm %s3525_s21, 256  ;;  %p3037_p3 = scmp.lt.u32.totalorder %s3525_s21, %s4082_s1 }
  0x6a   : > { %p3032_p1 = scmp.ne.s32.totalorder %s3525_s21, %s3031_s26  ;;  %p3038_p5 = scmp.lt.u32.totalorder %s3036_s12, %s3031_s26 }
  0x6b   : > { %s4083_s11 = scalar_select %p3538_p2, 1, 0 }
  0x6c   : > { %p3034_p6 = pnand %p3538_p2, %p3032_p1  ;;  %p3039_p9 = por %p3038_p5, %p3037_p3 }
  0x6d   : > { %p3040_p12 = scmp.lt.u32.totalorder %s3031_s26, %s3525_s21 }
  0x6e   : > { %p3035_p10 = pneg %p3034_p6 }
  0x6f   : > { %p3041_p7 = por %p3040_p12, %p3039_p9 }
  0x71   : > { %p3042_p4 = pnand %p3041_p7, %p3035_p10 }
  0x73   : > { %3045 = shalt.err (!%p3042_p4)
}
  0x74   : > { %s3046_s10 = scalar_lea.vmem %s3528_s18, 256  ;;  %s3294_s19 = smov [#allocation6]  }
  0x75   : > { %p3047_p1 = scmp.ne.s32.totalorder %s3528_s18, %s3046_s10  ;;  %s3051_s15 = sshll.u32 %s3294_s19, 4  ;;  %s3052_s15 = int_to_ptr.vmem [resolvable:$false] %s3051_s15 }
  0x76   : > { %s3053_s24 = scalar_lea.vmem %s3052_s15, 512  ;;  %p3054_p11 = scmp.lt.s32.totalorder %s3528_s18, %s3052_s15 }
  0x77   : > { %p3049_p6 = pnand %p3047_p1, %p3538_p2  ;;  %p3055_p13 = scmp.lt.s32.totalorder %s3053_s24, %s3046_s10 }
  0x79   : > { %p3050_p8 = pneg %p3049_p6  ;;  %p3056_p3 = por %p3055_p13, %p3054_p11 }
  0x7b   : > { %p3057_p5 = pnand %p3056_p3, %p3050_p8 }
  0x7d   : > { %3060 = shalt.err (!%p3057_p5)
}
  0x7e   : > { %s4084_s12 = smov 8   ;;  %s4085_s26 = smov 128  }
  0x7f   : > { %2875 = dma.hbm_to_vmem [thread:$0]  (!%p3516_p0), %s3525_s21, 256, %s3528_s18, %s3532_s5, %s4085_s26, %s4085_s26, %s4084_s12  }
  0x80   : > { %s3061_s15 = scalar_lea.hbm %s4023_s4, 512  ;;  %p4086_p8 = scmp.ne.s32.totalorder %s4074_s30, 0 }
  0x81   : > { %p3062_p4 = scmp.ne.s32.totalorder %s4023_s4, %s3061_s15  ;;  %p3068_p7 = scmp.lt.u32.totalorder %s3061_s15, %s4023_s4 }
  0x83   : > { %p3064_p11 = pnand %p3062_p4, %p4086_p8 }
  0x85   : > { %p3065_p13 = pneg %p3064_p11 }
  0x87   : > { %p3070_p10 = pnand %p3068_p7, %p3065_p13 }
  0x89   : > { %3073 = shalt.err (!%p3070_p10)
}
  0x8a   : > { %s3074_s9 = scalar_lea.vmem %s366_s3, 512  ;;  %p3082_p6 = scmp.lt.s32.totalorder %s366_s3, %s366_s3 }
  0x8b   : > { %p3075_p9 = scmp.ne.s32.totalorder %s366_s3, %s3074_s9  ;;  %p3083_p3 = scmp.lt.s32.totalorder %s3074_s9, %s3074_s9 }
  0x8d   : > { %p3077_p12 = pnand %p3075_p9, %p4086_p8  ;;  %p3084_p5 = por %p3083_p3, %p3082_p6 }
  0x8f   : > { %p3078_p1 = pneg %p3077_p12 }
  0x91   : > { %p3085_p0 = pnand %p3084_p5, %p3078_p1 }
  0x93   : > { %3088 = shalt.err (!%p3085_p0)
}
  0x94   : > { %p4087_p4 = scmp.ne.s32.totalorder %s4072_s14, 0  ;;  %s3295_s20 = smov [#allocation14]  }
  0x95   : > { %s391_s21 = sshll.u32 %s3295_s20, 4  ;;  %s3089_s9 = scalar_lea.hbm %s4025_s6, 512  ;;  %s392_s21 = int_to_ptr.vmem [resolvable:$true] %s391_s21 }
  0x96   : > { %2862 = dma.hbm_to_vmem [thread:$0]  (!%p4087_p4), %s4023_s4, 512, %s366_s3, [#allocation10], %s4085_s26, %s4085_s26, %s4084_s12  }
  0x97   : > { %p3090_p0 = scmp.ne.s32.totalorder %s4025_s6, %s3089_s9  ;;  %p3096_p7 = scmp.lt.u32.totalorder %s3089_s9, %s4025_s6 }
  0x99   : > { %p3092_p11 = pnand %p3090_p0, %p4086_p8 }
  0x9b   : > { %p3093_p13 = pneg %p3092_p11 }
  0x9d   : > { %p3098_p10 = pnand %p3096_p7, %p3093_p13 }
  0x9f   : > { %3101 = shalt.err (!%p3098_p10)
}
  0xa0   : > { %s3102_s3 = scalar_lea.vmem %s392_s21, 512  ;;  %p3110_p6 = scmp.lt.s32.totalorder %s392_s21, %s392_s21 }
  0xa1   : > { %p3103_p9 = scmp.ne.s32.totalorder %s392_s21, %s3102_s3  ;;  %p3111_p3 = scmp.lt.s32.totalorder %s3102_s3, %s3102_s3 }
  0xa3   : > { %p3105_p12 = pnand %p3103_p9, %p4086_p8  ;;  %p3112_p5 = por %p3111_p3, %p3110_p6 }
  0xa5   : > { %p3106_p1 = pneg %p3105_p12 }
  0xa7   : > { %p3113_p2 = pnand %p3112_p5, %p3106_p1 }
  0xa9   : > { %3116 = shalt.err (!%p3113_p2)
}
  0xaa   : > { %2868 = dma.hbm_to_vmem [thread:$0]  (!%p4087_p4), %s4025_s6, 512, %s392_s21, [#allocation13], %s4085_s26, %s4085_s26, %s4084_s12  }
  0xab   : > { %s3612_s20 = scalar_lea.hbm %s4019_s0, %s3514_s17  ;;  %s421_s14 = scalar_lea.vmem [#allocation3], %s3511_s16 }
  0xac   : > { %s428_s28 = sshll.u32 %s421_s14, 4  ;;  %s4088_s19 = sand.u32 1, %s3283_s23   ;;  %s3615_s28 = int_to_ptr.vmem [resolvable:$true] %s428_s28 }
  0xad   : > { %s3619_s9 = scalar_lea.sflag [#allocation4], %s4088_s19  ;;  %s3117_s15 = scalar_lea.hbm %s3612_s20, 256 }
  0xae   : > { %p3118_p2 = scmp.ne.s32.totalorder %s3612_s20, %s3117_s15  ;;  %p4089_p8 = scmp.ne.s32.totalorder %s4083_s11, 0 }
  0xaf   : > { %s3122_s24 = scalar_lea.hbm %s4019_s0, 512  ;;  %p3123_p11 = scmp.lt.u32.totalorder %s3612_s20, %s4019_s0 }
  0xb0   : > { %p3120_p4 = pnand %p3118_p2, %p4089_p8  ;;  %p3124_p13 = scmp.lt.u32.totalorder %s3122_s24, %s3117_s15 }
  0xb1   : > { %p3126_p10 = scmp.lt.u32.totalorder %s3117_s15, %s3612_s20 }
  0xb2   : > { %p3121_p0 = pneg %p3120_p4  ;;  %p3125_p7 = por %p3124_p13, %p3123_p11 }
  0xb4   : > { %p3127_p9 = por %p3126_p10, %p3125_p7 }
  0xb6   : > { %p3128_p12 = pnand %p3127_p9, %p3121_p0 }
  0xb8   : > { %3131 = shalt.err (!%p3128_p12)
}
  0xb9   : > { %s3132_s1 = scalar_lea.vmem %s3615_s28, 256  ;;  %s3296_s30 = smov [#allocation3]  }
  0xba   : > { %p3133_p1 = scmp.ne.s32.totalorder %s3615_s28, %s3132_s1  ;;  %s3137_s18 = sshll.u32 %s3296_s30, 4  ;;  %s3138_s18 = int_to_ptr.vmem [resolvable:$false] %s3137_s18 }
  0xbb   : > { %s3139_s14 = scalar_lea.vmem %s3138_s18, 512  ;;  %p3140_p5 = scmp.lt.s32.totalorder %s3615_s28, %s3138_s18 }
  0xbc   : > { %p3135_p6 = pnand %p3133_p1, %p4089_p8  ;;  %p3141_p2 = scmp.lt.s32.totalorder %s3139_s14, %s3132_s1 }
  0xbe   : > { %p3136_p3 = pneg %p3135_p6  ;;  %p3142_p4 = por %p3141_p2, %p3140_p5 }
  0xc0   : > { %p3143_p11 = pnand %p3142_p4, %p3136_p3 }
  0xc2   : > { %3146 = shalt.err (!%p3143_p11)
}
  0xc3   : > { %p4090_p0 = scmp.ne.s32.totalorder %s4081_s13, 0  ;;  %s3650_s21 = scalar_lea.hbm %s4021_s2, %s3514_s17 }
  0xc4   : > { %s463_s10 = scalar_lea.vmem [#allocation8], %s3511_s16  ;;  %s3147_s3 = scalar_lea.hbm %s3650_s21, 256 }
  0xc5   : > { %2872 = dma.hbm_to_vmem [thread:$0]  (!%p4090_p0), %s3612_s20, 256, %s3615_s28, %s3619_s9, %s4085_s26, %s4085_s26, %s4084_s12  }
  0xc6   : > { %s470_s24 = sshll.u32 %s463_s10, 4  ;;  %p3148_p13 = scmp.ne.s32.totalorder %s3650_s21, %s3147_s3  ;;  %s3653_s24 = int_to_ptr.vmem [resolvable:$true] %s470_s24 }
  0xc7   : > { %s3152_s28 = scalar_lea.hbm %s4021_s2, 512  ;;  %p3153_p9 = scmp.lt.u32.totalorder %s3650_s21, %s4021_s2 }
  0xc8   : > { %p3150_p7 = pnand %p3148_p13, %p4089_p8  ;;  %p3154_p12 = scmp.lt.u32.totalorder %s3152_s28, %s3147_s3 }
  0xc9   : > { %p3156_p6 = scmp.lt.u32.totalorder %s3147_s3, %s3650_s21 }
  0xca   : > { %p3151_p10 = pneg %p3150_p7  ;;  %p3155_p1 = por %p3154_p12, %p3153_p9 }
  0xcc   : > { %p3157_p3 = por %p3156_p6, %p3155_p1 }
  0xce   : > { %p3158_p5 = pnand %p3157_p3, %p3151_p10 }
  0xd0   : > { %3161 = shalt.err (!%p3158_p5)
}
  0xd1   : > { %s3162_s16 = scalar_lea.vmem %s3653_s24, 256  ;;  %s3297_s1 = smov [#allocation8]  }
  0xd2   : > { %p3163_p2 = scmp.ne.s32.totalorder %s3653_s24, %s3162_s16  ;;  %s3167_s30 = sshll.u32 %s3297_s1, 4  ;;  %s3168_s30 = int_to_ptr.vmem [resolvable:$false] %s3167_s30 }
  0xd3   : > { %s3169_s18 = scalar_lea.vmem %s3168_s30, 512  ;;  %p3170_p13 = scmp.lt.s32.totalorder %s3653_s24, %s3168_s30 }
  0xd4   : > { %p3165_p4 = pnand %p3163_p2, %p4089_p8  ;;  %p3171_p7 = scmp.lt.s32.totalorder %s3169_s18, %s3162_s16 }
  0xd6   : > { %p3166_p11 = pneg %p3165_p4  ;;  %p3172_p9 = por %p3171_p7, %p3170_p13 }
  0xd8   : > { %p3173_p12 = pnand %p3172_p9, %p3166_p11 }
  0xda   : > { %3176 = shalt.err (!%p3173_p12)
}
  0xdb   : > { %2878 = dma.hbm_to_vmem [thread:$0]  (!%p4090_p0), %s3650_s21, 256, %s3653_s24, %s3532_s5, %s4085_s26, %s4085_s26, %s4084_s12  }
  0xdc   : > { %p4091_p8 = scmp.ne.s32.totalorder %s4071_s29, 0 }
  0xdd   : > { %s3683_s11 = sand.u32 (!%p4091_p8), 1, %s3279_s22   ;;  %p4092_p10 = scmp.ne.s32.totalorder (!%p4091_p8), %s4068_s27, 0 }
  0xde   : > { %482 = sbr.rel (%p4091_p8) target bundleno = 3195 (0xc7b), region = 64  ;;  %s3686_s14 = sshll.u32 (!%p4091_p8), %s3683_s11, 4 }
  0xdf   : > { %s485_s13 = scalar_lea.sflag (!%p4091_p8), [#allocation4], %s3683_s11  ;;  %s488_s19 = scalar_lea.vmem (!%p4091_p8), [#allocation3], %s3686_s14 }
  0xe5   : > { %3250 = dma.done.wait (%p4092_p10), %s485_s13, 256  }
  0xe6   : > { %3252 = vsyncadd (%p4092_p10), %s485_s13, 4294967040  ;;  %s493_s5 = sand.u32 1, %s3395_s25   ;;  %s497_s12 = scalar_lea.vmem [#allocation6], %s3686_s14 }
  0xe7   : > { %s494_s29 = scalar_lea.sflag [#allocation7], %s493_s5 }
  0xe8   : > { %3254 = dma.done.wait (%p4092_p10), %s494_s29, 512  }
  0xe9   : > { %3256 = vsyncadd (%p4092_p10), %s494_s29, 4294966784  ;;  %s506_s26 = scalar_lea.vmem [#allocation8], %s3686_s14  ;;  %p4093_p0 = scmp.eq.s32.totalorder %s3395_s25, 0 }
  0xeb   : > { %3258 = dma.done.wait (%p4093_p0), [#allocation10], 1024   ;;  %p4094_p1 = pmov %p4093_p0 }
  0xec   : > { %p4095_p6 = pmov %p4093_p0 }
  0xed   : > { %3260 = vsyncadd (%p4094_p1), [#allocation10], 4294966272 }
  0xee   : > { %3262 = dma.done.wait (%p4095_p6), [#allocation13], 1024   ;;  %p4096_p3 = pmov %p4093_p0 }
  0xef   : > { %v682_v0 = vld [vmem:[#allocation11] sm:$0xff]  ;;  %v683_v1 = vld [vmem:[#allocation11 + $0x8] sm:$0xff]  ;;  %vm600_vm0 = vcmask 261120   ;;  %v684_v5 = vld [vmem:[#allocation11 + $0x10] sm:$0xff]  ;;  %v3298_v16 = vmov 0.0   ;;  %vm3299_vm1 = vmmov 0  }
  0xf0   : > { %3264 = vsyncadd (%p4096_p3), [#allocation13], 4294966272  ;;  %v589_v2 = vld [vmem:[#allocation9] sm:$0xff]  ;;  %v2806_v3 = vpack.c.bf16 %v683_v1, %v682_v0  ;;  %v590_v4 = vld [vmem:[#allocation9 + $0x8] sm:$0xff]  ;;  %s4097_s24 = sld [smem:[#allocation33_spill]]  ;;  %vm866_vm2 = vcmask 64512  }
  0xf1   : > { %v685_v6 = vld [vmem:[#allocation11 + $0x18] sm:$0xff]  ;;  %v2798_v7 = vpack.c.bf16 %v590_v4, %v589_v2  ;;  %v591_v9 = vld [vmem:[#allocation9 + $0x10] sm:$0xff]  ;;  %s3300_s3 = smov 120   ;;  %v774_v27 = vld [vmem:[#allocation12] sm:$0xff]  ;;  %s4098_s28 = sld [smem:[#allocation34_spill]]  ;;  %vm1533_vm3 = vcmask 130112  }
  0xf2   : > { %v2810_v8 = vpack.c.bf16 %v685_v6, %v684_v5  ;;  %v592_v10 = vld [vmem:[#allocation9 + $0x18] sm:$0xff]  ;;  %v585_v11 = vld [vmem:[%s497_s12] sm:$0xff]  ;;  %2807 = vmatprep.subr.bf16.mxu1 %v2806_v3  ;;  %v775_v28 = vld [vmem:[#allocation12 + $0x8] sm:$0xff]  ;;  %s3301_s9 = smov 112   ;;  %s3302_s17 = smov 104   ;;  %vm1876_vm4 = vcmask 195712  }
  0xf3   : > { %v2802_v12 = vpack.c.bf16 %v592_v10, %v591_v9  ;;  %2693 = vmatprep.mubr.msk.f32.mxu1 %vm600_vm0, %v585_v11  ;;  %v583_v13 = vld [vmem:[%s488_s19] sm:$0xff]  ;;  %2809 = vmatpush3.bf16.msra.mxu1 %v2806_v3  ;;  %v586_v14 = vld [vmem:[%s497_s12 + $0x8] sm:$0xff]  ;;  %v2814_v30 = vpack.c.bf16 %v775_v28, %v774_v27  ;;  %s3303_s16 = smov 8   ;;  %s3304_s1 = smov 16   ;;  %vm2219_vm5 = vcmask 261312  }
  0xf4   : > { %2799 = vmatprep.subr.bf16.mxu0 %v2798_v7  ;;  %2811 = vmatprep.subr.bf16.mxu1 %v2810_v8  ;;  %v584_v15 = vld [vmem:[%s488_s19 + $0x8] sm:$0xff]  ;;  %v2572_v17 = vld [vmem:[%s4027_s8] ss:$0 sm:$0xff]  ;;  %s3909_s30 = scalar_lea.vmem [#allocation16], %s3686_s14  ;;  %s3305_s18 = smov 24  }
  0xf5   : > { %2801 = vmatpush3.bf16.msra.mxu0 %v2798_v7  ;;  %2682 = vmatprep.mubr.msk.f32.mxu0 %vm600_vm0, %v583_v13  ;;  %v776_v29 = vld [vmem:[#allocation12 + $0x10] sm:$0xff]  ;;  %v777_v31 = vld [vmem:[#allocation12 + $0x18] sm:$0xff]  ;;  %s4099_s13 = sld [smem:[#allocation28_spill]]  ;;  %s2616_s19 = sshll.u32 %s3395_s25, 8 }
  0xf6   : > { %2803 = vmatprep.subr.bf16.mxu0 %v2802_v12  ;;  %v2569_v19 = vld [vmem:[%s4097_s24] ss:$0 sm:$0xff]  ;;  %v2818_v33 = vpack.c.bf16 %v777_v31, %v776_v29  ;;  %v588_v34 = vld [vmem:[%s506_s26 + $0x8] sm:$0xff]  ;;  %s4100_s12 = sld [smem:[#allocation37_spill]]  ;;  %s2357_s27 = sshll.u32 %s3909_s30, 4  ;;  %s3930_s27 = int_to_ptr.vmem [resolvable:$true] %s2357_s27 }
  0xf7   : > { %2813 = vmatpush3.bf16.msra.mxu1 %v2810_v8  ;;  %v587_v32 = vld [vmem:[%s506_s26] sm:$0xff]  ;;  %s2328_s15 = scalar_lea.sflag [#allocation17], %s3683_s11  ;;  %s3177_s21 = scalar_lea.vmem %s3930_s27, 256 }
  0xf8   : > { %2707 = vmatprep.subr.mxu1 %v3298_v16  ;;  %v2575_v55 = vld [vmem:[%s4098_s28] ss:$0 sm:$0xff]  ;;  %p3178_p5 = scmp.ne.s32.totalorder %s3930_s27, %s3177_s21  ;;  %s3306_s10 = smov [#allocation16]  }
  0xf9   : > { %2805 = vmatpush3.bf16.msra.mxu0 %v2802_v12  ;;  %s3181_s24 = sshll.u32 %s3306_s10, 4  ;;  %s3182_s24 = int_to_ptr.vmem [resolvable:$false] %s3181_s24 }
  0xfa   : > { %2694 = vmatmul.mubr.msk.f32.vlgmr.msra.gmra.mrb[0].mxu1 %vm600_vm0, %v586_v14  ;;  %2815 = vmatprep.subr.bf16.mxu0 %v2814_v30  ;;  %p3184_p13 = scmp.lt.s32.totalorder %s3930_s27, %s3182_s24 }
  0xfb   : > { %2709 = vmatprep.mubr.msk.f32.mxu1 %vm3299_vm1, %v3298_v16  ;;  %p4101_p2 = scmp.ne.s32.totalorder %s4099_s13, 0 }
  0xfc   : > { %2683 = vmatmul.mubr.msk.f32.vlgmr.msra.gmra.mrb[0].mxu0 %vm600_vm0, %v584_v15  ;;  %s3927_s26 = scalar_lea.hbm %s4100_s12, %s2616_s19 }
  0xfd   : > { %2704 = vmatprep.mubr.msk.f32.mxu0 %vm600_vm0, %v587_v32  ;;  %2817 = vmatpush3.bf16.msra.mxu0 %v2814_v30  ;;  %p3179_p4 = pnand %p3178_p5, %p4101_p2 }
  0xfe   : > { %2819 = vmatprep.subr.bf16.mxu0 %v2818_v33 }
  0xff   : > { %p3180_p11 = pneg %p3179_p4 }
 0x101   : > { %2821 = vmatpush3.bf16.msra.mxu0 %v2818_v33 }
 0x102   : > { %2727 = vmatprep.subr.mxu0 %v3298_v16 }
 0x104   : > { %2705 = vmatmul.mubr.msk.f32.vlgmr.msra.gmra.mrb[2].mxu0 %vm600_vm0, %v588_v34 }
 0x105   : > { %2729 = vmatprep.mubr.msk.f32.mxu0 %vm3299_vm1, %v3298_v16 }
 0x1cd   : > { %v2695_v18 = vpop.f32.mrb[0].mxu1 }
 0x1ce   : > { %v3730_v20 = vadd.f32 %v2695_v18, %v2572_v17  ;;  %v765_v21 = vpop.f32.mrb[1].mxu1 }
 0x1cf   : > { %v2684_v22 = vpop.f32.mrb[0].mxu0  ;;  %v3732_v23 = vadd.f32 %v2572_v17, %v765_v21 }
 0x1d0   : > { %v673_v24 = vpop.f32.mrb[1].mxu0  ;;  %1271 = vrot.lane.b32.xlu1 %v3730_v20, %s3300_s3  ;;  %v3749_v26 = vadd.f32 %v2684_v22, %v2569_v19 }
 0x1d1   : > { %v3736_v25 = vadd.f32 %v2569_v19, %v673_v24  ;;  %2708 = vmatpush3.xpose.msk.msra.mxu1 %vm866_vm2, %v3732_v23 }
 0x1d2   : > { %2712 = vmatprep.subr.mxu1 %v3298_v16 }
 0x1d4   : > { %1191 = vrot.lane.b32.xlu1 %v3736_v25, %s3300_s3  ;;  %2710 = vmatmul.mubr.msk.f32.vlgmr.msra.gmra.mrb[2].mxu1 %vm866_vm2, %v3736_v25 }
 0x1d5   : > { %2713 = vmatpush3.xpose.msk.msra.mxu1 %vm866_vm2, %v3730_v20  ;;  %2714 = vmatprep.mubr.msk.f32.mxu1 %vm3299_vm1, %v3298_v16 }
 0x1d6   : > { %2717 = vmatprep.subr.mxu1 %v3298_v16 }
 0x1d7   : > { %v2706_v54 = vpop.f32.mrb[2].mxu0 }
 0x1d8   : > { %2715 = vmatmul.mubr.msk.f32.vlgmr.msra.gmra.mrb[4].mxu1 %vm866_vm2, %v3749_v26  ;;  %v857_v56 = vpop.f32.mrb[3].mxu0  ;;  %v3781_v57 = vadd.f32 %v2706_v54, %v2575_v55 }
 0x1d9   : > { %2719 = vmatprep.mubr.msk.f32.mxu1 %vm3299_vm1, %v3298_v16  ;;  %v3783_v58 = vadd.f32 %v2575_v55, %v857_v56 }
 0x1db   : > { %2718 = vmatpush3.msra.mxu1 %v3783_v58 }
 0x1dc   : > { %2722 = vmatprep.subr.mxu1 %v3298_v16 }
 0x242   : > { %v1272_v45 = vpop.permute.xlu1 %1271 }
 0x246   : > { %v1192_v49 = vpop.permute.xlu1 %1191 }
 0x2a7   : > { %v939_v35 = vpop.f32.mrb[2].mxu1 }
 0x2a8   : > { %v2711_v36 = vpop.f32.mrb[3].mxu1  ;;  %v1019_v37 = vsel %vm866_vm2, %v939_v35, -inf }
 0x2a9   : > { %1020 = vmax.xlane.f32.xlu0 %v1019_v37 }
 0x2ab   : > { %v1015_v38 = vpop.f32.mrb[4].mxu1 }
 0x2ac   : > { %v2716_v39 = vpop.f32.mrb[5].mxu1  ;;  %v1022_v40 = vsel %vm866_vm2, %v1015_v38, -inf }
 0x2ad   : > { %1023 = vmax.xlane.f32.xlu0 %v1022_v40 }
 0x2c3   : > { %1193 = vrot.lane.b32.xlu0 %v3732_v23, %s3300_s3 }
 0x336   : > { %v1021_v41 = vpop.xlane.xlu0 %1020 }
 0x337   : > { %v1025_v42 = vsub.f32 %v939_v35, %v1021_v41 }
 0x339   : > { %v1027_v43 = vmul.f32 1.442695, %v1025_v42 }
 0x33a   : > { %v1024_v44 = vpop.xlane.xlu0 %1023 }
 0x33b   : > { %2943 = vpow2.f32 %v1027_v43  ;;  %v1026_v46 = vsub.f32 %v1015_v38, %v1024_v44 }
 0x33d   : > { %v1029_v47 = vmul.f32 1.442695, %v1026_v46 }
 0x33e   : > { %v1194_v48 = vpop.permute.xlu0 %1193 }
 0x33f   : > { %2945 = vpow2.f32 %v1029_v47  ;;  %2728 = vmatpush3.xpose.msk.msra.mxu0 %vm866_vm2, %v1194_v48 }
 0x340   : > { %2737 = vmatprep.subr.mxu0 %v3298_v16 }
 0x342   : > { %2730 = vmatmul.mubr.msk.f32.vlgmr.msra.gmra.mrb[4].mxu0 %vm866_vm2, %v1192_v49 }
 0x343   : > { %2739 = vmatprep.mubr.msk.f32.mxu0 %vm3299_vm1, %v3298_v16 }
 0x345   : > { %v2944_v50 = vpop.eup %2943 }
 0x346   : > { %v1031_v51 = vsel %vm866_vm2, %v2944_v50, 0.0 }
 0x347   : > { %1032 = vadd.xlane.f32.xlu1 %v1031_v51 }
 0x349   : > { %v2946_v52 = vpop.eup %2945 }
 0x34a   : > { %v1034_v53 = vsel %vm866_vm2, %v2946_v52, 0.0 }
 0x34b   : > { %1035 = vadd.xlane.f32.xlu1 %v1034_v53 }
 0x35c   : > { %1269 = vrot.lane.b32.xlu1 %v3749_v26, %s3300_s3 }
 0x3d4   : > { %v1033_v59 = vpop.xlane.xlu1 %1032 }
 0x3d5   : > { %2947 = vrcp.f32 %v1033_v59 }
 0x3d8   : > { %v1036_v60 = vpop.xlane.xlu1 %1035 }
 0x3d9   : > { %2949 = vrcp.f32 %v1036_v60 }
 0x3dc   : > { %v1270_v1 = vpop.permute.xlu1 %1269 }
 0x3df   : > { %v2948_v61 = vpop.eup %2947 }
 0x3e0   : > { %v3787_v62 = vmul.f32 %v2948_v61, %v2944_v50 }
 0x3e2   : > { %2720 = vmatmul.mubr.msk.f32.vlgmr.msra.gmra.mrb[6].mxu1 %vm866_vm2, %v3787_v62 }
 0x3e3   : > { %v2950_v63 = vpop.eup %2949  ;;  %2723 = vmatpush3.msra.mxu1 %v3781_v57  ;;  %2724 = vmatprep.mubr.msk.f32.mxu1 %vm3299_vm1, %v3298_v16 }
 0x3e4   : > { %v3794_v0 = vmul.f32 %v2950_v63, %v2946_v52  ;;  %2732 = vmatprep.subr.mxu1 %v3298_v16 }
 0x3e6   : > { %2725 = vmatmul.mubr.msk.f32.vlgmr.msra.gmra.mrb[8].mxu1 %vm866_vm2, %v3794_v0 }
 0x3e7   : > { %2734 = vmatprep.mubr.msk.f32.mxu1 %vm3299_vm1, %v3298_v16 }
 0x3ea   : > { %2733 = vmatpush3.xpose.msk.msra.mxu1 %vm866_vm2, %v1272_v45 }
 0x3eb   : > { %2742 = vmatprep.subr.mxu1 %v3298_v16 }
 0x3ed   : > { %2735 = vmatmul.mubr.msk.f32.vlgmr.msra.gmra.mrb[10].mxu1 %vm866_vm2, %v1270_v1 }
 0x3ee   : > { %2744 = vmatprep.mubr.msk.f32.mxu1 %vm3299_vm1, %v3298_v16 }
 0x415   : > { %v1265_v2 = vpop.f32.mrb[4].mxu0 }
 0x416   : > { %v2731_v3 = vpop.f32.mrb[5].mxu0  ;;  %v1347_v4 = vsel %vm866_vm2, %v1265_v2, -inf }
 0x417   : > { %1348 = vmax.xlane.f32.xlu0 %v1347_v4 }
 0x4a4   : > { %v1349_v5 = vpop.xlane.xlu0 %1348 }
 0x4a5   : > { %v1353_v6 = vsub.f32 %v1265_v2, %v1349_v5 }
 0x4a7   : > { %v1355_v7 = vmul.f32 1.442695, %v1353_v6 }
 0x4a9   : > { %2951 = vpow2.f32 %v1355_v7 }
 0x4b3   : > { %v2952_v8 = vpop.eup %2951 }
 0x4b4   : > { %v1359_v9 = vsel %vm866_vm2, %v2952_v8, 0.0 }
 0x4b5   : > { %1360 = vadd.xlane.f32.xlu0 %v1359_v9  ;;  %v1112_v10 = vpop.f32.mrb[6].mxu1 }
 0x4b6   : > { %1189 = vst.msk [vmem:[#allocation2] sm:$0xff] %vm866_vm2, %v1112_v10  ;;  %v2721_v11 = vpop.f32.mrb[7].mxu1 }
 0x4b9   : > { %v1185_v12 = vpop.f32.mrb[8].mxu1 }
 0x4ba   : > { %1190 = vst.msk [vmem:[#allocation2 + $0x8] sm:$0xff] %vm866_vm2, %v1185_v12  ;;  %v2726_v13 = vpop.f32.mrb[9].mxu1 }
 0x4c0   : > { %v1343_v14 = vpop.f32.mrb[10].mxu1 }
 0x4c1   : > { %v2736_v15 = vpop.f32.mrb[11].mxu1  ;;  %v1350_v17 = vsel %vm866_vm2, %v1343_v14, -inf }
 0x4c2   : > { %1351 = vmax.xlane.f32.xlu1 %v1350_v17 }
 0x4cb   : > { %1372 = vrot.lane.b32.xlu0 %v3783_v58, %s3300_s3 }
 0x4d3   : > { %1449 = vrot.lane.b32.xlu1 %v3781_v57, %s3300_s3  ;;  %s3183_s3 = scalar_lea.vmem %s3182_s24, 512 }
 0x4d4   : > { %p3185_p7 = scmp.lt.s32.totalorder %s3183_s3, %s3177_s21 }
 0x4d6   : > { %p3186_p9 = por %p3185_p7, %p3184_p13 }
 0x4d7   : > { %1538 = vrot.lane.b32.xlu1 %v3732_v23, %s3301_s9 }
 0x4d8   : > { %p3187_p12 = pnand %p3186_p9, %p3180_p11 }
 0x4db   : > { %1616 = vrot.lane.b32.xlu1 %v3730_v20, %s3301_s9 }
 0x4df   : > { %1614 = vrot.lane.b32.xlu1 %v3749_v26, %s3301_s9 }
 0x542   : > { %v1361_v18 = vpop.xlane.xlu0 %1360 }
 0x543   : > { %2953 = vrcp.f32 %v1361_v18 }
 0x546   : > { %v1373_v19 = vpop.permute.xlu0 %1372 }
 0x547   : > { %2738 = vmatpush3.msra.mxu0 %v1373_v19 }
 0x548   : > { %2747 = vmatprep.subr.mxu0 %v3298_v16 }
 0x54d   : > { %v2954_v21 = vpop.eup %2953 }
 0x54e   : > { %v3822_v22 = vmul.f32 %v2954_v21, %v2952_v8 }
 0x54f   : > { %v1352_v24 = vpop.xlane.xlu1 %1351 }
 0x550   : > { %v1354_v27 = vsub.f32 %v1343_v14, %v1352_v24  ;;  %2740 = vmatmul.mubr.msk.f32.vlgmr.msra.gmra.mrb[6].mxu0 %vm866_vm2, %v3822_v22  ;;  %v1369_v63 = vadd.f32 %v3822_v22, %v3787_v62 }
 0x551   : > { %2749 = vmatprep.mubr.msk.f32.mxu0 %vm3299_vm1, %v3298_v16 }
 0x552   : > { %v1357_v28 = vmul.f32 1.442695, %v1354_v27 }
 0x553   : > { %v1450_v29 = vpop.permute.xlu1 %1449 }
 0x554   : > { %2955 = vpow2.f32 %v1357_v28  ;;  %2743 = vmatpush3.msra.mxu1 %v1450_v29 }
 0x555   : > { %2752 = vmatprep.subr.mxu1 %v3298_v16 }
 0x557   : > { %v1539_v30 = vpop.permute.xlu1 %1538 }
 0x558   : > { %2748 = vmatpush3.xpose.msk.msra.mxu0 %vm866_vm2, %v1539_v30 }
 0x559   : > { %2757 = vmatprep.subr.mxu0 %v3298_v16 }
 0x55b   : > { %v1617_v36 = vpop.permute.xlu1 %1616 }
 0x55e   : > { %v2956_v31 = vpop.eup %2955 }
 0x55f   : > { %v1362_v32 = vsel %vm866_vm2, %v2956_v31, 0.0  ;;  %v1615_v38 = vpop.permute.xlu1 %1614 }
 0x560   : > { %1363 = vadd.xlane.f32.xlu0 %v1362_v32 }
 0x576   : > { %1536 = vrot.lane.b32.xlu0 %v3736_v25, %s3301_s9 }
 0x5ed   : > { %v1364_v33 = vpop.xlane.xlu0 %1363 }
 0x5ee   : > { %2957 = vrcp.f32 %v1364_v33 }
 0x5f1   : > { %v1537_v34 = vpop.permute.xlu0 %1536 }
 0x5f2   : > { %2750 = vmatmul.mubr.msk.f32.vlgmr.msra.gmra.mrb[8].mxu0 %vm866_vm2, %v1537_v34 }
 0x5f3   : > { %2759 = vmatprep.mubr.msk.f32.mxu0 %vm3299_vm1, %v3298_v16 }
 0x5f8   : > { %v2958_v35 = vpop.eup %2957 }
 0x5f9   : > { %v3837_v37 = vmul.f32 %v2958_v35, %v2956_v31 }
 0x5fb   : > { %2745 = vmatmul.mubr.msk.f32.vlgmr.msra.gmra.mrb[12].mxu1 %vm866_vm2, %v3837_v37  ;;  %v1370_v6 = vadd.f32 %v3837_v37, %v3794_v0 }
 0x5fc   : > { %2753 = vmatpush3.xpose.msk.msra.mxu1 %vm866_vm2, %v1617_v36  ;;  %2754 = vmatprep.mubr.msk.f32.mxu1 %vm3299_vm1, %v3298_v16 }
 0x5fd   : > { %2762 = vmatprep.subr.mxu1 %v3298_v16 }
 0x5ff   : > { %2755 = vmatmul.mubr.msk.f32.vlgmr.msra.gmra.mrb[14].mxu1 %vm866_vm2, %v1615_v38 }
 0x600   : > { %2764 = vmatprep.mubr.msk.f32.mxu1 %vm3299_vm1, %v3298_v16 }
 0x623   : > { %v3848_v39 = vpop.f32.mrb[6].mxu0 }
 0x624   : > { %v2741_v40 = vpop.f32.mrb[7].mxu0 }
 0x6c5   : > { %v1610_v41 = vpop.f32.mrb[8].mxu0 }
 0x6c6   : > { %v2751_v42 = vpop.f32.mrb[9].mxu0  ;;  %v1692_v43 = vsel %vm866_vm2, %v1610_v41, -inf }
 0x6c7   : > { %1693 = vmax.xlane.f32.xlu0 %v1692_v43 }
 0x6ce   : > { %v3851_v44 = vpop.f32.mrb[12].mxu1 }
 0x6cf   : > { %v2746_v45 = vpop.f32.mrb[13].mxu1 }
 0x6d2   : > { %v1688_v46 = vpop.f32.mrb[14].mxu1 }
 0x6d3   : > { %v2756_v47 = vpop.f32.mrb[15].mxu1  ;;  %v1695_v48 = vsel %vm866_vm2, %v1688_v46, -inf }
 0x6d4   : > { %1696 = vmax.xlane.f32.xlu1 %v1695_v48  ;;  %v2224_v47 = vld [vmem:[#allocation14] sm:$0xff]  ;;  %v2225_v48 = vld [vmem:[#allocation14 + $0x8] sm:$0xff] }
 0x6e5   : > { %1792 = vrot.lane.b32.xlu1 %v3781_v57, %s3301_s9 }
 0x6e9   : > { %1881 = vrot.lane.b32.xlu1 %v3732_v23, %s3302_s17 }
 0x6ed   : > { %1959 = vrot.lane.b32.xlu1 %v3730_v20, %s3302_s17 }
 0x6f1   : > { %1957 = vrot.lane.b32.xlu1 %v3749_v26, %s3302_s17 }
 0x754   : > { %v1694_v49 = vpop.xlane.xlu0 %1693 }
 0x755   : > { %v1698_v50 = vsub.f32 %v1610_v41, %v1694_v49  ;;  %v2822_v49 = vpack.c.bf16 %v2225_v48, %v2224_v47 }
 0x757   : > { %v1700_v51 = vmul.f32 1.442695, %v1698_v50  ;;  %v2226_v50 = vld [vmem:[#allocation14 + $0x10] sm:$0xff] }
 0x759   : > { %2959 = vpow2.f32 %v1700_v51  ;;  %v2227_v51 = vld [vmem:[#allocation14 + $0x18] sm:$0xff] }
 0x761   : > { %v1697_v52 = vpop.xlane.xlu1 %1696 }
 0x762   : > { %v1699_v20 = vsub.f32 %v1688_v46, %v1697_v52  ;;  %v2826_v52 = vpack.c.bf16 %v2227_v51, %v2226_v50 }
 0x763   : > { %v2960_v53 = vpop.eup %2959 }
 0x764   : > { %v1704_v54 = vsel %vm866_vm2, %v2960_v53, 0.0  ;;  %v1702_v23 = vmul.f32 1.442695, %v1699_v20 }
 0x765   : > { %1705 = vadd.xlane.f32.xlu0 %v1704_v54  ;;  %v1793_v55 = vpop.permute.xlu1 %1792 }
 0x766   : > { %2763 = vmatpush3.msra.mxu1 %v1793_v55  ;;  %2961 = vpow2.f32 %v1702_v23 }
 0x767   : > { %2772 = vmatprep.subr.mxu1 %v3298_v16 }
 0x769   : > { %v1882_v2 = vpop.permute.xlu1 %1881 }
 0x76d   : > { %v1960_v5 = vpop.permute.xlu1 %1959 }
 0x770   : > { %v2962_v26 = vpop.eup %2961 }
 0x771   : > { %v1707_v56 = vsel %vm866_vm2, %v2962_v26, 0.0  ;;  %v1958_v9 = vpop.permute.xlu1 %1957 }
 0x77b   : > { %1716 = vrot.lane.b32.xlu0 %v3783_v58, %s3301_s9 }
 0x79a   : > { %1708 = vadd.xlane.f32.xlu0 %v1707_v56 }
 0x7b0   : > { %1879 = vrot.lane.b32.xlu0 %v3736_v25, %s3302_s17 }
 0x7f2   : > { %v1706_v59 = vpop.xlane.xlu0 %1705 }
 0x7f3   : > { %2963 = vrcp.f32 %v1706_v59 }
 0x7f6   : > { %v1717_v60 = vpop.permute.xlu0 %1716 }
 0x7f7   : > { %2758 = vmatpush3.msra.mxu0 %v1717_v60 }
 0x7f8   : > { %2767 = vmatprep.subr.mxu0 %v3298_v16 }
 0x7fd   : > { %v2964_v61 = vpop.eup %2963 }
 0x7fe   : > { %v1712_v1 = vmul.f32 %v2964_v61, %v2960_v53 }
 0x800   : > { %v3872_v3 = vadd.f32 %v1712_v1, %v1369_v63  ;;  %2760 = vmatmul.mubr.msk.f32.vlgmr.msra.gmra.mrb[10].mxu0 %vm866_vm2, %v1712_v1 }
 0x801   : > { %2768 = vmatpush3.xpose.msk.msra.mxu0 %vm866_vm2, %v1882_v2  ;;  %2769 = vmatprep.mubr.msk.f32.mxu0 %vm3299_vm1, %v3298_v16 }
 0x802   : > { %2777 = vmatprep.subr.mxu0 %v3298_v16 }
 0x827   : > { %v1709_v25 = vpop.xlane.xlu0 %1708 }
 0x828   : > { %2965 = vrcp.f32 %v1709_v25 }
 0x82b   : > { %v1880_v4 = vpop.permute.xlu0 %1879 }
 0x82c   : > { %2770 = vmatmul.mubr.msk.f32.vlgmr.msra.gmra.mrb[12].mxu0 %vm866_vm2, %v1880_v4 }
 0x82d   : > { %2779 = vmatprep.mubr.msk.f32.mxu0 %vm3299_vm1, %v3298_v16 }
 0x832   : > { %v2966_v62 = vpop.eup %2965 }
 0x833   : > { %v1713_v7 = vmul.f32 %v2966_v62, %v2962_v26 }
 0x835   : > { %v3884_v8 = vadd.f32 %v1713_v7, %v1370_v6  ;;  %2765 = vmatmul.mubr.msk.f32.vlgmr.msra.gmra.mrb[16].mxu1 %vm866_vm2, %v1713_v7 }
 0x836   : > { %2773 = vmatpush3.xpose.msk.msra.mxu1 %vm866_vm2, %v1960_v5  ;;  %2774 = vmatprep.mubr.msk.f32.mxu1 %vm3299_vm1, %v3298_v16 }
 0x837   : > { %2782 = vmatprep.subr.mxu1 %v3298_v16 }
 0x839   : > { %2775 = vmatmul.mubr.msk.f32.vlgmr.msra.gmra.mrb[18].mxu1 %vm866_vm2, %v1958_v9 }
 0x83a   : > { %2784 = vmatprep.mubr.msk.f32.mxu1 %vm3299_vm1, %v3298_v16 }
 0x8d3   : > { %v1788_v10 = vpop.f32.mrb[10].mxu0 }
 0x8d4   : > { %v2761_v0 = vpop.f32.mrb[11].mxu0 }
 0x8ff   : > { %v1953_v11 = vpop.f32.mrb[12].mxu0 }
 0x900   : > { %v2771_v12 = vpop.f32.mrb[13].mxu0  ;;  %v2035_v13 = vsel %vm866_vm2, %v1953_v11, -inf }
 0x901   : > { %2036 = vmax.xlane.f32.xlu0 %v2035_v13 }
 0x908   : > { %v1864_v14 = vpop.f32.mrb[16].mxu1 }
 0x909   : > { %v2766_v15 = vpop.f32.mrb[17].mxu1 }
 0x90c   : > { %v2031_v17 = vpop.f32.mrb[18].mxu1 }
 0x90d   : > { %v2776_v18 = vpop.f32.mrb[19].mxu1  ;;  %v2038_v19 = vsel %vm866_vm2, %v2031_v17, -inf }
 0x90e   : > { %2039 = vmax.xlane.f32.xlu1 %v2038_v19 }
 0x91f   : > { %2135 = vrot.lane.b32.xlu1 %v3781_v57, %s3302_s17 }
 0x923   : > { %1527 = vrot.lane.b32.xlu1 %v3848_v39, %s3303_s16 }
 0x927   : > { %1529 = vrot.lane.b32.xlu1 %v3851_v44, %s3303_s16 }
 0x92b   : > { %1872 = vrot.lane.b32.xlu1 %v1864_v14, %s3304_s1 }
 0x98e   : > { %v2037_v16 = vpop.xlane.xlu0 %2036 }
 0x98f   : > { %v2041_v21 = vsub.f32 %v1953_v11, %v2037_v16 }
 0x991   : > { %v2043_v22 = vmul.f32 1.442695, %v2041_v21 }
 0x993   : > { %2967 = vpow2.f32 %v2043_v22 }
 0x99b   : > { %v2040_v24 = vpop.xlane.xlu1 %2039 }
 0x99c   : > { %v2042_v27 = vsub.f32 %v2031_v17, %v2040_v24 }
 0x99d   : > { %v2968_v28 = vpop.eup %2967 }
 0x99e   : > { %v2045_v29 = vmul.f32 1.442695, %v2042_v27  ;;  %v2047_v30 = vsel %vm866_vm2, %v2968_v28, 0.0 }
 0x99f   : > { %2048 = vadd.xlane.f32.xlu0 %v2047_v30  ;;  %v2136_v57 = vpop.permute.xlu1 %2135 }
 0x9a0   : > { %2969 = vpow2.f32 %v2045_v29  ;;  %2783 = vmatpush3.msra.mxu1 %v2136_v57 }
 0x9a3   : > { %v1528_v31 = vpop.permute.xlu1 %1527 }
 0x9a4   : > { %1534 = vst.msk [vmem:[#allocation2] sm:$0xff] %vm1533_vm3, %v1528_v31 }
 0x9a7   : > { %v1530_v32 = vpop.permute.xlu1 %1529 }
 0x9a8   : > { %1535 = vst.msk [vmem:[#allocation2 + $0x8] sm:$0xff] %vm1533_vm3, %v1530_v32 }
 0x9aa   : > { %v2970_v33 = vpop.eup %2969 }
 0x9ab   : > { %v1873_v34 = vpop.permute.xlu1 %1872  ;;  %v2050_v35 = vsel %vm866_vm2, %v2970_v33, 0.0 }
 0x9ac   : > { %1878 = vst.msk [vmem:[#allocation2 + $0x8] sm:$0xff] %vm1876_vm4, %v1873_v34  ;;  %2051 = vadd.xlane.f32.xlu0 %v2050_v35 }
 0x9c2   : > { %2059 = vrot.lane.b32.xlu0 %v3783_v58, %s3302_s17 }
 0x9c6   : > { %1870 = vrot.lane.b32.xlu0 %v1788_v10, %s3304_s1 }
 0xa2c   : > { %v2049_v36 = vpop.xlane.xlu0 %2048 }
 0xa2d   : > { %2971 = vrcp.f32 %v2049_v36 }
 0xa37   : > { %v2972_v37 = vpop.eup %2971 }
 0xa38   : > { %v2055_v38 = vmul.f32 %v2972_v37, %v2968_v28 }
 0xa39   : > { %v2052_v39 = vpop.xlane.xlu0 %2051 }
 0xa3a   : > { %v2057_v40 = vadd.f32 %v2055_v38, %v3872_v3  ;;  %2973 = vrcp.f32 %v2052_v39 }
 0xa3c   : > { %v2318_v41 = vmul.f32 0.25, %v2057_v40 }
 0xa3d   : > { %v2060_v42 = vpop.permute.xlu0 %2059 }
 0xa3e   : > { %2778 = vmatpush3.msra.mxu0 %v2060_v42  ;;  %2320 = vst.msk [vmem:[%s3909_s30] sm:$0xff] %vm866_vm2, %v2318_v41 }
 0xa3f   : > { %2780 = vmatmul.mubr.msk.f32.vlgmr.msra.gmra.mrb[14].mxu0 %vm866_vm2, %v2055_v38  ;;  %2823 = vmatprep.subr.bf16.mxu0 %v2822_v49 }
 0xa40   : > { %2825 = vmatpush3.bf16.msra.mxu0 %v2822_v49 }
 0xa41   : > { %v1871_v58 = vpop.permute.xlu0 %1870  ;;  %2827 = vmatprep.subr.bf16.mxu0 %v2826_v52 }
 0xa42   : > { %1877 = vst.msk [vmem:[#allocation2] sm:$0xff] %vm1876_vm4, %v1871_v58 }
 0xa44   : > { %v2974_v43 = vpop.eup %2973  ;;  %2829 = vmatpush3.bf16.msra.mxu0 %v2826_v52 }
 0xa45   : > { %v2056_v44 = vmul.f32 %v2974_v43, %v2970_v33 }
 0xa47   : > { %v2058_v45 = vadd.f32 %v2056_v44, %v3884_v8  ;;  %2785 = vmatmul.mubr.msk.f32.vlgmr.msra.gmra.mrb[20].mxu1 %vm866_vm2, %v2056_v44 }
 0xa49   : > { %v2319_v46 = vmul.f32 0.25, %v2058_v45 }
 0xa4b   : > { %2321 = vst.msk [vmem:[%s3909_s30 + $0x8] sm:$0xff] %vm866_vm2, %v2319_v46 }
 0xb12   : > { %v2131_v53 = vpop.f32.mrb[14].mxu0 }
 0xb13   : > { %2213 = vrot.lane.b32.xlu0 %v2131_v53, %s3305_s18  ;;  %v2781_v54 = vpop.f32.mrb[15].mxu0 }
 0xb1a   : > { %v2207_v55 = vpop.f32.mrb[20].mxu1 }
 0xb1b   : > { %2215 = vrot.lane.b32.xlu1 %v2207_v55, %s3305_s18  ;;  %v2786_v20 = vpop.f32.mrb[21].mxu1 }
 0xb85   : > { %v2214_v23 = vpop.permute.xlu0 %2213 }
 0xb86   : > { %2220 = vst.msk [vmem:[#allocation2] sm:$0xff] %vm2219_vm5, %v2214_v23 }
 0xb8d   : > { %v2216_v26 = vpop.permute.xlu1 %2215  ;;  %v2222_v56 = vld [vmem:[#allocation2] sm:$0xff] }
 0xb8e   : > { %2221 = vst.msk [vmem:[#allocation2 + $0x8] sm:$0xff] %vm2219_vm5, %v2216_v26  ;;  %2795 = vmatprep.mubr.msk.f32.mxu0 %vm600_vm0, %v2222_v56 }
 0xb95   : > { %v2223_v59 = vld [vmem:[#allocation2 + $0x8] sm:$0xff] }
 0xb96   : > { %2796 = vmatmul.mubr.msk.f32.vlgmr.msra.gmra.mrb[16].mxu0 %vm600_vm0, %v2223_v59 }
 0xb97   : > { %3190 = shalt.err (!%p3187_p12)
}
 0xb98   : > { %s3191_s7 = scalar_lea.hbm %s3927_s26, 256  ;;  %s3195_s9 = scalar_lea.hbm %s4100_s12, 512 }
 0xb99   : > { %p3192_p8 = scmp.ne.s32.totalorder %s3927_s26, %s3191_s7  ;;  %p3196_p1 = scmp.lt.u32.totalorder %s3927_s26, %s4100_s12 }
 0xb9a   : > { %p3197_p6 = scmp.lt.u32.totalorder %s3195_s9, %s3191_s7  ;;  %p3199_p5 = scmp.lt.u32.totalorder %s3191_s7, %s3927_s26 }
 0xb9b   : > { %p3193_p10 = pnand %p3192_p8, %p4101_p2 }
 0xb9c   : > { %p3198_p3 = por %p3197_p6, %p3196_p1 }
 0xb9d   : > { %p3194_p0 = pneg %p3193_p10 }
 0xb9e   : > { %p3200_p4 = por %p3199_p5, %p3198_p3 }
 0xba0   : > { %p3201_p11 = pnand %p3200_p4, %p3194_p0 }
 0xba2   : > { %3204 = shalt.err (!%p3201_p11)
}
 0xba3   : > { %s3307_s30 = smov 128   ;;  %s4102_s29 = sld [smem:[#allocation35_spill]] }
 0xba4   : > { %2853 = dma.vmem_to_hbm [thread:$0]  (%p4101_p2), %s3930_s27, 256, %s3927_s26, %s2328_s15, %s3307_s30, %s3307_s30, %s3303_s16  }
 0xba5   : > { %s570_s21 = scalar_lea.vmem [#allocation15], %s3686_s14  ;;  %s4103_s7 = sld [smem:[#allocation36_spill]] }
 0xba6   : > { %s2341_s10 = sshll.u32 %s570_s21, 4  ;;  %s2323_s14 = scalar_lea.sflag [#allocation5], %s3683_s11  ;;  %s3963_s10 = int_to_ptr.vmem [resolvable:$true] %s2341_s10 }
 0xba7   : > { %s3205_s27 = scalar_lea.vmem %s3963_s10, 256  ;;  %s3308_s15 = smov [#allocation15]  }
 0xba8   : > { %p3206_p13 = scmp.ne.s32.totalorder %s3963_s10, %s3205_s27  ;;  %s3209_s20 = sshll.u32 %s3308_s15, 4  ;;  %s3210_s20 = int_to_ptr.vmem [resolvable:$false] %s3209_s20 }
 0xba9   : > { %v2602_v60 = vld [vmem:[%s4102_s29] ss:$0 sm:$0xff]  ;;  %s3211_s28 = scalar_lea.vmem %s3210_s20, 512  ;;  %p3212_p12 = scmp.lt.s32.totalorder %s3963_s10, %s3210_s20 }
 0xbaa   : > { %p3207_p7 = pnand %p3206_p13, %p4101_p2  ;;  %p3213_p8 = scmp.lt.s32.totalorder %s3211_s28, %s3205_s27 }
 0xbab   : > { %s3970_s26 = scalar_lea.hbm %s4103_s7, %s2616_s19 }
 0xbac   : > { %p3208_p9 = pneg %p3207_p7  ;;  %p3214_p10 = por %p3213_p8, %p3212_p12 }
 0xbae   : > { %p3215_p0 = pnand %p3214_p10, %p3208_p9 }
 0xc69   : > { %v2797_v61 = vpop.f32.mrb[16].mxu0 }
 0xc6a   : > { %v2313_v63 = vadd.f32 %v2797_v61, %v2602_v60  ;;  %v2307_v1 = vpop.f32.mrb[17].mxu0 }
 0xc6b   : > { %v2308_v2 = vadd.f32 %v2602_v60, %v2307_v1 }
 0xc6c   : > { %2317 = vst.msk [vmem:[%s570_s21 + $0x8] sm:$0xff] %vm600_vm0, %v2313_v63 }
 0xc6d   : > { %2316 = vst.msk [vmem:[%s570_s21] sm:$0xff] %vm600_vm0, %v2308_v2 }
 0xc6e   : > { %3218 = shalt.err (!%p3215_p0)
}
 0xc6f   : > { %s3219_s25 = scalar_lea.hbm %s3970_s26, 256  ;;  %s3223_s17 = scalar_lea.hbm %s4103_s7, 512 }
 0xc70   : > { %p3220_p1 = scmp.ne.s32.totalorder %s3970_s26, %s3219_s25  ;;  %p3224_p5 = scmp.lt.u32.totalorder %s3970_s26, %s4103_s7 }
 0xc71   : > { %p3225_p4 = scmp.lt.u32.totalorder %s3223_s17, %s3219_s25  ;;  %p3227_p13 = scmp.lt.u32.totalorder %s3219_s25, %s3970_s26 }
 0xc72   : > { %p3221_p6 = pnand %p3220_p1, %p4101_p2 }
 0xc73   : > { %p3226_p11 = por %p3225_p4, %p3224_p5 }
 0xc74   : > { %p3222_p3 = pneg %p3221_p6 }
 0xc75   : > { %p3228_p7 = por %p3227_p13, %p3226_p11 }
 0xc77   : > { %p3229_p9 = pnand %p3228_p7, %p3222_p3 }
 0xc79   : > { %3232 = shalt.err (!%p3229_p9)
}
 0xc7a   : > { %2852 = dma.vmem_to_hbm [thread:$0]  (%p4101_p2), %s3963_s10, 256, %s3970_s26, %s2323_s14, %s3307_s30, %s3307_s30, %s3303_s16  }
 0xc7b PF: > { %s4104_s5 = sld [smem:[#allocation24_spill]]  ;;  %s4105_s29 = sld [smem:[#allocation26_spill]] }
 0xc7c   : > { %s4106_s21 = sld [smem:[#allocation25_spill]] }
 0xc81   : > { %s2372_s24 = sand.u32 1, %s4104_s5   ;;  %p4107_p12 = scmp.ne.s32.totalorder %s4105_s29, 0 }
 0xc82   : > { %p4108_p8 = scmp.ge.s32.totalorder %s4106_s21, 2  ;;  %s2373_s3 = scalar_lea.sflag [#allocation5], %s2372_s24 }
 0xc84   : > { %p2880_p10 = pnand %p4108_p8, %p4107_p12 }
 0xc86   : > { %3266 = dma.done.wait (!%p2880_p10), %s2373_s3, 256  }
 0xc87   : > { %3268 = vsyncadd (!%p2880_p10), %s2373_s3, 4294967040  ;;  %s2382_s13 = scalar_lea.sflag [#allocation17], %s2372_s24 }
 0xc88   : > { %3270 = dma.done.wait (!%p2880_p10), %s2382_s13, 256  }
 0xc89   : > { %3272 = vsyncadd (!%p2880_p10), %s2382_s13, 4294967040  ;;  %s4109_s24 = sld [smem:[#allocation27_spill]]  ;;  %s4110_s11 = sld [smem:[#allocation29_spill]] }
 0xc8a   : > { %s4111_s21 = smov %s3279_s22  ;;  %s4112_s22 = smov %s3283_s23 }
 0xc8f   : > { %p34_p2 = scmp.ge.s32.totalorder %s4109_s24, 4   ;;  %s4113_s23 = smov %s4110_s11 }
 0xc91   :  { %36 = sbr.rel (!%p34_p2) target bundleno = 20 (0x14), region = 166 }
 0xc98   :  { %2387 = vsyncpa [#allocation4], 1 }
 0xc99   :  { %2389 = vsyncpa [#allocation4 + $0x1], 1 }
 0xc9a   :  { %2390 = vsyncpa [#allocation7], 1 }
 0xc9b   :  { %2392 = vsyncpa [#allocation7 + $0x1], 1 }
 0xc9c   :  { %2393 = vsyncpa [#allocation10], 1 }
 0xc9d   :  { %2394 = vsyncpa [#allocation13], 1 }
 0xc9e   :  { %2395 = vsyncpa [#allocation5], 1 }
 0xc9f   :  { %2397 = vsyncpa [#allocation5 + $0x1], 1 }
 0xca0   :  { %2398 = vsyncpa [#allocation17], 1 }
 0xca1   :  { %2400 = vsyncpa [#allocation17 + $0x1], 1 }

</bundles_post_ra>
